<compile_context>
chip_gen: v7x
topology: tpu7x:2x2x1
jax: 0.10.0
libtpu: 0.0.40
codegen_flags: <defaults>
</compile_context>

<pallas_src>
import functools

import jax
import jax.numpy as jnp
import numpy as np
from jax.experimental import pallas as pl
from jax.experimental.pallas import tpu as pltpu

EPS = 1e-5
LANES = 128
SUBLANES = 8


def _round_up(n, m):
    return ((n + m - 1) // m) * m


def _pad_last(a, n):
    pad = [(0, 0)] * (a.ndim - 1) + [(0, n - a.shape[-1])]
    return jnp.pad(a, pad)


def _chip_vmem_bytes():
    try:
        return int(pltpu.get_tpu_info().vmem_capacity_bytes)
    except Exception:
        return 128 << 20


def _vmem_estimate(th, wp, cin_p, cout_p):
    cmax = max(cin_p, cout_p)
    xblk = (th + 4) * wp * cin_p * 2            # bf16 x window
    yblk = (th + 2) * wp * cout_p * 2           # bf16 y window
    oblk = th * wp * cout_p * 4                 # f32 output tile
    wts = 9 * (cin_p * cout_p + cout_p * cout_p) * 2
    scratch = (th + 4) * wp * cmax * 2          # shared bf16 scratch
    live = 4 * (th + 2) * wp * cout_p * 4       # f32 acc / partial / z intermediates
    return 2 * (xblk + yblk + oblk) + 2 * wts + scratch + live


def _pick_block_h(H, wp, cin_p, cout_p, budget):
    for th in (256, 128, 64, 32, 16, 8):
        if th <= H and _vmem_estimate(th, wp, cin_p, cout_p) <= budget:
            return th
    return min(H, 8)


def convup_kernel(x_ref, y_ref, feat_ref,
                  s1_ref, t1_ref, w1_ref,
                  s2_ref, t2_ref, w2_ref, cb2_ref,
                  out_ref, zp_ref, *, H, W, TH):
    Wp = out_ref.shape[1]
    Cin_p = x_ref.shape[-1]
    Cout_p = out_ref.shape[-1]
    r0 = pl.program_id(1) * TH                 # first output image row of this tile

    col_ok = jax.lax.broadcasted_iota(jnp.int32, (1, Wp, 1), 1) < W

    def masked_bf16(val, row0_img):
        # Zero the rows outside the image (SAME conv zero padding / H-tile overrun)
        # and the pad columns >= W, then cast ONCE to bf16 for the MXU.
        nrows = val.shape[0]
        row = jax.lax.broadcasted_iota(jnp.int32, (nrows, 1, 1), 0) + row0_img
        ok = (row >= 0) & (row < H) & col_ok
        return jnp.where(ok, val, 0.0).astype(jnp.bfloat16)

    def conv3x3(nrows_out, cin, w_ref):
        # 3x3 "SAME" conv over bf16 scratch rows [0, nrows_out + 2).
        # dy taps: leading-dim (slab-aligned) slices -> layout-preserving reshape.
        # dx = +-1 shifts: applied to the f32 partial result with pltpu.roll (XLU);
        # the zero pad column(s) >= W make the wrap-around exact (no edge masks).
        cout = w_ref.shape[-1]
        m = nrows_out * Wp
        acc = jnp.zeros((m, cout), jnp.float32)
        for dx in range(3):
            part = jnp.zeros((m, cout), jnp.float32)
            for dy in range(3):
                tap = zp_ref[dy:dy + nrows_out, :, :cin].reshape(m, cin)
                part = part + jnp.dot(tap, w_ref[dy, dx],
                                      preferred_element_type=jnp.float32)
            if dx != 1:
                part = pltpu.roll(part, shift=(1 - dx) % m, axis=0)
            acc = acc + part
        return acc

    # --- conv_0: folded-BN1 affine -> ReLU -> 3x3 conv -------------------------
    u1 = jnp.maximum(x_ref[...] * s1_ref[...] + t1_ref[...], 0.0)
    zp_ref[:, :, :Cin_p] = masked_bf16(u1, r0 - 2)
    z = conv3x3(TH + 2, Cin_p, w1_ref).reshape(TH + 2, Wp, Cout_p)

    # --- skip connection + precomputed (style Linear + conv_0 bias) ------------
    z = z + y_ref[...] + feat_ref[...]

    # --- conv_1: folded-BN2 affine -> ReLU -> 3x3 conv + bias ------------------
    u2 = jnp.maximum(z * s2_ref[...] + t2_ref[...], 0.0)
    zp_ref[0:TH + 2, :, :Cout_p] = masked_bf16(u2, r0 - 1)
    o = conv3x3(TH, Cout_p, w2_ref) + cb2_ref[...]

    out_ref[...] = o.reshape(TH, Wp, Cout_p).astype(out_ref.dtype)


def _convup_nhwc(x, y, style, params, block_h):
    B, H, W, Cin = x.shape
    Cout = y.shape[-1]
    Cin_p = _round_up(Cin, LANES)
    Cout_p = _round_up(Cout, LANES)
    # >=1 trailing zero column so the dx rolls wrap into zeros and the flattened
    # (rows*Wp, C) view of the scratch stays (8,128)-aligned.
    Wp = _round_up(W + 1, SUBLANES)

    vmem_cap = _chip_vmem_bytes()
    if block_h is None:
        block_h = _pick_block_h(H, Wp, Cin_p, Cout_p, budget=(vmem_cap * 3) // 5)
    TH = max(1, min(int(block_h), H))
    Hp = _round_up(H, TH)
    nH = Hp // TH

    # Fold eval-mode BN into per-channel affine; padded lanes stay exact zero.
    s1 = params["g1"] * jax.lax.rsqrt(params["v1"] + EPS)
    t1 = params["b1"] - params["m1"] * s1
    s2 = params["g2"] * jax.lax.rsqrt(params["v2"] + EPS)
    t2 = params["b2"] - params["m2"] * s2

    # Style Linear + conv_0 bias, precomputed per batch: (B, 1, Cout_p).
    feat = style @ params["wf"].T + params["bf"] + params["cb1"]
    feat = _pad_last(feat, Cout_p)[:, None, :]

    def prep_w(w, cin_p, cout_p):
        w = jnp.transpose(w, (2, 3, 1, 0))      # OIHW -> (ky, kx, Cin, Cout)
        w = jnp.pad(w, ((0, 0), (0, 0),
                        (0, cin_p - w.shape[2]), (0, cout_p - w.shape[3])))
        return w.astype(jnp.bfloat16)

    w1 = prep_w(params["w1"], Cin_p, Cout_p)
    w2 = prep_w(params["w2"], Cout_p, Cout_p)

    # bf16, lane/W/H-padded activations; overlapping row windows carry the
    # conv_0 -> conv_1 halo (x: 2 rows, y: 1 row) as plain Blocked blocks so the
    # Pallas pipeline double-buffers them automatically.
    xpad = jnp.pad(x, ((0, 0), (2, 2 + Hp - H), (0, Wp - W),
                       (0, Cin_p - Cin))).astype(jnp.bfloat16)
    ypad = jnp.pad(y, ((0, 0), (1, 1 + Hp - H), (0, Wp - W),
                       (0, Cout_p - Cout))).astype(jnp.bfloat16)
    rx = jnp.arange(nH)[:, None] * TH + jnp.arange(TH + 4)[None, :]
    ry = jnp.arange(nH)[:, None] * TH + jnp.arange(TH + 2)[None, :]
    xw = xpad[:, rx]                            # (B, nH, TH+4, Wp, Cin_p)
    yw = ypad[:, ry]                            # (B, nH, TH+2, Wp, Cout_p)

    est = _vmem_estimate(TH, Wp, Cin_p, Cout_p)
    vmem_limit = int(min(max(est + (8 << 20), 32 << 20), vmem_cap - (8 << 20)))

    kernel = functools.partial(convup_kernel, H=H, W=W, TH=TH)

    out = pl.pallas_call(
        kernel,
        out_shape=jax.ShapeDtypeStruct((B, Hp, Wp, Cout_p), jnp.float32),
        grid_spec=pltpu.PrefetchScalarGridSpec(
            num_scalar_prefetch=0,
            grid=(B, nH),
            in_specs=[
                pl.BlockSpec((None, None, TH + 4, Wp, Cin_p),
                             lambda b, t: (b, t, 0, 0, 0)),               # x window
                pl.BlockSpec((None, None, TH + 2, Wp, Cout_p),
                             lambda b, t: (b, t, 0, 0, 0)),               # y window
                pl.BlockSpec((None, 1, Cout_p), lambda b, t: (b, 0, 0)),  # feat
                pl.BlockSpec((1, Cin_p), lambda b, t: (0, 0)),            # s1
                pl.BlockSpec((1, Cin_p), lambda b, t: (0, 0)),            # t1
                pl.BlockSpec((3, 3, Cin_p, Cout_p),
                             lambda b, t: (0, 0, 0, 0)),                  # w1
                pl.BlockSpec((1, Cout_p), lambda b, t: (0, 0)),           # s2
                pl.BlockSpec((1, Cout_p), lambda b, t: (0, 0)),           # t2
                pl.BlockSpec((3, 3, Cout_p, Cout_p),
                             lambda b, t: (0, 0, 0, 0)),                  # w2
                pl.BlockSpec((1, Cout_p), lambda b, t: (0, 0)),           # cb2
            ],
            out_specs=pl.BlockSpec((None, TH, Wp, Cout_p),
                                   lambda b, t: (b, t, 0, 0)),
            scratch_shapes=[
                pltpu.VMEM((TH + 4, Wp, max(Cin_p, Cout_p)), jnp.bfloat16),
            ]),
        compiler_params=pltpu.CompilerParams(
            dimension_semantics=("parallel", "parallel"),
            vmem_limit_bytes=vmem_limit),
    )(xw, yw, feat,
      _pad_last(s1, Cin_p)[None, :], _pad_last(t1, Cin_p)[None, :], w1,
      _pad_last(s2, Cout_p)[None, :], _pad_last(t2, Cout_p)[None, :], w2,
      _pad_last(params["cb2"], Cout_p)[None, :])

    return out[:, :H, :W, :Cout]


@functools.partial(jax.jit, static_argnames=("block_h",))
def convup_pallas_nhwc(x, y, style, params, *, block_h=None):
    """Channels-last entry point (preferred; no NCHW<->NHWC transposes)."""
    return _convup_nhwc(x, y, style, params, block_h)


@functools.partial(jax.jit, static_argnames=("block_h",))
def convup_pallas(x_nchw, y_nchw, style, params, *, block_h=None):
    """PyTorch-layout (NCHW) adapter around the NHWC kernel."""
    x = jnp.transpose(x_nchw, (0, 2, 3, 1))
    y = jnp.transpose(y_nchw, (0, 2, 3, 1))
    out = _convup_nhwc(x, y, style, params, block_h)
    return jnp.transpose(out, (0, 3, 1, 2))


def ref_forward(x, y, style, p):
    """Pure-JAX f32 reference matching the PyTorch module (eval-mode BN)."""
    def bn_relu(t, g, bb, m, v):
        t = (t - m[None, :, None, None]) / jnp.sqrt(v[None, :, None, None] + EPS)
        t = t * g[None, :, None, None] + bb[None, :, None, None]
        return jax.nn.relu(t)

    def conv(t, w, bb):
        o = jax.lax.conv_general_dilated(
            t, w, (1, 1), "SAME",
            dimension_numbers=("NCHW", "OIHW", "NCHW"))
        return o + bb[None, :, None, None]

    z = conv(bn_relu(x, p["g1"], p["b1"], p["m1"], p["v1"]), p["w1"], p["cb1"]) + y
    feat = style @ p["wf"].T + p["bf"]
    z = z + feat[:, :, None, None]
    z = conv(bn_relu(z, p["g2"], p["b2"], p["m2"], p["v2"]), p["w2"], p["cb2"])
    return z


if __name__ == "__main__":
    B, Cin, Cout, S, H, W = 2, 4, 8, 6, 16, 16

    key = jax.random.PRNGKey(0)
    ks = jax.random.split(key, 24)

    x = jax.random.normal(ks[0], (B, Cin, H, W), jnp.float32)
    y = jax.random.normal(ks[1], (B, Cout, H, W), jnp.float32)
    style = jax.random.normal(ks[2], (B, S), jnp.float32)

    params = {
        # BatchNorm2d(in_channels)  (eval-mode running stats)
        "g1": 1.0 + 0.1 * jax.random.normal(ks[3], (Cin,), jnp.float32),
        "b1": 0.1 * jax.random.normal(ks[4], (Cin,), jnp.float32),
        "m1": 0.1 * jax.random.normal(ks[5], (Cin,), jnp.float32),
        "v1": jax.random.uniform(ks[6], (Cin,), jnp.float32, 0.5, 1.5),
        # Conv2d(in_channels, out_channels, 3, padding=1)  OIHW
        "w1": 0.1 * jax.random.normal(ks[7], (Cout, Cin, 3, 3), jnp.float32),
        "cb1": 0.01 * jax.random.normal(ks[8], (Cout,), jnp.float32),
        # Linear(style_channels, out_channels)
        "wf": 0.1 * jax.random.normal(ks[9], (Cout, S), jnp.float32),
        "bf": 0.01 * jax.random.normal(ks[10], (Cout,), jnp.float32),
        # BatchNorm2d(out_channels)
        "g2": 1.0 + 0.1 * jax.random.normal(ks[11], (Cout,), jnp.float32),
        "b2": 0.1 * jax.random.normal(ks[12], (Cout,), jnp.float32),
        "m2": 0.1 * jax.random.normal(ks[13], (Cout,), jnp.float32),
        "v2": jax.random.uniform(ks[14], (Cout,), jnp.float32, 0.5, 1.5),
        # Conv2d(out_channels, out_channels, 3, padding=1)  OIHW
        "w2": 0.1 * jax.random.normal(ks[15], (Cout, Cout, 3, 3), jnp.float32),
        "cb2": 0.01 * jax.random.normal(ks[16], (Cout,), jnp.float32),
    }
    # TODO(synk): training-mode BatchNorm (batch statistics + running-stat update)
    # is stateful; only eval-mode BN semantics are implemented.

    ref = jax.block_until_ready(ref_forward(x, y, style, params))

    # Multi-tile run (block_h=8 -> 2 H-tiles per image) exercises the halo /
    # tile-seam path.
    out = jax.block_until_ready(convup_pallas(x, y, style, params, block_h=8))
    # Tolerance accounts for bf16 activations + bf16 MXU operands (f32 accumulation)
    # across the two chained 3x3 convs; structural errors would be far larger.
    np.testing.assert_allclose(np.asarray(out), np.asarray(ref),
                               rtol=5e-2, atol=5e-2)

    # Auto block size (single tile at this image size) exercises the nH == 1 path.
    out2 = jax.block_until_ready(convup_pallas(x, y, style, params))
    np.testing.assert_allclose(np.asarray(out2), np.asarray(ref),
                               rtol=5e-2, atol=5e-2)

    print("KERNEL_OK")
</pallas_src>

<mosaic_0001>
module attributes {stable_mosaic.version = 11 : i64} {
  func.func @convup_kernel(%arg0: i32, %arg1: i32, %arg2: memref<1x1x12x24x128xbf16, #tpu.memory_space<vmem>>, %arg3: memref<1x1x10x24x128xbf16, #tpu.memory_space<vmem>>, %arg4: memref<1x1x128xf32, #tpu.memory_space<vmem>>, %arg5: memref<1x128xf32, #tpu.memory_space<vmem>>, %arg6: memref<1x128xf32, #tpu.memory_space<vmem>>, %arg7: memref<3x3x128x128xbf16, #tpu.memory_space<vmem>>, %arg8: memref<1x128xf32, #tpu.memory_space<vmem>>, %arg9: memref<1x128xf32, #tpu.memory_space<vmem>>, %arg10: memref<3x3x128x128xbf16, #tpu.memory_space<vmem>>, %arg11: memref<1x128xf32, #tpu.memory_space<vmem>>, %arg12: memref<1x8x24x128xf32, #tpu.memory_space<vmem>>, %arg13: memref<12x24x128xbf16, #tpu.memory_space<vmem>>) attributes {dimension_semantics = [#tpu.dimension_semantics<parallel>, #tpu.dimension_semantics<parallel>], iteration_bounds = array<i64: 2, 2>, scalar_prefetch = 0 : i64, scratch_operands = 1 : i64, tpu.core_type = #tpu.core_type<tc>, window_params = [{transform_indices = @transform_0, window_bounds = array<i64: 1, 1, 12, 24, 128>}, {transform_indices = @transform_1, window_bounds = array<i64: 1, 1, 10, 24, 128>}, {transform_indices = @transform_2, window_bounds = array<i64: 1, 1, 128>}, {pipeline_mode = #tpu.pipeline_mode<synchronous>, transform_indices = @transform_3, window_bounds = array<i64: 1, 128>}, {pipeline_mode = #tpu.pipeline_mode<synchronous>, transform_indices = @transform_4, window_bounds = array<i64: 1, 128>}, {pipeline_mode = #tpu.pipeline_mode<synchronous>, transform_indices = @transform_5, window_bounds = array<i64: 3, 3, 128, 128>}, {pipeline_mode = #tpu.pipeline_mode<synchronous>, transform_indices = @transform_6, window_bounds = array<i64: 1, 128>}, {pipeline_mode = #tpu.pipeline_mode<synchronous>, transform_indices = @transform_7, window_bounds = array<i64: 1, 128>}, {pipeline_mode = #tpu.pipeline_mode<synchronous>, transform_indices = @transform_8, window_bounds = array<i64: 3, 3, 128, 128>}, {pipeline_mode = #tpu.pipeline_mode<synchronous>, transform_indices = @transform_9, window_bounds = array<i64: 1, 128>}, {transform_indices = @transform_10, window_bounds = array<i64: 1, 8, 24, 128>}]} {
    %c8_i32 = arith.constant 8 : i32
    %0 = arith.muli %arg1, %c8_i32 : i32
    %1 = tpu.iota {dimensions = array<i32: 1>} : vector<1x24x1xi32>
    %c16_i32 = arith.constant 16 : i32
    %2 = vector.broadcast %c16_i32 : i32 to vector<1x24x1xi32>
    %3 = arith.cmpi slt, %1, %2 : vector<1x24x1xi32>
    %c0 = arith.constant 0 : index
    %c0_0 = arith.constant 0 : index
    %c0_1 = arith.constant 0 : index
    %c0_2 = arith.constant 0 : index
    %c0_3 = arith.constant 0 : index
    %4 = vector.load %arg2[%c0, %c0_0, %c0_1, %c0_2, %c0_3] : memref<1x1x12x24x128xbf16, #tpu.memory_space<vmem>>, vector<1x1x12x24x128xbf16>
    %5 = vector.shape_cast %4 : vector<1x1x12x24x128xbf16> to vector<12x24x128xbf16>
    %c0_4 = arith.constant 0 : index
    %c0_5 = arith.constant 0 : index
    %6 = vector.load %arg5[%c0_4, %c0_5] : memref<1x128xf32, #tpu.memory_space<vmem>>, vector<1x128xf32>
    %7 = arith.extf %5 : vector<12x24x128xbf16> to vector<12x24x128xf32>
    %8 = vector.shape_cast %6 : vector<1x128xf32> to vector<1x1x128xf32>
    %9 = vector.broadcast %8 : vector<1x1x128xf32> to vector<12x24x128xf32>
    %10 = arith.mulf %7, %9 : vector<12x24x128xf32>
    %c0_6 = arith.constant 0 : index
    %c0_7 = arith.constant 0 : index
    %11 = vector.load %arg6[%c0_6, %c0_7] : memref<1x128xf32, #tpu.memory_space<vmem>>, vector<1x128xf32>
    %12 = vector.shape_cast %11 : vector<1x128xf32> to vector<1x1x128xf32>
    %13 = vector.broadcast %12 : vector<1x1x128xf32> to vector<12x24x128xf32>
    %14 = arith.addf %10, %13 : vector<12x24x128xf32>
    %cst = arith.constant 0.000000e+00 : f32
    %15 = vector.broadcast %cst : f32 to vector<12x24x128xf32>
    %16 = arith.maximumf %14, %15 : vector<12x24x128xf32>
    %c2_i32 = arith.constant 2 : i32
    %17 = arith.subi %0, %c2_i32 : i32
    %18 = tpu.iota {dimensions = array<i32: 0>} : vector<12x1x1xi32>
    %19 = vector.broadcast %17 : i32 to vector<12x1x1xi32>
    %20 = arith.addi %18, %19 : vector<12x1x1xi32>
    %c0_i32 = arith.constant 0 : i32
    %21 = vector.broadcast %c0_i32 : i32 to vector<12x1x1xi32>
    %22 = arith.cmpi sge, %20, %21 : vector<12x1x1xi32>
    %c16_i32_8 = arith.constant 16 : i32
    %23 = vector.broadcast %c16_i32_8 : i32 to vector<12x1x1xi32>
    %24 = arith.cmpi slt, %20, %23 : vector<12x1x1xi32>
    %25 = arith.andi %22, %24 : vector<12x1x1xi1>
    %26 = vector.broadcast %25 : vector<12x1x1xi1> to vector<12x24x1xi1>
    %27 = vector.broadcast %3 : vector<1x24x1xi1> to vector<12x24x1xi1>
    %28 = arith.andi %26, %27 : vector<12x24x1xi1>
    %cst_9 = arith.constant 0.000000e+00 : f32
    %29 = vector.shape_cast %28 : vector<12x24x1xi1> to vector<12x24x1xi1>
    %30 = vector.broadcast %29 : vector<12x24x1xi1> to vector<12x24x128xi1>
    %31 = vector.broadcast %cst_9 : f32 to vector<12x24x128xf32>
    %32 = arith.select %30, %16, %31 : vector<12x24x128xi1>, vector<12x24x128xf32>
    %33 = arith.truncf %32 : vector<12x24x128xf32> to vector<12x24x128xbf16>
    %c0_10 = arith.constant 0 : index
    %c0_11 = arith.constant 0 : index
    %c0_12 = arith.constant 0 : index
    %34 = vector.load %arg13[%c0_10, %c0_11, %c0_12] : memref<12x24x128xbf16, #tpu.memory_space<vmem>>, vector<12x24x128xbf16>
    tpu.vector_store %arg13[%c0_10, %c0_11, %c0_12], %33 {strides = array<i32>} : memref<12x24x128xbf16, #tpu.memory_space<vmem>>, vector<12x24x128xbf16>,
    %cst_13 = arith.constant 0.000000e+00 : f32
    %35 = vector.broadcast %cst_13 : f32 to vector<240x128xf32>
    %cst_14 = arith.constant 0.000000e+00 : f32
    %36 = vector.broadcast %cst_14 : f32 to vector<240x128xf32>
    %c0_15 = arith.constant 0 : index
    %c0_16 = arith.constant 0 : index
    %c0_17 = arith.constant 0 : index
    %37 = vector.load %arg13[%c0_15, %c0_16, %c0_17] : memref<12x24x128xbf16, #tpu.memory_space<vmem>>, vector<10x24x128xbf16>
    %38 = vector.shape_cast %37 : vector<10x24x128xbf16> to vector<240x128xbf16>
    %c0_18 = arith.constant 0 : index
    %c0_19 = arith.constant 0 : index
    %c0_20 = arith.constant 0 : index
    %c0_21 = arith.constant 0 : index
    %39 = vector.load %arg7[%c0_18, %c0_19, %c0_20, %c0_21] : memref<3x3x128x128xbf16, #tpu.memory_space<vmem>>, vector<1x1x128x128xbf16>
    %40 = vector.shape_cast %39 : vector<1x1x128x128xbf16> to vector<128x128xbf16>
    %cst_22 = arith.constant dense<0.000000e+00> : vector<240x128xf32>
    %41 = tpu.matmul %38, %40, %cst_22 {dimension_numbers = #tpu.dot_dimension_numbers<[1], [0], [0], [1], [0, 0, 1, 1], [], []>} : vector<240x128xbf16>, vector<128x128xbf16>, vector<240x128xf32> -> vector<240x128xf32>
    %42 = arith.addf %36, %41 : vector<240x128xf32>
    %c1 = arith.constant 1 : index
    %c0_23 = arith.constant 0 : index
    %c0_24 = arith.constant 0 : index
    %43 = vector.load %arg13[%c1, %c0_23, %c0_24] : memref<12x24x128xbf16, #tpu.memory_space<vmem>>, vector<10x24x128xbf16>
    %44 = vector.shape_cast %43 : vector<10x24x128xbf16> to vector<240x128xbf16>
    %c1_25 = arith.constant 1 : index
    %c0_26 = arith.constant 0 : index
    %c0_27 = arith.constant 0 : index
    %c0_28 = arith.constant 0 : index
    %45 = vector.load %arg7[%c1_25, %c0_26, %c0_27, %c0_28] : memref<3x3x128x128xbf16, #tpu.memory_space<vmem>>, vector<1x1x128x128xbf16>
    %46 = vector.shape_cast %45 : vector<1x1x128x128xbf16> to vector<128x128xbf16>
    %cst_29 = arith.constant dense<0.000000e+00> : vector<240x128xf32>
    %47 = tpu.matmul %44, %46, %cst_29 {dimension_numbers = #tpu.dot_dimension_numbers<[1], [0], [0], [1], [0, 0, 1, 1], [], []>} : vector<240x128xbf16>, vector<128x128xbf16>, vector<240x128xf32> -> vector<240x128xf32>
    %48 = arith.addf %42, %47 : vector<240x128xf32>
    %c2 = arith.constant 2 : index
    %c0_30 = arith.constant 0 : index
    %c0_31 = arith.constant 0 : index
    %49 = vector.load %arg13[%c2, %c0_30, %c0_31] : memref<12x24x128xbf16, #tpu.memory_space<vmem>>, vector<10x24x128xbf16>
    %50 = vector.shape_cast %49 : vector<10x24x128xbf16> to vector<240x128xbf16>
    %c2_32 = arith.constant 2 : index
    %c0_33 = arith.constant 0 : index
    %c0_34 = arith.constant 0 : index
    %c0_35 = arith.constant 0 : index
    %51 = vector.load %arg7[%c2_32, %c0_33, %c0_34, %c0_35] : memref<3x3x128x128xbf16, #tpu.memory_space<vmem>>, vector<1x1x128x128xbf16>
    %52 = vector.shape_cast %51 : vector<1x1x128x128xbf16> to vector<128x128xbf16>
    %cst_36 = arith.constant dense<0.000000e+00> : vector<240x128xf32>
    %53 = tpu.matmul %50, %52, %cst_36 {dimension_numbers = #tpu.dot_dimension_numbers<[1], [0], [0], [1], [0, 0, 1, 1], [], []>} : vector<240x128xbf16>, vector<128x128xbf16>, vector<240x128xf32> -> vector<240x128xf32>
    %54 = arith.addf %48, %53 : vector<240x128xf32>
    %c1_i32 = arith.constant 1 : i32
    %55 = tpu.dynamic_rotate %54 by %c1_i32 dim 0 : vector<240x128xf32>, i32 -> vector<240x128xf32>
    %56 = arith.addf %35, %55 : vector<240x128xf32>
    %cst_37 = arith.constant 0.000000e+00 : f32
    %57 = vector.broadcast %cst_37 : f32 to vector<240x128xf32>
    %c0_38 = arith.constant 0 : index
    %c0_39 = arith.constant 0 : index
    %c0_40 = arith.constant 0 : index
    %58 = vector.load %arg13[%c0_38, %c0_39, %c0_40] : memref<12x24x128xbf16, #tpu.memory_space<vmem>>, vector<10x24x128xbf16>
    %59 = vector.shape_cast %58 : vector<10x24x128xbf16> to vector<240x128xbf16>
    %c0_41 = arith.constant 0 : index
    %c1_42 = arith.constant 1 : index
    %c0_43 = arith.constant 0 : index
    %c0_44 = arith.constant 0 : index
    %60 = vector.load %arg7[%c0_41, %c1_42, %c0_43, %c0_44] : memref<3x3x128x128xbf16, #tpu.memory_space<vmem>>, vector<1x1x128x128xbf16>
    %61 = vector.shape_cast %60 : vector<1x1x128x128xbf16> to vector<128x128xbf16>
    %cst_45 = arith.constant dense<0.000000e+00> : vector<240x128xf32>
    %62 = tpu.matmul %59, %61, %cst_45 {dimension_numbers = #tpu.dot_dimension_numbers<[1], [0], [0], [1], [0, 0, 1, 1], [], []>} : vector<240x128xbf16>, vector<128x128xbf16>, vector<240x128xf32> -> vector<240x128xf32>
    %63 = arith.addf %57, %62 : vector<240x128xf32>
    %c1_46 = arith.constant 1 : index
    %c0_47 = arith.constant 0 : index
    %c0_48 = arith.constant 0 : index
    %64 = vector.load %arg13[%c1_46, %c0_47, %c0_48] : memref<12x24x128xbf16, #tpu.memory_space<vmem>>, vector<10x24x128xbf16>
    %65 = vector.shape_cast %64 : vector<10x24x128xbf16> to vector<240x128xbf16>
    %c1_49 = arith.constant 1 : index
    %c1_50 = arith.constant 1 : index
    %c0_51 = arith.constant 0 : index
    %c0_52 = arith.constant 0 : index
    %66 = vector.load %arg7[%c1_49, %c1_50, %c0_51, %c0_52] : memref<3x3x128x128xbf16, #tpu.memory_space<vmem>>, vector<1x1x128x128xbf16>
    %67 = vector.shape_cast %66 : vector<1x1x128x128xbf16> to vector<128x128xbf16>
    %cst_53 = arith.constant dense<0.000000e+00> : vector<240x128xf32>
    %68 = tpu.matmul %65, %67, %cst_53 {dimension_numbers = #tpu.dot_dimension_numbers<[1], [0], [0], [1], [0, 0, 1, 1], [], []>} : vector<240x128xbf16>, vector<128x128xbf16>, vector<240x128xf32> -> vector<240x128xf32>
    %69 = arith.addf %63, %68 : vector<240x128xf32>
    %c2_54 = arith.constant 2 : index
    %c0_55 = arith.constant 0 : index
    %c0_56 = arith.constant 0 : index
    %70 = vector.load %arg13[%c2_54, %c0_55, %c0_56] : memref<12x24x128xbf16, #tpu.memory_space<vmem>>, vector<10x24x128xbf16>
    %71 = vector.shape_cast %70 : vector<10x24x128xbf16> to vector<240x128xbf16>
    %c2_57 = arith.constant 2 : index
    %c1_58 = arith.constant 1 : index
    %c0_59 = arith.constant 0 : index
    %c0_60 = arith.constant 0 : index
    %72 = vector.load %arg7[%c2_57, %c1_58, %c0_59, %c0_60] : memref<3x3x128x128xbf16, #tpu.memory_space<vmem>>, vector<1x1x128x128xbf16>
    %73 = vector.shape_cast %72 : vector<1x1x128x128xbf16> to vector<128x128xbf16>
    %cst_61 = arith.constant dense<0.000000e+00> : vector<240x128xf32>
    %74 = tpu.matmul %71, %73, %cst_61 {dimension_numbers = #tpu.dot_dimension_numbers<[1], [0], [0], [1], [0, 0, 1, 1], [], []>} : vector<240x128xbf16>, vector<128x128xbf16>, vector<240x128xf32> -> vector<240x128xf32>
    %75 = arith.addf %69, %74 : vector<240x128xf32>
    %76 = arith.addf %56, %75 : vector<240x128xf32>
    %cst_62 = arith.constant 0.000000e+00 : f32
    %77 = vector.broadcast %cst_62 : f32 to vector<240x128xf32>
    %c0_63 = arith.constant 0 : index
    %c0_64 = arith.constant 0 : index
    %c0_65 = arith.constant 0 : index
    %78 = vector.load %arg13[%c0_63, %c0_64, %c0_65] : memref<12x24x128xbf16, #tpu.memory_space<vmem>>, vector<10x24x128xbf16>
    %79 = vector.shape_cast %78 : vector<10x24x128xbf16> to vector<240x128xbf16>
    %c0_66 = arith.constant 0 : index
    %c2_67 = arith.constant 2 : index
    %c0_68 = arith.constant 0 : index
    %c0_69 = arith.constant 0 : index
    %80 = vector.load %arg7[%c0_66, %c2_67, %c0_68, %c0_69] : memref<3x3x128x128xbf16, #tpu.memory_space<vmem>>, vector<1x1x128x128xbf16>
    %81 = vector.shape_cast %80 : vector<1x1x128x128xbf16> to vector<128x128xbf16>
    %cst_70 = arith.constant dense<0.000000e+00> : vector<240x128xf32>
    %82 = tpu.matmul %79, %81, %cst_70 {dimension_numbers = #tpu.dot_dimension_numbers<[1], [0], [0], [1], [0, 0, 1, 1], [], []>} : vector<240x128xbf16>, vector<128x128xbf16>, vector<240x128xf32> -> vector<240x128xf32>
    %83 = arith.addf %77, %82 : vector<240x128xf32>
    %c1_71 = arith.constant 1 : index
    %c0_72 = arith.constant 0 : index
    %c0_73 = arith.constant 0 : index
    %84 = vector.load %arg13[%c1_71, %c0_72, %c0_73] : memref<12x24x128xbf16, #tpu.memory_space<vmem>>, vector<10x24x128xbf16>
    %85 = vector.shape_cast %84 : vector<10x24x128xbf16> to vector<240x128xbf16>
    %c1_74 = arith.constant 1 : index
    %c2_75 = arith.constant 2 : index
    %c0_76 = arith.constant 0 : index
    %c0_77 = arith.constant 0 : index
    %86 = vector.load %arg7[%c1_74, %c2_75, %c0_76, %c0_77] : memref<3x3x128x128xbf16, #tpu.memory_space<vmem>>, vector<1x1x128x128xbf16>
    %87 = vector.shape_cast %86 : vector<1x1x128x128xbf16> to vector<128x128xbf16>
    %cst_78 = arith.constant dense<0.000000e+00> : vector<240x128xf32>
    %88 = tpu.matmul %85, %87, %cst_78 {dimension_numbers = #tpu.dot_dimension_numbers<[1], [0], [0], [1], [0, 0, 1, 1], [], []>} : vector<240x128xbf16>, vector<128x128xbf16>, vector<240x128xf32> -> vector<240x128xf32>
    %89 = arith.addf %83, %88 : vector<240x128xf32>
    %c2_79 = arith.constant 2 : index
    %c0_80 = arith.constant 0 : index
    %c0_81 = arith.constant 0 : index
    %90 = vector.load %arg13[%c2_79, %c0_80, %c0_81] : memref<12x24x128xbf16, #tpu.memory_space<vmem>>, vector<10x24x128xbf16>
    %91 = vector.shape_cast %90 : vector<10x24x128xbf16> to vector<240x128xbf16>
    %c2_82 = arith.constant 2 : index
    %c2_83 = arith.constant 2 : index
    %c0_84 = arith.constant 0 : index
    %c0_85 = arith.constant 0 : index
    %92 = vector.load %arg7[%c2_82, %c2_83, %c0_84, %c0_85] : memref<3x3x128x128xbf16, #tpu.memory_space<vmem>>, vector<1x1x128x128xbf16>
    %93 = vector.shape_cast %92 : vector<1x1x128x128xbf16> to vector<128x128xbf16>
    %cst_86 = arith.constant dense<0.000000e+00> : vector<240x128xf32>
    %94 = tpu.matmul %91, %93, %cst_86 {dimension_numbers = #tpu.dot_dimension_numbers<[1], [0], [0], [1], [0, 0, 1, 1], [], []>} : vector<240x128xbf16>, vector<128x128xbf16>, vector<240x128xf32> -> vector<240x128xf32>
    %95 = arith.addf %89, %94 : vector<240x128xf32>
    %c239_i32 = arith.constant 239 : i32
    %96 = tpu.dynamic_rotate %95 by %c239_i32 dim 0 : vector<240x128xf32>, i32 -> vector<240x128xf32>
    %97 = arith.addf %76, %96 : vector<240x128xf32>
    %98 = vector.shape_cast %97 : vector<240x128xf32> to vector<10x24x128xf32>
    %c0_87 = arith.constant 0 : index
    %c0_88 = arith.constant 0 : index
    %c0_89 = arith.constant 0 : index
    %c0_90 = arith.constant 0 : index
    %c0_91 = arith.constant 0 : index
    %99 = vector.load %arg3[%c0_87, %c0_88, %c0_89, %c0_90, %c0_91] : memref<1x1x10x24x128xbf16, #tpu.memory_space<vmem>>, vector<1x1x10x24x128xbf16>
    %100 = vector.shape_cast %99 : vector<1x1x10x24x128xbf16> to vector<10x24x128xbf16>
    %101 = arith.extf %100 : vector<10x24x128xbf16> to vector<10x24x128xf32>
    %102 = arith.addf %98, %101 : vector<10x24x128xf32>
    %c0_92 = arith.constant 0 : index
    %c0_93 = arith.constant 0 : index
    %c0_94 = arith.constant 0 : index
    %103 = vector.load %arg4[%c0_92, %c0_93, %c0_94] : memref<1x1x128xf32, #tpu.memory_space<vmem>>, vector<1x1x128xf32>
    %104 = vector.shape_cast %103 : vector<1x1x128xf32> to vector<1x128xf32>
    %105 = vector.shape_cast %104 : vector<1x128xf32> to vector<1x1x128xf32>
    %106 = vector.broadcast %105 : vector<1x1x128xf32> to vector<10x24x128xf32>
    %107 = arith.addf %102, %106 : vector<10x24x128xf32>
    %c0_95 = arith.constant 0 : index
    %c0_96 = arith.constant 0 : index
    %108 = vector.load %arg8[%c0_95, %c0_96] : memref<1x128xf32, #tpu.memory_space<vmem>>, vector<1x128xf32>
    %109 = vector.shape_cast %108 : vector<1x128xf32> to vector<1x1x128xf32>
    %110 = vector.broadcast %109 : vector<1x1x128xf32> to vector<10x24x128xf32>
    %111 = arith.mulf %107, %110 : vector<10x24x128xf32>
    %c0_97 = arith.constant 0 : index
    %c0_98 = arith.constant 0 : index
    %112 = vector.load %arg9[%c0_97, %c0_98] : memref<1x128xf32, #tpu.memory_space<vmem>>, vector<1x128xf32>
    %113 = vector.shape_cast %112 : vector<1x128xf32> to vector<1x1x128xf32>
    %114 = vector.broadcast %113 : vector<1x1x128xf32> to vector<10x24x128xf32>
    %115 = arith.addf %111, %114 : vector<10x24x128xf32>
    %cst_99 = arith.constant 0.000000e+00 : f32
    %116 = vector.broadcast %cst_99 : f32 to vector<10x24x128xf32>
    %117 = arith.maximumf %115, %116 : vector<10x24x128xf32>
    %c1_i32_100 = arith.constant 1 : i32
    %118 = arith.subi %0, %c1_i32_100 : i32
    %119 = tpu.iota {dimensions = array<i32: 0>} : vector<10x1x1xi32>
    %120 = vector.broadcast %118 : i32 to vector<10x1x1xi32>
    %121 = arith.addi %119, %120 : vector<10x1x1xi32>
    %c0_i32_101 = arith.constant 0 : i32
    %122 = vector.broadcast %c0_i32_101 : i32 to vector<10x1x1xi32>
    %123 = arith.cmpi sge, %121, %122 : vector<10x1x1xi32>
    %c16_i32_102 = arith.constant 16 : i32
    %124 = vector.broadcast %c16_i32_102 : i32 to vector<10x1x1xi32>
    %125 = arith.cmpi slt, %121, %124 : vector<10x1x1xi32>
    %126 = arith.andi %123, %125 : vector<10x1x1xi1>
    %127 = vector.broadcast %126 : vector<10x1x1xi1> to vector<10x24x1xi1>
    %128 = vector.broadcast %3 : vector<1x24x1xi1> to vector<10x24x1xi1>
    %129 = arith.andi %127, %128 : vector<10x24x1xi1>
    %cst_103 = arith.constant 0.000000e+00 : f32
    %130 = vector.shape_cast %129 : vector<10x24x1xi1> to vector<10x24x1xi1>
    %131 = vector.broadcast %130 : vector<10x24x1xi1> to vector<10x24x128xi1>
    %132 = vector.broadcast %cst_103 : f32 to vector<10x24x128xf32>
    %133 = arith.select %131, %117, %132 : vector<10x24x128xi1>, vector<10x24x128xf32>
    %134 = arith.truncf %133 : vector<10x24x128xf32> to vector<10x24x128xbf16>
    %c0_104 = arith.constant 0 : index
    %c0_105 = arith.constant 0 : index
    %c0_106 = arith.constant 0 : index
    %135 = vector.load %arg13[%c0_104, %c0_105, %c0_106] : memref<12x24x128xbf16, #tpu.memory_space<vmem>>, vector<10x24x128xbf16>
    tpu.vector_store %arg13[%c0_104, %c0_105, %c0_106], %134 {strides = array<i32>} : memref<12x24x128xbf16, #tpu.memory_space<vmem>>, vector<10x24x128xbf16>,
    %cst_107 = arith.constant 0.000000e+00 : f32
    %136 = vector.broadcast %cst_107 : f32 to vector<192x128xf32>
    %cst_108 = arith.constant 0.000000e+00 : f32
    %137 = vector.broadcast %cst_108 : f32 to vector<192x128xf32>
    %c0_109 = arith.constant 0 : index
    %c0_110 = arith.constant 0 : index
    %c0_111 = arith.constant 0 : index
    %138 = vector.load %arg13[%c0_109, %c0_110, %c0_111] : memref<12x24x128xbf16, #tpu.memory_space<vmem>>, vector<8x24x128xbf16>
    %139 = vector.shape_cast %138 : vector<8x24x128xbf16> to vector<192x128xbf16>
    %c0_112 = arith.constant 0 : index
    %c0_113 = arith.constant 0 : index
    %c0_114 = arith.constant 0 : index
    %c0_115 = arith.constant 0 : index
    %140 = vector.load %arg10[%c0_112, %c0_113, %c0_114, %c0_115] : memref<3x3x128x128xbf16, #tpu.memory_space<vmem>>, vector<1x1x128x128xbf16>
    %141 = vector.shape_cast %140 : vector<1x1x128x128xbf16> to vector<128x128xbf16>
    %cst_116 = arith.constant dense<0.000000e+00> : vector<192x128xf32>
    %142 = tpu.matmul %139, %141, %cst_116 {dimension_numbers = #tpu.dot_dimension_numbers<[1], [0], [0], [1], [0, 0, 1, 1], [], []>} : vector<192x128xbf16>, vector<128x128xbf16>, vector<192x128xf32> -> vector<192x128xf32>
    %143 = arith.addf %137, %142 : vector<192x128xf32>
    %c1_117 = arith.constant 1 : index
    %c0_118 = arith.constant 0 : index
    %c0_119 = arith.constant 0 : index
    %144 = vector.load %arg13[%c1_117, %c0_118, %c0_119] : memref<12x24x128xbf16, #tpu.memory_space<vmem>>, vector<8x24x128xbf16>
    %145 = vector.shape_cast %144 : vector<8x24x128xbf16> to vector<192x128xbf16>
    %c1_120 = arith.constant 1 : index
    %c0_121 = arith.constant 0 : index
    %c0_122 = arith.constant 0 : index
    %c0_123 = arith.constant 0 : index
    %146 = vector.load %arg10[%c1_120, %c0_121, %c0_122, %c0_123] : memref<3x3x128x128xbf16, #tpu.memory_space<vmem>>, vector<1x1x128x128xbf16>
    %147 = vector.shape_cast %146 : vector<1x1x128x128xbf16> to vector<128x128xbf16>
    %cst_124 = arith.constant dense<0.000000e+00> : vector<192x128xf32>
    %148 = tpu.matmul %145, %147, %cst_124 {dimension_numbers = #tpu.dot_dimension_numbers<[1], [0], [0], [1], [0, 0, 1, 1], [], []>} : vector<192x128xbf16>, vector<128x128xbf16>, vector<192x128xf32> -> vector<192x128xf32>
    %149 = arith.addf %143, %148 : vector<192x128xf32>
    %c2_125 = arith.constant 2 : index
    %c0_126 = arith.constant 0 : index
    %c0_127 = arith.constant 0 : index
    %150 = vector.load %arg13[%c2_125, %c0_126, %c0_127] : memref<12x24x128xbf16, #tpu.memory_space<vmem>>, vector<8x24x128xbf16>
    %151 = vector.shape_cast %150 : vector<8x24x128xbf16> to vector<192x128xbf16>
    %c2_128 = arith.constant 2 : index
    %c0_129 = arith.constant 0 : index
    %c0_130 = arith.constant 0 : index
    %c0_131 = arith.constant 0 : index
    %152 = vector.load %arg10[%c2_128, %c0_129, %c0_130, %c0_131] : memref<3x3x128x128xbf16, #tpu.memory_space<vmem>>, vector<1x1x128x128xbf16>
    %153 = vector.shape_cast %152 : vector<1x1x128x128xbf16> to vector<128x128xbf16>
    %cst_132 = arith.constant dense<0.000000e+00> : vector<192x128xf32>
    %154 = tpu.matmul %151, %153, %cst_132 {dimension_numbers = #tpu.dot_dimension_numbers<[1], [0], [0], [1], [0, 0, 1, 1], [], []>} : vector<192x128xbf16>, vector<128x128xbf16>, vector<192x128xf32> -> vector<192x128xf32>
    %155 = arith.addf %149, %154 : vector<192x128xf32>
    %c1_i32_133 = arith.constant 1 : i32
    %156 = tpu.dynamic_rotate %155 by %c1_i32_133 dim 0 : vector<192x128xf32>, i32 -> vector<192x128xf32>
    %157 = arith.addf %136, %156 : vector<192x128xf32>
    %cst_134 = arith.constant 0.000000e+00 : f32
    %158 = vector.broadcast %cst_134 : f32 to vector<192x128xf32>
    %c0_135 = arith.constant 0 : index
    %c0_136 = arith.constant 0 : index
    %c0_137 = arith.constant 0 : index
    %159 = vector.load %arg13[%c0_135, %c0_136, %c0_137] : memref<12x24x128xbf16, #tpu.memory_space<vmem>>, vector<8x24x128xbf16>
    %160 = vector.shape_cast %159 : vector<8x24x128xbf16> to vector<192x128xbf16>
    %c0_138 = arith.constant 0 : index
    %c1_139 = arith.constant 1 : index
    %c0_140 = arith.constant 0 : index
    %c0_141 = arith.constant 0 : index
    %161 = vector.load %arg10[%c0_138, %c1_139, %c0_140, %c0_141] : memref<3x3x128x128xbf16, #tpu.memory_space<vmem>>, vector<1x1x128x128xbf16>
    %162 = vector.shape_cast %161 : vector<1x1x128x128xbf16> to vector<128x128xbf16>
    %cst_142 = arith.constant dense<0.000000e+00> : vector<192x128xf32>
    %163 = tpu.matmul %160, %162, %cst_142 {dimension_numbers = #tpu.dot_dimension_numbers<[1], [0], [0], [1], [0, 0, 1, 1], [], []>} : vector<192x128xbf16>, vector<128x128xbf16>, vector<192x128xf32> -> vector<192x128xf32>
    %164 = arith.addf %158, %163 : vector<192x128xf32>
    %c1_143 = arith.constant 1 : index
    %c0_144 = arith.constant 0 : index
    %c0_145 = arith.constant 0 : index
    %165 = vector.load %arg13[%c1_143, %c0_144, %c0_145] : memref<12x24x128xbf16, #tpu.memory_space<vmem>>, vector<8x24x128xbf16>
    %166 = vector.shape_cast %165 : vector<8x24x128xbf16> to vector<192x128xbf16>
    %c1_146 = arith.constant 1 : index
    %c1_147 = arith.constant 1 : index
    %c0_148 = arith.constant 0 : index
    %c0_149 = arith.constant 0 : index
    %167 = vector.load %arg10[%c1_146, %c1_147, %c0_148, %c0_149] : memref<3x3x128x128xbf16, #tpu.memory_space<vmem>>, vector<1x1x128x128xbf16>
    %168 = vector.shape_cast %167 : vector<1x1x128x128xbf16> to vector<128x128xbf16>
    %cst_150 = arith.constant dense<0.000000e+00> : vector<192x128xf32>
    %169 = tpu.matmul %166, %168, %cst_150 {dimension_numbers = #tpu.dot_dimension_numbers<[1], [0], [0], [1], [0, 0, 1, 1], [], []>} : vector<192x128xbf16>, vector<128x128xbf16>, vector<192x128xf32> -> vector<192x128xf32>
    %170 = arith.addf %164, %169 : vector<192x128xf32>
    %c2_151 = arith.constant 2 : index
    %c0_152 = arith.constant 0 : index
    %c0_153 = arith.constant 0 : index
    %171 = vector.load %arg13[%c2_151, %c0_152, %c0_153] : memref<12x24x128xbf16, #tpu.memory_space<vmem>>, vector<8x24x128xbf16>
    %172 = vector.shape_cast %171 : vector<8x24x128xbf16> to vector<192x128xbf16>
    %c2_154 = arith.constant 2 : index
    %c1_155 = arith.constant 1 : index
    %c0_156 = arith.constant 0 : index
    %c0_157 = arith.constant 0 : index
    %173 = vector.load %arg10[%c2_154, %c1_155, %c0_156, %c0_157] : memref<3x3x128x128xbf16, #tpu.memory_space<vmem>>, vector<1x1x128x128xbf16>
    %174 = vector.shape_cast %173 : vector<1x1x128x128xbf16> to vector<128x128xbf16>
    %cst_158 = arith.constant dense<0.000000e+00> : vector<192x128xf32>
    %175 = tpu.matmul %172, %174, %cst_158 {dimension_numbers = #tpu.dot_dimension_numbers<[1], [0], [0], [1], [0, 0, 1, 1], [], []>} : vector<192x128xbf16>, vector<128x128xbf16>, vector<192x128xf32> -> vector<192x128xf32>
    %176 = arith.addf %170, %175 : vector<192x128xf32>
    %177 = arith.addf %157, %176 : vector<192x128xf32>
    %cst_159 = arith.constant 0.000000e+00 : f32
    %178 = vector.broadcast %cst_159 : f32 to vector<192x128xf32>
    %c0_160 = arith.constant 0 : index
    %c0_161 = arith.constant 0 : index
    %c0_162 = arith.constant 0 : index
    %179 = vector.load %arg13[%c0_160, %c0_161, %c0_162] : memref<12x24x128xbf16, #tpu.memory_space<vmem>>, vector<8x24x128xbf16>
    %180 = vector.shape_cast %179 : vector<8x24x128xbf16> to vector<192x128xbf16>
    %c0_163 = arith.constant 0 : index
    %c2_164 = arith.constant 2 : index
    %c0_165 = arith.constant 0 : index
    %c0_166 = arith.constant 0 : index
    %181 = vector.load %arg10[%c0_163, %c2_164, %c0_165, %c0_166] : memref<3x3x128x128xbf16, #tpu.memory_space<vmem>>, vector<1x1x128x128xbf16>
    %182 = vector.shape_cast %181 : vector<1x1x128x128xbf16> to vector<128x128xbf16>
    %cst_167 = arith.constant dense<0.000000e+00> : vector<192x128xf32>
    %183 = tpu.matmul %180, %182, %cst_167 {dimension_numbers = #tpu.dot_dimension_numbers<[1], [0], [0], [1], [0, 0, 1, 1], [], []>} : vector<192x128xbf16>, vector<128x128xbf16>, vector<192x128xf32> -> vector<192x128xf32>
    %184 = arith.addf %178, %183 : vector<192x128xf32>
    %c1_168 = arith.constant 1 : index
    %c0_169 = arith.constant 0 : index
    %c0_170 = arith.constant 0 : index
    %185 = vector.load %arg13[%c1_168, %c0_169, %c0_170] : memref<12x24x128xbf16, #tpu.memory_space<vmem>>, vector<8x24x128xbf16>
    %186 = vector.shape_cast %185 : vector<8x24x128xbf16> to vector<192x128xbf16>
    %c1_171 = arith.constant 1 : index
    %c2_172 = arith.constant 2 : index
    %c0_173 = arith.constant 0 : index
    %c0_174 = arith.constant 0 : index
    %187 = vector.load %arg10[%c1_171, %c2_172, %c0_173, %c0_174] : memref<3x3x128x128xbf16, #tpu.memory_space<vmem>>, vector<1x1x128x128xbf16>
    %188 = vector.shape_cast %187 : vector<1x1x128x128xbf16> to vector<128x128xbf16>
    %cst_175 = arith.constant dense<0.000000e+00> : vector<192x128xf32>
    %189 = tpu.matmul %186, %188, %cst_175 {dimension_numbers = #tpu.dot_dimension_numbers<[1], [0], [0], [1], [0, 0, 1, 1], [], []>} : vector<192x128xbf16>, vector<128x128xbf16>, vector<192x128xf32> -> vector<192x128xf32>
    %190 = arith.addf %184, %189 : vector<192x128xf32>
    %c2_176 = arith.constant 2 : index
    %c0_177 = arith.constant 0 : index
    %c0_178 = arith.constant 0 : index
    %191 = vector.load %arg13[%c2_176, %c0_177, %c0_178] : memref<12x24x128xbf16, #tpu.memory_space<vmem>>, vector<8x24x128xbf16>
    %192 = vector.shape_cast %191 : vector<8x24x128xbf16> to vector<192x128xbf16>
    %c2_179 = arith.constant 2 : index
    %c2_180 = arith.constant 2 : index
    %c0_181 = arith.constant 0 : index
    %c0_182 = arith.constant 0 : index
    %193 = vector.load %arg10[%c2_179, %c2_180, %c0_181, %c0_182] : memref<3x3x128x128xbf16, #tpu.memory_space<vmem>>, vector<1x1x128x128xbf16>
    %194 = vector.shape_cast %193 : vector<1x1x128x128xbf16> to vector<128x128xbf16>
    %cst_183 = arith.constant dense<0.000000e+00> : vector<192x128xf32>
    %195 = tpu.matmul %192, %194, %cst_183 {dimension_numbers = #tpu.dot_dimension_numbers<[1], [0], [0], [1], [0, 0, 1, 1], [], []>} : vector<192x128xbf16>, vector<128x128xbf16>, vector<192x128xf32> -> vector<192x128xf32>
    %196 = arith.addf %190, %195 : vector<192x128xf32>
    %c191_i32 = arith.constant 191 : i32
    %197 = tpu.dynamic_rotate %196 by %c191_i32 dim 0 : vector<192x128xf32>, i32 -> vector<192x128xf32>
    %198 = arith.addf %177, %197 : vector<192x128xf32>
    %c0_184 = arith.constant 0 : index
    %c0_185 = arith.constant 0 : index
    %199 = vector.load %arg11[%c0_184, %c0_185] : memref<1x128xf32, #tpu.memory_space<vmem>>, vector<1x128xf32>
    %200 = vector.broadcast %199 : vector<1x128xf32> to vector<192x128xf32>
    %201 = arith.addf %198, %200 : vector<192x128xf32>
    %202 = vector.shape_cast %201 : vector<192x128xf32> to vector<8x24x128xf32>
    %c0_186 = arith.constant 0 : index
    %c0_187 = arith.constant 0 : index
    %c0_188 = arith.constant 0 : index
    %c0_189 = arith.constant 0 : index
    %203 = vector.load %arg12[%c0_186, %c0_187, %c0_188, %c0_189] : memref<1x8x24x128xf32, #tpu.memory_space<vmem>>, vector<1x8x24x128xf32>
    %204 = vector.shape_cast %203 : vector<1x8x24x128xf32> to vector<8x24x128xf32>
    %205 = vector.shape_cast %202 : vector<8x24x128xf32> to vector<1x8x24x128xf32>
    tpu.vector_store %arg12[%c0_186, %c0_187, %c0_188, %c0_189], %205 {strides = array<i32>} : memref<1x8x24x128xf32, #tpu.memory_space<vmem>>, vector<1x8x24x128xf32>,
    return
  }
  func.func @transform_0(%arg0: i32, %arg1: i32) -> (i32, i32, i32, i32, i32) {
    %c0_i32 = arith.constant 0 : i32
    %c0_i32_0 = arith.constant 0 : i32
    %c0_i32_1 = arith.constant 0 : i32
    %c0_i32_2 = arith.constant 0 : i32
    return %arg0, %arg1, %c0_i32, %c0_i32_0, %c0_i32_1 : i32, i32, i32, i32, i32
  }
  func.func @transform_1(%arg0: i32, %arg1: i32) -> (i32, i32, i32, i32, i32) {
    %c0_i32 = arith.constant 0 : i32
    %c0_i32_0 = arith.constant 0 : i32
    %c0_i32_1 = arith.constant 0 : i32
    %c0_i32_2 = arith.constant 0 : i32
    return %arg0, %arg1, %c0_i32, %c0_i32_0, %c0_i32_1 : i32, i32, i32, i32, i32
  }
  func.func @transform_2(%arg0: i32, %arg1: i32) -> (i32, i32, i32) {
    %c0_i32 = arith.constant 0 : i32
    %c0_i32_0 = arith.constant 0 : i32
    %c0_i32_1 = arith.constant 0 : i32
    return %arg0, %c0_i32, %c0_i32_0 : i32, i32, i32
  }
  func.func @transform_3(%arg0: i32, %arg1: i32) -> (i32, i32) {
    %c0_i32 = arith.constant 0 : i32
    %c0_i32_0 = arith.constant 0 : i32
    %c0_i32_1 = arith.constant 0 : i32
    return %c0_i32, %c0_i32_0 : i32, i32
  }
  func.func @transform_4(%arg0: i32, %arg1: i32) -> (i32, i32) {
    %c0_i32 = arith.constant 0 : i32
    %c0_i32_0 = arith.constant 0 : i32
    %c0_i32_1 = arith.constant 0 : i32
    return %c0_i32, %c0_i32_0 : i32, i32
  }
  func.func @transform_5(%arg0: i32, %arg1: i32) -> (i32, i32, i32, i32) {
    %c0_i32 = arith.constant 0 : i32
    %c0_i32_0 = arith.constant 0 : i32
    %c0_i32_1 = arith.constant 0 : i32
    %c0_i32_2 = arith.constant 0 : i32
    %c0_i32_3 = arith.constant 0 : i32
    return %c0_i32, %c0_i32_0, %c0_i32_1, %c0_i32_2 : i32, i32, i32, i32
  }
  func.func @transform_6(%arg0: i32, %arg1: i32) -> (i32, i32) {
    %c0_i32 = arith.constant 0 : i32
    %c0_i32_0 = arith.constant 0 : i32
    %c0_i32_1 = arith.constant 0 : i32
    return %c0_i32, %c0_i32_0 : i32, i32
  }
  func.func @transform_7(%arg0: i32, %arg1: i32) -> (i32, i32) {
    %c0_i32 = arith.constant 0 : i32
    %c0_i32_0 = arith.constant 0 : i32
    %c0_i32_1 = arith.constant 0 : i32
    return %c0_i32, %c0_i32_0 : i32, i32
  }
  func.func @transform_8(%arg0: i32, %arg1: i32) -> (i32, i32, i32, i32) {
    %c0_i32 = arith.constant 0 : i32
    %c0_i32_0 = arith.constant 0 : i32
    %c0_i32_1 = arith.constant 0 : i32
    %c0_i32_2 = arith.constant 0 : i32
    %c0_i32_3 = arith.constant 0 : i32
    return %c0_i32, %c0_i32_0, %c0_i32_1, %c0_i32_2 : i32, i32, i32, i32
  }
  func.func @transform_9(%arg0: i32, %arg1: i32) -> (i32, i32) {
    %c0_i32 = arith.constant 0 : i32
    %c0_i32_0 = arith.constant 0 : i32
    %c0_i32_1 = arith.constant 0 : i32
    return %c0_i32, %c0_i32_0 : i32, i32
  }
  func.func @transform_10(%arg0: i32, %arg1: i32) -> (i32, i32, i32, i32) {
    %c0_i32 = arith.constant 0 : i32
    %c0_i32_0 = arith.constant 0 : i32
    %c0_i32_1 = arith.constant 0 : i32
    return %arg0, %arg1, %c0_i32, %c0_i32_0 : i32, i32, i32, i32
  }
}

</mosaic_0001>

<bundles_post_ra>
// kernel: convup_pallas.1
= control target key start
LH: loop header
LB: loop body
LE: loop exit
PB: predicated region body
PF: predicated region fallthrough
CT: control target
= control target key end

     0   :  { %s9676_s13 = smov 0   ;;  %s9678_s14 = smov 0   ;;  %s11783_s0 = inlined_call_operand.vmem [shape: bf16[2,2,12,24,128], index: 0, kind: input, shape index: {}]   ;;  %s11784_s1 = inlined_call_operand.vmem [shape: bf16[2,2,10,24,128], index: 1, kind: input, shape index: {}]   ;;  %s11785_s2 = inlined_call_operand.vmem [shape: f32[2,1,128], index: 2, kind: input, shape index: {}]   ;;  %s11786_s3 = inlined_call_operand.vmem [shape: f32[1,128], index: 3, kind: input, shape index: {}]   ;;  %s11787_s4 = inlined_call_operand.vmem [shape: f32[1,128], index: 4, kind: input, shape index: {}]   ;;  %s11788_s5 = inlined_call_operand.vmem [shape: bf16[3,3,128,128], index: 5, kind: input, shape index: {}]   ;;  %s11789_s6 = inlined_call_operand.vmem [shape: f32[1,128], index: 6, kind: input, shape index: {}]   ;;  %s11790_s7 = inlined_call_operand.vmem [shape: f32[1,128], index: 7, kind: input, shape index: {}]   ;;  %s11791_s8 = inlined_call_operand.vmem [shape: bf16[3,3,128,128], index: 8, kind: input, shape index: {}]   ;;  %s11792_s9 = inlined_call_operand.vmem [shape: f32[1,128], index: 9, kind: input, shape index: {}]   ;;  %s11793_s10 = inlined_call_operand.vmem [shape: f32[2,16,24,128], index: 10, kind: output, shape index: {}]  }
   0x1   :  { %s9680_s15 = smov 0   ;;  %s9682_s16 = smov 0  }
   0x2   :  { %s9684_s17 = smov 0  }
   0x3 LB: > { %s29_s18 = sadd.s32 1, %s9608_s15  ;;  %s32_s19 = sadd.s32 1, %s9612_s16  ;;  %s9616_s17 = sphi %s9684_s17, %s20_s17   ;;  %s9612_s16 = sphi %s9682_s16, %s11843_s16   ;;  %s9608_s15 = sphi %s9680_s15, %s11842_s15   ;;  %s9604_s14 = sphi %s9678_s14, %s11841_s14   ;;  %s9600_s13 = sphi %s9676_s13, %s11840_s13  }
   0x4   : > { %p30_p0 = scmp.ge.s32.totalorder %s29_s18, 2  ;;  %p6723_p1 = scmp.ge.s32.totalorder %s9616_s17, 1 }
   0x5   : > { %p356_p2 = scmp.lt.s32.totalorder %s9616_s17, 5 }
   0x6   : > { %s11845_s18 = smov (%p30_p0, %s29_s18), 0  ;;  %s11847_s19 = smov (!%p30_p0, %s32_s19), %s9612_s16 }
   0x7   : > { %p357_p3 = pnand %p6723_p1, %p356_p2  ;;  %p34_p4 = scmp.ge.s32.totalorder %s11847_s19, 2 }
   0x9   : > { %s11849_s19 = smov (%p34_p4, %s11847_s19), 0  ;;  %360 = sbr.rel (%p357_p3) target bundleno = 1631 (0x65f), region = 60 }
  0x10   : > { %v9327_v0 = vld [vmem:[%s11788_s5 + $0xc0] sm:$0xff]   ;;  %v11802_v1 = vmov 0.0   ;;  %v9328_v2 = vld [vmem:[%s11788_s5 + $0xc8] sm:$0xff]   ;;  %vm9619_vm0 = vmmov 0   ;;  %p415_p5 = scmp.lt.s32.totalorder %s9604_s14, 1  ;;  %p417_p6 = scmp.lt.s32.totalorder %s9600_s13, 1 }
  0x11   : > { %7834 = vmatprep.subr.bf16.mxu0 %v11802_v1  ;;  %8878 = vmatprep.subr.bf16.mxu1 %v11802_v1  ;;  %v9329_v3 = vld [vmem:[%s11788_s5 + $0xd0] sm:$0xff]   ;;  %s9734_s29 = sshll.u32 %s9600_s13, 3  ;;  %v9330_v4 = vld [vmem:[%s11788_s5 + $0xd8] sm:$0xff]   ;;  %v9337_v6 = vld [vmem:[%s11788_s5 + $0x100] sm:$0xff]   ;;  %v9620_v13 = vmov 0.0|0.0  }
  0x12   : > { %7835 = vmatpush3.bf16.msra.mxu0 %v9327_v0  ;;  %7850 = vmatprep.mubr.msk.bf16.mxu0 %vm9619_vm0, %v11802_v1  ;;  %s11851_s14 = smov (!%p415_p5, %s9604_s14), 1  ;;  %s6731_s21 = sadd.s32 4294967294, %s9734_s29  ;;  %v9331_v7 = vld [vmem:[%s11788_s5 + $0xe0] sm:$0xff]   ;;  %v9763_v14 = vcombine.low %v9620_v13, %v9620_v13  ;;  %v9338_v17 = vld [vmem:[%s11788_s5 + $0x108] sm:$0xff]   ;;  %v9340_v26 = vld [vmem:[%s11788_s5 + $0x110] sm:$0xff]  }
  0x13   : > { %7836 = vmatprep.subr.bf16.mxu0 %v11802_v1  ;;  %8094 = vmatprep.mubr.msk.bf16.mxu1 %vm9619_vm0, %v11802_v1  ;;  %s9725_s24 = scalar_select %p417_p6, %s9600_s13, 1  ;;  %v9746_v5 = vstv %s6731_s21  ;;  %v9758_v9 = vld [vmem:[%s11786_s3] ss:$0 sm:$0xff]  ;;  %v9332_v25 = vld [vmem:[%s11788_s5 + $0xe8] sm:$0xff]   ;;  %v9333_v39 = vld [vmem:[%s11788_s5 + $0xf0] sm:$0xff]  }
  0x14   : > { %s9279_s27 = smul.u32 72, %s11851_s14  ;;  %v652_v10 = vadd.s32 1, %v9746_v5  ;;  %v653_v12 = vadd.s32 2, %v9746_v5  ;;  %8886 = vmatpush3.bf16.msra.mxu1 %v9337_v6  ;;  %v9771_v20 = vld [vmem:[%s11787_s4] ss:$0 sm:$0xff]  ;;  %v654_v33 = vadd.s32 3, %v9746_v5  ;;  %s435_s30 = scalar_lea.vmem %s11785_s2, %s11851_s14 }
  0x15   : > { %s9278_s28 = smul.u32 36, %s9725_s24  ;;  %8879 = vmatprep.subr.bf16.mxu1 %v11802_v1  ;;  %1034 = vst [vmem:[#allocation2 + $0x14] sm:$0xf] %v9763_v14  ;;  %1031 = vst [vmem:[#allocation2 + $0x8] sm:$0xf] %v9763_v14  ;;  %v9341_v40 = vld [vmem:[%s11788_s5 + $0x118] sm:$0xff]  }
  0x16   : > { %7837 = vmatpush3.bf16.msra.mxu0 %v9328_v2  ;;  %vm664_vm1 = vcmp.ge.s32.totalorder %v652_v10, 0  ;;  %vm676_vm2 = vcmp.lt.s32.totalorder %v652_v10, 16  ;;  %vm665_vm3 = vcmp.ge.s32.totalorder %v653_v12, 0  ;;  %vm677_vm4 = vcmp.lt.s32.totalorder %v653_v12, 16  ;;  %1037 = vst [vmem:[#allocation2 + $0x20] sm:$0xf] %v9763_v14 }
  0x17   : > { %7838 = vmatprep.subr.bf16.mxu0 %v11802_v1  ;;  %s421_s12 = sadd.s32 %s9279_s27, %s9278_s28  ;;  %1040 = vst [vmem:[#allocation2 + $0x2c] sm:$0xf] %v9763_v14  ;;  %1043 = vst [vmem:[#allocation2 + $0x38] sm:$0xf] %v9763_v14  ;;  %v655_v43 = vadd.s32 4, %v9746_v5  ;;  %vm666_vm7 = vcmp.ge.s32.totalorder %v654_v33, 0 }
  0x18   : > { %s6724_s20 = sshll.u32 %s421_s12, 2  ;;  %1046 = vst [vmem:[#allocation2 + $0x44] sm:$0xf] %v9763_v14  ;;  %1049 = vst [vmem:[#allocation2 + $0x50] sm:$0xf] %v9763_v14  ;;  %8887 = vmatpush3.bf16.msra.mxu1 %v9338_v17  ;;  %vm678_vm8 = vcmp.lt.s32.totalorder %v654_v33, 16 }
  0x19   : > { %s9744_s25 = scalar_lea.vmem %s11783_s0, %s6724_s20  ;;  %1052 = vst [vmem:[#allocation2 + $0x5c] sm:$0xf] %v9763_v14  ;;  %1055 = vst [vmem:[#allocation2 + $0x68] sm:$0xf] %v9763_v14  ;;  %8880 = vmatprep.subr.bf16.mxu1 %v11802_v1  ;;  %v9334_v53 = vld [vmem:[%s11788_s5 + $0xf8] sm:$0xff]   ;;  %vm667_vm9 = vcmp.ge.s32.totalorder %v655_v43, 0 }
  0x1a   : > { %7839 = vmatpush3.bf16.msra.mxu0 %v9329_v3  ;;  %v459_v8 = vld [vmem:[%s9744_s25 + $0xc] sm:$0xff]   ;;  %v7429_v11 = vld [vmem:[%s9744_s25 + $0x18] sm:$0xff]   ;;  %1058 = vst [vmem:[#allocation2 + $0x74] sm:$0xf] %v9763_v14  ;;  %1061 = vst [vmem:[#allocation2 + $0x80] sm:$0xf] %v9763_v14 }
  0x1b   : > { %7840 = vmatprep.subr.bf16.mxu0 %v11802_v1  ;;  %v496_v15 = vunpack.c.l.bf16 %v459_v8  ;;  %v497_v16 = vunpack.c.h.bf16 %v459_v8  ;;  %v7336_v18 = vunpack.c.l.bf16 %v7429_v11  ;;  %v7337_v19 = vunpack.c.h.bf16 %v7429_v11  ;;  %1064 = vst [vmem:[#allocation2 + $0x8c] sm:$0xf] %v9763_v14  ;;  %vm9801_vm5 = vmand %vm664_vm1, %vm676_vm2  ;;  %v465_v38 = vld [vmem:[%s9744_s25 + $0x24] sm:$0xff]   ;;  %v7430_v54 = vld [vmem:[%s9744_s25 + $0x30] sm:$0xff]   ;;  %s9280_s12 = smul.u32 30, %s9725_s24  ;;  %s7016_s11 = sadd.s32 4294967295, %s9734_s29 }
  0x1c   : > { %vm9809_vm6 = vmand %vm665_vm3, %vm677_vm4  ;;  %v502_v41 = vunpack.c.l.bf16 %v465_v38  ;;  %v503_v42 = vunpack.c.h.bf16 %v465_v38  ;;  %8888 = vmatpush3.bf16.msra.mxu1 %v9340_v26  ;;  %v656_v55 = vadd.s32 5, %v9746_v5  ;;  %v9344_v56 = vld [vmem:[%s11788_s5 + $0x120] sm:$0xff]   ;;  %v7340_v59 = vunpack.c.l.bf16 %v7430_v54  ;;  %v9345_v12 = vld [vmem:[%s11788_s5 + $0x128] sm:$0xff]   ;;  %s9281_s20 = smul.u32 60, %s11851_s14  ;;  %p439_p7 = scmp.lt.s32.totalorder %s9734_s29, 15 }
  0x1d   : > { %v538_v21 = vmul.f32 %v9758_v9, %v496_v15  ;;  %v539_v22 = vmul.f32 %v9758_v9, %v497_v16  ;;  %v541_v23 = vmul.f32 %v7336_v18, %v9758_v9  ;;  %v542_v24 = vmul.f32 %v7337_v19, %v9758_v9  ;;  %8881 = vmatprep.subr.bf16.mxu1 %v11802_v1  ;;  %vm9849_vm10 = vmand %vm666_vm7, %vm678_vm8  ;;  %v471_v62 = vld [vmem:[%s9744_s25 + $0x3c] sm:$0xff]   ;;  %v477_v18 = vld [vmem:[%s9744_s25 + $0x54] sm:$0xff]  }
  0x1e   : > { %7841 = vmatpush3.bf16.msra.mxu0 %v9330_v4  ;;  %v544_v51 = vmul.f32 %v9758_v9, %v502_v41  ;;  %v545_v52 = vmul.f32 %v9758_v9, %v503_v42  ;;  %v7341_v60 = vunpack.c.h.bf16 %v7430_v54  ;;  %vm679_vm11 = vcmp.lt.s32.totalorder %v655_v43, 16  ;;  %v7431_v4 = vld [vmem:[%s9744_s25 + $0x48] sm:$0xff]   ;;  %v9336_v6 = vld [vmem:[%s11788_s5] sm:$0xff]   ;;  %v9348_v43 = vld [vmem:[%s11788_s5 + $0x138] sm:$0xff]   ;;  %s11853_s29 = smov (!%p439_p7, %s9734_s29), 15 }
  0x1f   : > { %7842 = vmatprep.subr.bf16.mxu0 %v11802_v1  ;;  %v581_v27 = vadd.f32 %v9771_v20, %v538_v21  ;;  %v582_v28 = vadd.f32 %v9771_v20, %v539_v22  ;;  %v584_v30 = vadd.f32 %v9771_v20, %v541_v23  ;;  %v585_v31 = vadd.f32 %v9771_v20, %v542_v24  ;;  %vm9874_vm14 = vmand %vm667_vm9, %vm679_vm11 }
  0x20   : > { %8889 = vmatpush3.bf16.msra.mxu1 %v9341_v40  ;;  %v587_v57 = vadd.f32 %v9771_v20, %v544_v51  ;;  %v588_v58 = vadd.f32 %v9771_v20, %v545_v52  ;;  %vm668_vm12 = vcmp.ge.s32.totalorder %v656_v55, 0  ;;  %vm680_vm13 = vcmp.lt.s32.totalorder %v656_v55, 16 }
  0x21   : > { %v617_v34 = vmax.f32 %v581_v27, 0.0  ;;  %v618_v35 = vmax.f32 %v582_v28, 0.0  ;;  %v620_v36 = vmax.f32 %v584_v30, 0.0  ;;  %v621_v37 = vmax.f32 %v585_v31, 0.0  ;;  %8882 = vmatprep.subr.bf16.mxu1 %v11802_v1  ;;  %v9343_v30 = vld [vmem:[%s11788_s5 + $0x8] sm:$0xff]   ;;  %v9347_v31 = vld [vmem:[%s11788_s5 + $0x130] sm:$0xff]   ;;  %vm9896_vm15 = vmand %vm668_vm12, %vm680_vm13 }
  0x22   : > { %7843 = vmatpush3.bf16.msra.mxu0 %v9331_v7  ;;  %v623_v63 = vmax.f32 %v587_v57, 0.0  ;;  %v624_v0 = vmax.f32 %v588_v58, 0.0  ;;  %v547_v2 = vmul.f32 %v7340_v59, %v9758_v9  ;;  %v548_v3 = vmul.f32 %v7341_v60, %v9758_v9  ;;  %v9349_v58 = vld [vmem:[%s11788_s5 + $0x10] sm:$0xff]  }
  0x23   : > { %7844 = vmatprep.subr.bf16.mxu0 %v11802_v1  ;;  %v840_v44 = vsel %vm9801_vm5, %v617_v34, 0.0  ;;  %v841_v45 = vsel %vm9801_vm5, %v618_v35, 0.0  ;;  %v843_v46 = vsel %vm9809_vm6, %v620_v36, 0.0  ;;  %v844_v47 = vsel %vm9809_vm6, %v621_v37, 0.0 }
  0x24   : > { %v7288_v48 = vpack.c.bf16 %v840_v44, %v840_v44  ;;  %v7289_v49 = vpack.c.bf16 %v841_v45, %v841_v45  ;;  %v7362_v50 = vpack.c.bf16 %v844_v47, %v843_v46  ;;  %v508_v7 = vunpack.c.l.bf16 %v471_v62  ;;  %8890 = vmatpush3.bf16.msra.mxu1 %v9344_v56 }
  0x25   : > { %v509_v8 = vunpack.c.h.bf16 %v471_v62  ;;  %v7344_v10 = vunpack.c.l.bf16 %v7431_v4  ;;  %v7345_v11 = vunpack.c.h.bf16 %v7431_v4  ;;  %v846_v13 = vsel %vm9849_vm10, %v623_v63, 0.0  ;;  %8883 = vmatprep.subr.bf16.mxu1 %v11802_v1  ;;  %v483_v62 = vld [vmem:[%s9744_s25 + $0x6c] sm:$0xff]   ;;  %v9368_v4 = vld [vmem:[%s11788_s5 + $0x38] sm:$0xff]  }
  0x26   : > { %7845 = vmatpush3.bf16.msra.mxu0 %v9332_v25  ;;  %1032 = vst [vmem:[#allocation2 + $0xc] sm:$0xf] %v7288_v48  ;;  %1033 = vst [vmem:[#allocation2 + $0x10] sm:$0xf] %v7289_v49  ;;  %v847_v15 = vsel %vm9849_vm10, %v624_v0, 0.0  ;;  %v590_v16 = vadd.f32 %v9771_v20, %v547_v2  ;;  %v591_v17 = vadd.f32 %v9771_v20, %v548_v3  ;;  %v657_v24 = vadd.s32 6, %v9746_v5 }
  0x27   : > { %7846 = vmatprep.subr.bf16.mxu0 %v11802_v1  ;;  %7434 = vst [vmem:[#allocation2 + $0x18] sm:$0xff] %v7362_v50   ;;  %v7292_v19 = vpack.c.bf16 %v846_v13, %v846_v13  ;;  %v7293_v21 = vpack.c.bf16 %v847_v15, %v847_v15  ;;  %v550_v23 = vmul.f32 %v9758_v9, %v508_v7  ;;  %v514_v34 = vunpack.c.l.bf16 %v477_v18  ;;  %v7432_v48 = vld [vmem:[%s9744_s25 + $0x60] sm:$0xff]  }
  0x28   : > { %v626_v26 = vmax.f32 %v590_v16, 0.0  ;;  %v551_v27 = vmul.f32 %v9758_v9, %v509_v8  ;;  %v553_v28 = vmul.f32 %v7344_v10, %v9758_v9  ;;  %v554_v29 = vmul.f32 %v7345_v11, %v9758_v9  ;;  %8891 = vmatpush3.bf16.msra.mxu1 %v9345_v12  ;;  %v9352_v10 = vld [vmem:[%s11788_s5 + $0x18] sm:$0xff]  }
  0x29   : > { %1038 = vst [vmem:[#allocation2 + $0x24] sm:$0xf] %v7292_v19  ;;  %1039 = vst [vmem:[#allocation2 + $0x28] sm:$0xf] %v7293_v21  ;;  %v627_v32 = vmax.f32 %v591_v17, 0.0  ;;  %v593_v33 = vadd.f32 %v9771_v20, %v550_v23  ;;  %v515_v35 = vunpack.c.h.bf16 %v477_v18  ;;  %vm669_vm1 = vcmp.ge.s32.totalorder %v657_v24, 0  ;;  %8884 = vmatprep.subr.bf16.mxu1 %v11802_v1 }
  0x2a   : > { %7847 = vmatpush3.bf16.msra.mxu0 %v9333_v39  ;;  %v849_v36 = vsel %vm9874_vm14, %v626_v26, 0.0  ;;  %v594_v37 = vadd.f32 %v9771_v20, %v551_v27  ;;  %v596_v39 = vadd.f32 %v9771_v20, %v553_v28  ;;  %v597_v40 = vadd.f32 %v9771_v20, %v554_v29  ;;  %v9361_v17 = vld [vmem:[%s11788_s5 + $0x40] sm:$0xff]   ;;  %v7433_v19 = vld [vmem:[%s9744_s25 + $0x78] sm:$0xff]  }
  0x2b   : > { %7848 = vmatprep.subr.bf16.mxu0 %v11802_v1  ;;  %v850_v41 = vsel %vm9874_vm14, %v627_v32, 0.0  ;;  %v629_v42 = vmax.f32 %v593_v33, 0.0  ;;  %vm681_vm2 = vcmp.lt.s32.totalorder %v657_v24, 16  ;;  %v556_v50 = vmul.f32 %v9758_v9, %v514_v34  ;;  %v9355_v34 = vld [vmem:[%s11788_s5 + $0x20] sm:$0xff]  }
  0x2c   : > { %v7367_v44 = vpack.c.bf16 %v850_v41, %v849_v36  ;;  %v630_v45 = vmax.f32 %v594_v37, 0.0  ;;  %v632_v46 = vmax.f32 %v596_v39, 0.0  ;;  %v633_v47 = vmax.f32 %v597_v40, 0.0  ;;  %vm693_vm3 = vmand %vm669_vm1, %vm681_vm2  ;;  %8892 = vmatpush3.bf16.msra.mxu1 %v9347_v31  ;;  %v9396_v37 = vld [vmem:[%s11788_s5 + $0x1d0] sm:$0xff]  }
  0x2d   : > { %v9335_v25 = vld [vmem:[#allocation2 + $0xc] sm:$0xff]   ;;  %v852_v49 = vsel %vm9896_vm15, %v629_v42, 0.0  ;;  %v557_v51 = vmul.f32 %v9758_v9, %v515_v35  ;;  %v658_v52 = vadd.s32 7, %v9746_v5  ;;  %8885 = vmatprep.subr.bf16.mxu1 %v11802_v1  ;;  %v599_v61 = vadd.f32 %v9771_v20, %v556_v50 }
  0x2e   : > { %7849 = vmatpush3.bf16.msra.mxu0 %v9334_v53  ;;  %v9917_v53 = vld [vmem:[#allocation2 + $0x14] sm:$0xff]   ;;  %7435 = vst [vmem:[#allocation2 + $0x30] sm:$0xff] %v7367_v44   ;;  %v853_v54 = vsel %vm9896_vm15, %v630_v45, 0.0  ;;  %v7296_v55 = vpack.c.bf16 %v852_v49, %v852_v49  ;;  %v855_v56 = vsel %vm693_vm3, %v632_v46, 0.0  ;;  %v856_v57 = vsel %vm693_vm3, %v633_v47, 0.0  ;;  %v9358_v50 = vld [vmem:[%s11788_s5 + $0x28] sm:$0xff]  }
  0x2f   : > { %7910 = vmatprep.subr.bf16.mxu0 %v11802_v1  ;;  %v7297_v59 = vpack.c.bf16 %v853_v54, %v853_v54  ;;  %v7372_v60 = vpack.c.bf16 %v856_v57, %v855_v56  ;;  %vm670_vm4 = vcmp.ge.s32.totalorder %v658_v52, 0  ;;  %v600_v63 = vadd.f32 %v9771_v20, %v557_v51  ;;  %v9362_v57 = vld [vmem:[%s11788_s5 + $0x30] sm:$0xff]  }
  0x30   : > { %1044 = vst [vmem:[#allocation2 + $0x3c] sm:$0xf] %v7296_v55  ;;  %vm682_vm5 = vcmp.lt.s32.totalorder %v658_v52, 16  ;;  %v7348_v0 = vunpack.c.l.bf16 %v7432_v48  ;;  %v7349_v2 = vunpack.c.h.bf16 %v7432_v48  ;;  %v635_v3 = vmax.f32 %v599_v61, 0.0  ;;  %8893 = vmatpush3.bf16.msra.mxu1 %v9348_v43  ;;  %v9363_v43 = vld [vmem:[%s11788_s5 + $0x48] sm:$0xff]  }
  0x31   : > { %7851 = vmatmul.mubr.bf16.vlgmr.msra.gmra.mrb[0].mxu0 %v9335_v25  ;;  %1045 = vst [vmem:[#allocation2 + $0x40] sm:$0xf] %v7297_v59  ;;  %7436 = vst [vmem:[#allocation2 + $0x48] sm:$0xff] %v7372_v60   ;;  %v520_v7 = vunpack.c.l.bf16 %v483_v62  ;;  %v521_v8 = vunpack.c.h.bf16 %v483_v62  ;;  %v636_v11 = vmax.f32 %v600_v63, 0.0  ;;  %v660_v15 = vadd.s32 9, %v9746_v5  ;;  %8138 = vmatprep.subr.bf16.mxu1 %v11802_v1  ;;  %v9346_v60 = vld [vmem:[#allocation2 + $0x24] sm:$0xff]  }
  0x32   : > { %7911 = vmatpush3.bf16.msra.mxu0 %v9336_v6  ;;  %7854 = vmatprep.mubr.msk.bf16.mxu0 %vm9619_vm0, %v11802_v1  ;;  %vm9929_vm6 = vmand %vm670_vm4, %vm682_vm5  ;;  %v659_v6 = vadd.s32 8, %v9746_v5  ;;  %v559_v12 = vmul.f32 %v7348_v0, %v9758_v9  ;;  %v560_v13 = vmul.f32 %v7349_v2, %v9758_v9  ;;  %v7352_v33 = vunpack.c.l.bf16 %v7433_v19  ;;  %v9366_v62 = vld [vmem:[%s11788_s5 + $0x58] sm:$0xff]   ;;  %v7331_v2 = vld [vmem:[%s9744_s25] sm:$0xff]  }
  0x33   : > { %7912 = vmatprep.subr.bf16.mxu0 %v11802_v1  ;;  %v858_v16 = vsel %vm9929_vm6, %v635_v3, 0.0  ;;  %v562_v18 = vmul.f32 %v9758_v9, %v520_v7  ;;  %v859_v21 = vsel %vm9929_vm6, %v636_v11, 0.0  ;;  %v563_v28 = vmul.f32 %v9758_v9, %v521_v8  ;;  %v10023_v8 = vld [vmem:[#allocation2 + $0x8] sm:$0xff]  }
  0x34   : > { %vm671_vm7 = vcmp.ge.s32.totalorder %v659_v6, 0  ;;  %vm683_vm8 = vcmp.lt.s32.totalorder %v659_v6, 16  ;;  %v7300_v22 = vpack.c.bf16 %v858_v16, %v858_v16  ;;  %v602_v23 = vadd.f32 %v9771_v20, %v559_v12  ;;  %4234 = vst [vmem:[#allocation2 + $0x8] sm:$0xf] %v9763_v14  ;;  %v9369_v12 = vld [vmem:[%s11788_s5 + $0x60] sm:$0xff]   ;;  %v10038_v16 = vld [vmem:[#allocation2 + $0x10] sm:$0xff]  }
  0x35   : > { %v603_v24 = vadd.f32 %v9771_v20, %v560_v13  ;;  %vm9955_vm9 = vmand %vm671_vm7, %vm683_vm8  ;;  %v9960_v26 = vld [vmem:[#allocation2 + $0x2c] sm:$0xff]   ;;  %v7301_v27 = vpack.c.bf16 %v859_v21, %v859_v21  ;;  %v605_v29 = vadd.f32 %v9771_v20, %v562_v18  ;;  %vm672_vm10 = vcmp.ge.s32.totalorder %v660_v15, 0  ;;  %v9995_v49 = vld [vmem:[#allocation2 + $0x34] sm:$0xff]   ;;  %4237 = vst [vmem:[#allocation2 + $0x14] sm:$0xf] %v9763_v14 }
  0x36   : > { %7913 = vmatpush3.bf16.msra.mxu0 %v9343_v30  ;;  %v9964_v30 = vld [vmem:[#allocation2 + $0x1c] sm:$0xff]   ;;  %1050 = vst [vmem:[#allocation2 + $0x54] sm:$0xf] %v7300_v22  ;;  %v638_v31 = vmax.f32 %v602_v23, 0.0  ;;  %vm684_vm11 = vcmp.lt.s32.totalorder %v660_v15, 16  ;;  %8095 = vmatmul.mubr.bf16.vlgmr.msra.gmra.mrb[0].mxu1 %v9960_v26  ;;  %v606_v35 = vadd.f32 %v9771_v20, %v563_v28  ;;  %v7353_v38 = vunpack.c.h.bf16 %v7433_v19  ;;  %v9372_v23 = vld [vmem:[%s11788_s5 + $0x70] sm:$0xff]  }
  0x37   : > { %7914 = vmatprep.subr.bf16.mxu0 %v11802_v1  ;;  %v639_v32 = vmax.f32 %v603_v24, 0.0  ;;  %1051 = vst [vmem:[#allocation2 + $0x58] sm:$0xf] %v7301_v27  ;;  %v641_v36 = vmax.f32 %v605_v29, 0.0  ;;  %vm9971_vm12 = vmand %vm672_vm10, %vm684_vm11  ;;  %v661_v39 = vadd.s32 10, %v9746_v5  ;;  %8098 = vmatprep.mubr.msk.bf16.mxu1 %vm9619_vm0, %v11802_v1  ;;  %v565_v41 = vmul.f32 %v7352_v33, %v9758_v9  ;;  %v9373_v24 = vld [vmem:[%s11788_s5 + $0x78] sm:$0xff]  }
  0x38   : > { %v861_v40 = vsel %vm9955_vm9, %v638_v31, 0.0  ;;  %8139 = vmatpush3.bf16.msra.mxu1 %v9361_v17  ;;  %v642_v44 = vmax.f32 %v606_v35, 0.0  ;;  %v566_v45 = vmul.f32 %v7353_v38, %v9758_v9  ;;  %v9353_v3 = vld [vmem:[#allocation2 + $0x3c] sm:$0xff]   ;;  %v7332_v6 = vunpack.c.l.bf16 %v7331_v2  ;;  %v10052_v21 = vld [vmem:[#allocation2 + $0x44] sm:$0xff]   ;;  %v10068_v25 = vld [vmem:[#allocation2 + $0x4c] sm:$0xff]  }
  0x39   : > { %7855 = vmatmul.mubr.bf16.gmra.mrb[4].mxu0 %v9917_v53  ;;  %v862_v42 = vsel %vm9955_vm9, %v639_v32, 0.0  ;;  %8140 = vmatprep.subr.bf16.mxu1 %v11802_v1  ;;  %v864_v47 = vsel %vm9971_vm12, %v641_v36, 0.0  ;;  %v608_v48 = vadd.f32 %v9771_v20, %v565_v41  ;;  %vm673_vm13 = vcmp.ge.s32.totalorder %v661_v39, 0  ;;  %v9392_v35 = vld [vmem:[%s11788_s5 + $0x1c0] sm:$0xff]   ;;  %v9394_v36 = vld [vmem:[%s11788_s5 + $0x1c8] sm:$0xff]   ;;  %v9397_v38 = vld [vmem:[%s11788_s5 + $0x1d8] sm:$0xff]  }
  0x3a   : > { %7858 = vmatprep.mubr.msk.bf16.mxu0 %vm9619_vm0, %v11802_v1  ;;  %7915 = vmatpush3.bf16.msra.mxu0 %v9349_v58  ;;  %v7377_v46 = vpack.c.bf16 %v862_v42, %v861_v40  ;;  %v865_v51 = vsel %vm9971_vm12, %v642_v44, 0.0  ;;  %v7304_v52 = vpack.c.bf16 %v864_v47, %v864_v47  ;;  %v609_v54 = vadd.f32 %v9771_v20, %v566_v45  ;;  %v9365_v58 = vld [vmem:[%s11788_s5 + $0x50] sm:$0xff]   ;;  %v9400_v40 = vld [vmem:[%s11788_s5 + $0x1e0] sm:$0xff]   ;;  %v9378_v44 = vld [vmem:[%s11788_s5 + $0x188] sm:$0xff]  }
  0x3b   : > { %7916 = vmatprep.subr.bf16.mxu0 %v11802_v1  ;;  %vm685_vm14 = vcmp.lt.s32.totalorder %v661_v39, 16  ;;  %v7305_v55 = vpack.c.bf16 %v865_v51, %v865_v51  ;;  %v644_v56 = vmax.f32 %v608_v48, 0.0  ;;  %v7333_v7 = vunpack.c.h.bf16 %v7331_v2  ;;  %v10135_v39 = vld [vmem:[#allocation2 + $0x20] sm:$0xff]   ;;  %v9379_v45 = vld [vmem:[#allocation2 + $0x18] sm:$0xff]   ;;  %v9403_v47 = vld [vmem:[%s11788_s5 + $0x1f0] sm:$0xff]  }
  0x3c   : > { %7437 = vst [vmem:[#allocation2 + $0x60] sm:$0xff] %v7377_v46   ;;  %vm697_vm15 = vmand %vm673_vm13, %vm685_vm14  ;;  %8141 = vmatpush3.bf16.msra.mxu1 %v9363_v43  ;;  %v645_v59 = vmax.f32 %v609_v54, 0.0  ;;  %vm663_vm1 = vcmp.ge.s32.totalorder %v9746_v5, 0  ;;  %vm675_vm2 = vcmp.lt.s32.totalorder %v9746_v5, 16  ;;  %v10143_v41 = vld [vmem:[#allocation2 + $0x20] sm:$0xff]   ;;  %v9401_v43 = vld [vmem:[%s11788_s5 + $0x1e8] sm:$0xff]  }
  0x3d   : > { %1056 = vst [vmem:[#allocation2 + $0x6c] sm:$0xf] %v7304_v52  ;;  %1057 = vst [vmem:[#allocation2 + $0x70] sm:$0xf] %v7305_v55  ;;  %8142 = vmatprep.subr.bf16.mxu1 %v11802_v1  ;;  %v867_v61 = vsel %vm697_vm15, %v644_v56, 0.0  ;;  %v536_v11 = vmul.f32 %v7333_v7, %v9758_v9  ;;  %v9375_v42 = vld [vmem:[%s11788_s5 + $0x180] sm:$0xff]  }
  0x3e   : > { %7917 = vmatpush3.bf16.msra.mxu0 %v9352_v10  ;;  %8099 = vmatmul.mubr.bf16.gmra.mrb[4].mxu1 %v9995_v49  ;;  %v868_v63 = vsel %vm697_vm15, %v645_v59, 0.0  ;;  %v535_v10 = vmul.f32 %v7332_v6, %v9758_v9  ;;  %vm687_vm3 = vmand %vm663_vm1, %vm675_vm2  ;;  %v9357_v27 = vld [vmem:[#allocation2 + $0x54] sm:$0xff]   ;;  %4240 = vst [vmem:[#allocation2 + $0x20] sm:$0xf] %v9763_v14  ;;  %v10159_v46 = vld [vmem:[#allocation2 + $0x28] sm:$0xff]  }
  0x3f   : > { %7918 = vmatprep.subr.bf16.mxu0 %v11802_v1  ;;  %8102 = vmatprep.mubr.msk.bf16.mxu1 %vm9619_vm0, %v11802_v1  ;;  %v7382_v0 = vpack.c.bf16 %v868_v63, %v867_v61  ;;  %v579_v15 = vadd.f32 %v9771_v20, %v536_v11  ;;  %v10167_v48 = vld [vmem:[#allocation2 + $0x28] sm:$0xff]   ;;  %v9404_v51 = vld [vmem:[%s11788_s5 + $0x1f8] sm:$0xff]   ;;  %v9386_v54 = vld [vmem:[%s11788_s5 + $0x1a0] sm:$0xff]  }
  0x40   : > { %8143 = vmatpush3.bf16.msra.mxu1 %v9365_v58  ;;  %v578_v13 = vadd.f32 %v9771_v20, %v535_v10  ;;  %v9370_v20 = vld [vmem:[%s11788_s5 + $0x68] sm:$0xff]   ;;  %4243 = vst [vmem:[#allocation2 + $0x2c] sm:$0xf] %v9763_v14  ;;  %v9383_v52 = vld [vmem:[%s11788_s5 + $0x198] sm:$0xff]   ;;  %v9393_v58 = vld [vmem:[%s11788_s5 + $0x1b0] sm:$0xff]  }
  0x41   : > { %7859 = vmatmul.mubr.bf16.gmra.mrb[8].mxu0 %v9964_v30  ;;  %8144 = vmatprep.subr.bf16.mxu1 %v11802_v1  ;;  %7438 = vst [vmem:[#allocation2 + $0x78] sm:$0xff] %v7382_v0   ;;  %v615_v17 = vmax.f32 %v579_v15, 0.0  ;;  %v10199_v55 = vld [vmem:[#allocation2 + $0x38] sm:$0xff]   ;;  %v9389_v56 = vld [vmem:[%s11788_s5 + $0x1a8] sm:$0xff]   ;;  %v9384_v59 = vld [vmem:[#allocation2 + $0x30] sm:$0xff]  }
  0x42   : > { %7862 = vmatprep.mubr.msk.bf16.mxu0 %vm9619_vm0, %v11802_v1  ;;  %7919 = vmatpush3.bf16.msra.mxu0 %v9355_v34  ;;  %v614_v9 = vmax.f32 %v578_v13, 0.0  ;;  %v9399_v61 = vld [vmem:[%s11788_s5 + $0x1b8] sm:$0xff]   ;;  %v10238_v63 = vld [vmem:[#allocation2 + $0x50] sm:$0xff]   ;;  %v9388_v2 = vld [vmem:[#allocation2 + $0x48] sm:$0xff]  }
  0x43   : > { %7920 = vmatprep.subr.bf16.mxu0 %v11802_v1  ;;  %v838_v19 = vsel %vm687_vm3, %v615_v17, 0.0  ;;  %v10081_v28 = vld [vmem:[#allocation2 + $0x5c] sm:$0xff]   ;;  %v10089_v29 = vld [vmem:[#allocation2 + $0x64] sm:$0xff]   ;;  %v10240_v0 = vld [vmem:[#allocation2 + $0x50] sm:$0xff]  }
  0x44   : > { %8145 = vmatpush3.bf16.msra.mxu1 %v9366_v62  ;;  %v837_v18 = vsel %vm687_vm3, %v614_v9, 0.0  ;;  %v9364_v31 = vld [vmem:[#allocation2 + $0x6c] sm:$0xff]   ;;  %v10222_v62 = vld [vmem:[#allocation2 + $0x40] sm:$0xff]   ;;  %11820 = vst [vmem:[#allocation3_spill] sm:$0xff] %v10240_v0  ;;  %4252 = vst [vmem:[#allocation2 + $0x50] sm:$0xf] %v9763_v14 }
  0x45   : > { %8146 = vmatprep.subr.bf16.mxu1 %v11802_v1  ;;  %v7357_v22 = vpack.c.bf16 %v838_v19, %v837_v18  ;;  %v10264_v6 = vld [vmem:[#allocation2 + $0x68] sm:$0xff]   ;;  %v9395_v10 = vld [vmem:[#allocation2 + $0x60] sm:$0xff]   ;;  %v10272_v11 = vld [vmem:[#allocation2 + $0x70] sm:$0xff]  }
  0x46   : > { %7921 = vmatpush3.bf16.msra.mxu0 %v9358_v50  ;;  %8103 = vmatmul.mubr.bf16.gmra.mrb[8].mxu1 %v9353_v3  ;;  %v9380_v50 = vld [vmem:[%s11788_s5 + $0x190] sm:$0xff]   ;;  %v10266_v7 = vld [vmem:[#allocation2 + $0x68] sm:$0xff]   ;;  %v9552_v9 = vld [vmem:[%s11786_s3] ss:$0 sm:$0xff] }
  0x47   : > { %7922 = vmatprep.subr.bf16.mxu0 %v11802_v1  ;;  %8106 = vmatprep.mubr.msk.bf16.mxu1 %vm9619_vm0, %v11802_v1  ;;  %7358 = vst [vmem:[#allocation2] sm:$0xff] %v7357_v22   ;;  %11822 = vst [vmem:[#allocation5_spill] sm:$0xff] %v10266_v7  ;;  %v489_v13 = vld [vmem:[%s9744_s25 + $0x84] sm:$0xff]   ;;  %s430_s25 = sadd.s32 %s9281_s20, %s9280_s12  ;;  %s9282_s12 = smul.u32 3, %s11853_s29 }
  0x48   : > { %8147 = vmatpush3.bf16.msra.mxu1 %v9369_v12  ;;  %v10101_v32 = vld [vmem:[#allocation2 + $0x74] sm:$0xff]   ;;  %v9371_v33 = vld [vmem:[#allocation2 + $0x7c] sm:$0xff]   ;;  %4258 = vst [vmem:[#allocation2 + $0x68] sm:$0xf] %v9763_v14  ;;  %v526_v15 = vunpack.c.l.bf16 %v489_v13  ;;  %s6725_s21 = sshll.u32 %s430_s25, 2 }
  0x49   : > { %7863 = vmatmul.mubr.bf16.gmra.mrb[12].mxu0 %v9346_v60  ;;  %8148 = vmatprep.subr.bf16.mxu1 %v11802_v1  ;;  %v10215_v60 = vld [vmem:[#allocation2 + $0x40] sm:$0xff]   ;;  %v10276_v12 = vld [vmem:[#allocation2 + $0x70] sm:$0xff]   ;;  %s10910_s13 = scalar_lea.vmem %s11784_s1, %s6725_s21 }
  0x4a   : > { %7866 = vmatprep.mubr.msk.bf16.mxu0 %vm9619_vm0, %v11802_v1  ;;  %7923 = vmatpush3.bf16.msra.mxu0 %v9362_v57  ;;  %v10204_v57 = vld [vmem:[#allocation2 + $0x38] sm:$0xff]   ;;  %4249 = vst [vmem:[#allocation2 + $0x44] sm:$0xf] %v9763_v14  ;;  %11823 = vst [vmem:[#allocation6_spill] sm:$0xff] %v10276_v12  ;;  %v568_v17 = vmul.f32 %v9552_v9, %v526_v15 }
  0x4b   : > { %7924 = vmatprep.subr.bf16.mxu0 %v11802_v1  ;;  %4246 = vst [vmem:[#allocation2 + $0x38] sm:$0xf] %v9763_v14  ;;  %4261 = vst [vmem:[#allocation2 + $0x74] sm:$0xf] %v9763_v14  ;;  %v9557_v15 = vld [vmem:[%s11788_s5 + $0x118] sm:$0xff]  }
  0x4c   : > { %8149 = vmatpush3.bf16.msra.mxu1 %v9370_v20  ;;  %v9553_v20 = vld [vmem:[%s11787_s4] ss:$0 sm:$0xff] }
  0x4d   : > { %8150 = vmatprep.subr.bf16.mxu1 %v11802_v1  ;;  %v611_v18 = vadd.f32 %v9553_v20, %v568_v17  ;;  %v9558_v17 = vld [vmem:[%s11788_s5 + $0x120] sm:$0xff]  }
  0x4e   : > { %7925 = vmatpush3.bf16.msra.mxu0 %v9368_v4  ;;  %8107 = vmatmul.mubr.bf16.gmra.mrb[12].mxu1 %v10052_v21  ;;  %v9374_v34 = vld [vmem:[#allocation2] sm:$0xff]   ;;  %v10250_v4 = vld [vmem:[#allocation2 + $0x58] sm:$0xff]  }
  0x4f   : > { %7986 = vmatprep.subr.bf16.mxu0 %v11802_v1  ;;  %8110 = vmatprep.mubr.msk.bf16.mxu1 %vm9619_vm0, %v11802_v1  ;;  %11821 = vst [vmem:[#allocation4_spill] sm:$0xff] %v10250_v4  ;;  %v647_v19 = vmax.f32 %v611_v18, 0.0 }
  0x50   : > { %8151 = vmatpush3.bf16.msra.mxu1 %v9372_v23  ;;  %v527_v23 = vunpack.c.h.bf16 %v489_v13 }
  0x51   : > { %7867 = vmatmul.mubr.bf16.gmra.mrb[16].mxu0 %v9960_v26  ;;  %8152 = vmatprep.subr.bf16.mxu1 %v11802_v1 }
  0x52   : > { %7870 = vmatprep.mubr.msk.bf16.mxu0 %vm9619_vm0, %v11802_v1 }
  0x54   : > { %8153 = vmatpush3.bf16.msra.mxu1 %v9373_v24 }
  0x55   : > { %8214 = vmatprep.subr.bf16.mxu1 %v11802_v1 }
  0x56   : > { %8111 = vmatmul.mubr.bf16.gmra.mrb[16].mxu1 %v10068_v25 }
  0x57   : > { %8114 = vmatprep.mubr.msk.bf16.mxu1 %vm9619_vm0, %v11802_v1 }
  0x59   : > { %7871 = vmatmul.mubr.bf16.gmra.mrb[20].mxu0 %v9995_v49 }
  0x5a   : > { %7874 = vmatprep.mubr.msk.bf16.mxu0 %vm9619_vm0, %v11802_v1 }
  0x5e   : > { %8115 = vmatmul.mubr.bf16.gmra.mrb[20].mxu1 %v9357_v27 }
  0x5f   : > { %8118 = vmatprep.mubr.msk.bf16.mxu1 %vm9619_vm0, %v11802_v1 }
  0x61   : > { %7875 = vmatmul.mubr.bf16.gmra.mrb[24].mxu0 %v9353_v3  ;;  %v10246_v3 = vld [vmem:[#allocation2 + $0x58] sm:$0xff]  }
  0x62   : > { %7878 = vmatprep.mubr.msk.bf16.mxu0 %vm9619_vm0, %v11802_v1  ;;  %4255 = vst [vmem:[#allocation2 + $0x5c] sm:$0xf] %v9763_v14  ;;  %v662_v14 = vadd.s32 11, %v9746_v5 }
  0x64   : > { %vm674_vm4 = vcmp.ge.s32.totalorder %v662_v14, 0  ;;  %vm686_vm5 = vcmp.lt.s32.totalorder %v662_v14, 16 }
  0x65   : > { %vm698_vm6 = vmand %vm674_vm4, %vm686_vm5 }
  0x66   : > { %8119 = vmatmul.mubr.bf16.gmra.mrb[24].mxu1 %v10081_v28  ;;  %v870_v22 = vsel %vm698_vm6, %v647_v19, 0.0  ;;  %v9559_v19 = vld [vmem:[%s11788_s5 + $0x128] sm:$0xff]  }
  0x67   : > { %8122 = vmatprep.mubr.msk.bf16.mxu1 %vm9619_vm0, %v11802_v1  ;;  %v7308_v24 = vpack.c.bf16 %v870_v22, %v870_v22 }
  0x69   : > { %7879 = vmatmul.mubr.bf16.gmra.mrb[28].mxu0 %v10052_v21  ;;  %1062 = vst [vmem:[#allocation2 + $0x84] sm:$0xf] %v7308_v24  ;;  %v9560_v24 = vld [vmem:[%s11788_s5 + $0x130] sm:$0xff]  }
  0x6a   : > { %7882 = vmatprep.mubr.msk.bf16.mxu0 %vm9619_vm0, %v11802_v1 }
  0x6e   : > { %8123 = vmatmul.mubr.bf16.gmra.mrb[28].mxu1 %v10089_v29 }
  0x6f   : > { %8126 = vmatprep.mubr.msk.bf16.mxu1 %vm9619_vm0, %v11802_v1 }
  0x71   : > { %7883 = vmatmul.mubr.bf16.gmra.mrb[32].mxu0 %v10068_v25 }
  0x72   : > { %7886 = vmatprep.mubr.msk.bf16.mxu0 %vm9619_vm0, %v11802_v1 }
  0x76   : > { %8127 = vmatmul.mubr.bf16.gmra.mrb[32].mxu1 %v9364_v31 }
  0x77   : > { %8130 = vmatprep.mubr.msk.bf16.mxu1 %vm9619_vm0, %v11802_v1 }
  0x79   : > { %7887 = vmatmul.mubr.bf16.gmra.mrb[36].mxu0 %v9357_v27  ;;  %v569_v27 = vmul.f32 %v9552_v9, %v527_v23  ;;  %v9411_v23 = vld [vmem:[#allocation2 + $0x48] sm:$0xff]  }
  0x7a   : > { %7890 = vmatprep.mubr.msk.bf16.mxu0 %vm9619_vm0, %v11802_v1 }
  0x7b   : > { %v612_v5 = vadd.f32 %v9553_v20, %v569_v27 }
  0x7e   : > { %8131 = vmatmul.mubr.bf16.gmra.mrb[36].mxu1 %v10101_v32 }
  0x7f   : > { %8134 = vmatprep.mubr.msk.bf16.mxu1 %vm9619_vm0, %v11802_v1 }
  0x81   : > { %7891 = vmatmul.mubr.bf16.gmra.mrb[40].mxu0 %v10081_v28 }
  0x82   : > { %7894 = vmatprep.mubr.msk.bf16.mxu0 %vm9619_vm0, %v11802_v1 }
  0x86   : > { %8135 = vmatmul.mubr.bf16.gmra.mrb[40].mxu1 %v9371_v33 }
  0x87   : > { %8154 = vmatprep.mubr.msk.bf16.mxu1 %vm9619_vm0, %v11802_v1 }
  0x89   : > { %7895 = vmatmul.mubr.bf16.gmra.mrb[44].mxu0 %v10089_v29 }
  0x8a   : > { %7898 = vmatprep.mubr.msk.bf16.mxu0 %vm9619_vm0, %v11802_v1 }
  0x8e   : > { %8155 = vmatmul.mubr.bf16.vlgmr.msra.gmra.mrb[44].mxu1 %v9374_v34 }
  0x8f   : > { %8158 = vmatprep.mubr.msk.bf16.mxu1 %vm9619_vm0, %v11802_v1  ;;  %8215 = vmatpush3.bf16.msra.mxu1 %v9392_v35  ;;  %v9405_v35 = vld [vmem:[#allocation2 + $0x18] sm:$0xff]  }
  0x90   : > { %8216 = vmatprep.subr.bf16.mxu1 %v11802_v1 }
  0x91   : > { %7899 = vmatmul.mubr.bf16.gmra.mrb[48].mxu0 %v9364_v31  ;;  %v648_v31 = vmax.f32 %v612_v5, 0.0 }
  0x92   : > { %7902 = vmatprep.mubr.msk.bf16.mxu0 %vm9619_vm0, %v11802_v1 }
  0x93   : > { %8217 = vmatpush3.bf16.msra.mxu1 %v9394_v36 }
  0x94   : > { %8218 = vmatprep.subr.bf16.mxu1 %v11802_v1 }
  0x96   : > { %8159 = vmatmul.mubr.bf16.gmra.mrb[48].mxu1 %v10023_v8 }
  0x97   : > { %8162 = vmatprep.mubr.msk.bf16.mxu1 %vm9619_vm0, %v11802_v1  ;;  %8219 = vmatpush3.bf16.msra.mxu1 %v9396_v37 }
  0x98   : > { %8220 = vmatprep.subr.bf16.mxu1 %v11802_v1 }
  0x99   : > { %7903 = vmatmul.mubr.bf16.gmra.mrb[52].mxu0 %v10101_v32 }
  0x9a   : > { %7906 = vmatprep.mubr.msk.bf16.mxu0 %vm9619_vm0, %v11802_v1 }
  0x9b   : > { %8221 = vmatpush3.bf16.msra.mxu1 %v9397_v38 }
  0x9c   : > { %8222 = vmatprep.subr.bf16.mxu1 %v11802_v1 }
  0x9e   : > { %8163 = vmatmul.mubr.bf16.gmra.mrb[52].mxu1 %v10038_v16 }
  0x9f   : > { %8166 = vmatprep.mubr.msk.bf16.mxu1 %vm9619_vm0, %v11802_v1  ;;  %8223 = vmatpush3.bf16.msra.mxu1 %v9400_v40 }
  0xa0   : > { %8224 = vmatprep.subr.bf16.mxu1 %v11802_v1 }
  0xa1   : > { %7907 = vmatmul.mubr.bf16.gmra.mrb[56].mxu0 %v9371_v33  ;;  %v871_v33 = vsel %vm698_vm6, %v648_v31, 0.0 }
  0xa2   : > { %7926 = vmatprep.mubr.msk.bf16.mxu0 %vm9619_vm0, %v11802_v1 }
  0xa3   : > { %8225 = vmatpush3.bf16.msra.mxu1 %v9401_v43  ;;  %v9554_v43 = vld [vmem:[%s11788_s5 + $0x100] sm:$0xff]  }
  0xa4   : > { %8226 = vmatprep.subr.bf16.mxu1 %v11802_v1 }
  0xa6   : > { %8167 = vmatmul.mubr.bf16.gmra.mrb[56].mxu1 %v9379_v45 }
  0xa7   : > { %8170 = vmatprep.mubr.msk.bf16.mxu1 %vm9619_vm0, %v11802_v1  ;;  %8227 = vmatpush3.bf16.msra.mxu1 %v9403_v47 }
  0xa8   : > { %8228 = vmatprep.subr.bf16.mxu1 %v11802_v1 }
  0xa9   : > { %7927 = vmatmul.mubr.bf16.vlgmr.msra.gmra.mrb[0].mxu0 %v9374_v34  ;;  %v7309_v34 = vpack.c.bf16 %v871_v33, %v871_v33  ;;  %v9561_v33 = vld [vmem:[%s11788_s5 + $0x138] sm:$0xff]  }
  0xaa   : > { %7987 = vmatpush3.bf16.msra.mxu0 %v9375_v42  ;;  %7930 = vmatprep.mubr.msk.bf16.mxu0 %vm9619_vm0, %v11802_v1 }
  0xab   : > { %7988 = vmatprep.subr.bf16.mxu0 %v11802_v1  ;;  %8229 = vmatpush3.bf16.msra.mxu1 %v9404_v51  ;;  %1063 = vst [vmem:[#allocation2 + $0x88] sm:$0xf] %v7309_v34 }
  0xae   : > { %7989 = vmatpush3.bf16.msra.mxu0 %v9378_v44  ;;  %8171 = vmatmul.mubr.bf16.gmra.mrb[60].mxu1 %v10135_v39  ;;  %v9408_v44 = vld [vmem:[#allocation2 + $0x30] sm:$0xff]  }
  0xaf   : > { %7990 = vmatprep.subr.bf16.mxu0 %v11802_v1  ;;  %8174 = vmatprep.mubr.msk.bf16.mxu1 %vm9619_vm0, %v11802_v1 }
  0xb1   : > { %7931 = vmatmul.mubr.bf16.gmra.mrb[4].mxu0 %v10023_v8 }
  0xb2   : > { %7934 = vmatprep.mubr.msk.bf16.mxu0 %vm9619_vm0, %v11802_v1  ;;  %7991 = vmatpush3.bf16.msra.mxu0 %v9380_v50 }
  0xb3   : > { %7992 = vmatprep.subr.bf16.mxu0 %v11802_v1 }
  0xb6   : > { %7993 = vmatpush3.bf16.msra.mxu0 %v9383_v52  ;;  %8175 = vmatmul.mubr.bf16.gmra.mrb[64].mxu1 %v10159_v46  ;;  %v9555_v52 = vld [vmem:[%s11788_s5 + $0x108] sm:$0xff]  }
  0xb7   : > { %7994 = vmatprep.subr.bf16.mxu0 %v11802_v1  ;;  %8178 = vmatprep.mubr.msk.bf16.mxu1 %vm9619_vm0, %v11802_v1 }
  0xb9   : > { %7935 = vmatmul.mubr.bf16.gmra.mrb[8].mxu0 %v10038_v16 }
  0xba   : > { %7938 = vmatprep.mubr.msk.bf16.mxu0 %vm9619_vm0, %v11802_v1  ;;  %7995 = vmatpush3.bf16.msra.mxu0 %v9386_v54 }
  0xbb   : > { %7996 = vmatprep.subr.bf16.mxu0 %v11802_v1 }
  0xbe   : > { %7997 = vmatpush3.bf16.msra.mxu0 %v9389_v56  ;;  %8179 = vmatmul.mubr.bf16.gmra.mrb[68].mxu1 %v9384_v59 }
  0xbf   : > { %7998 = vmatprep.subr.bf16.mxu0 %v11802_v1  ;;  %8182 = vmatprep.mubr.msk.bf16.mxu1 %vm9619_vm0, %v11802_v1 }
  0xc1   : > { %7939 = vmatmul.mubr.bf16.gmra.mrb[12].mxu0 %v9379_v45 }
  0xc2   : > { %7942 = vmatprep.mubr.msk.bf16.mxu0 %vm9619_vm0, %v11802_v1  ;;  %7999 = vmatpush3.bf16.msra.mxu0 %v9393_v58 }
  0xc3   : > { %8000 = vmatprep.subr.bf16.mxu0 %v11802_v1 }
  0xc6   : > { %8001 = vmatpush3.bf16.msra.mxu0 %v9399_v61  ;;  %8183 = vmatmul.mubr.bf16.gmra.mrb[72].mxu1 %v10199_v55  ;;  %v9556_v61 = vld [vmem:[%s11788_s5 + $0x110] sm:$0xff]  }
  0xc7   : > { %8062 = vmatprep.subr.bf16.mxu0 %v11802_v1  ;;  %8186 = vmatprep.mubr.msk.bf16.mxu1 %vm9619_vm0, %v11802_v1 }
  0xc9   : > { %7943 = vmatmul.mubr.bf16.gmra.mrb[16].mxu0 %v10135_v39 }
  0xca   : > { %7946 = vmatprep.mubr.msk.bf16.mxu0 %vm9619_vm0, %v11802_v1 }
  0xce   : > { %8187 = vmatmul.mubr.bf16.gmra.mrb[76].mxu1 %v10215_v60 }
  0xcf   : > { %8190 = vmatprep.mubr.msk.bf16.mxu1 %vm9619_vm0, %v11802_v1 }
  0xd1   : > { %7947 = vmatmul.mubr.bf16.gmra.mrb[20].mxu0 %v10159_v46 }
  0xd2   : > { %7950 = vmatprep.mubr.msk.bf16.mxu0 %vm9619_vm0, %v11802_v1 }
  0xd6   : > { %8191 = vmatmul.mubr.bf16.gmra.mrb[80].mxu1 %v9388_v2 }
  0xd7   : > { %8194 = vmatprep.mubr.msk.bf16.mxu1 %vm9619_vm0, %v11802_v1 }
  0xd9   : > { %7951 = vmatmul.mubr.bf16.gmra.mrb[24].mxu0 %v9384_v59 }
  0xda   : > { %7954 = vmatprep.mubr.msk.bf16.mxu0 %vm9619_vm0, %v11802_v1 }
  0xde   : > { %8195 = vmatmul.mubr.bf16.gmra.mrb[84].mxu1 %v10238_v63 }
  0xdf   : > { %8198 = vmatprep.mubr.msk.bf16.mxu1 %vm9619_vm0, %v11802_v1 }
  0xe1   : > { %7955 = vmatmul.mubr.bf16.gmra.mrb[28].mxu0 %v10199_v55 }
  0xe2   : > { %7958 = vmatprep.mubr.msk.bf16.mxu0 %vm9619_vm0, %v11802_v1 }
  0xe6   : > { %8199 = vmatmul.mubr.bf16.gmra.mrb[88].mxu1 %v10246_v3 }
  0xe7   : > { %8202 = vmatprep.mubr.msk.bf16.mxu1 %vm9619_vm0, %v11802_v1 }
  0xe9   : > { %7959 = vmatmul.mubr.bf16.gmra.mrb[32].mxu0 %v10215_v60 }
  0xea   : > { %7962 = vmatprep.mubr.msk.bf16.mxu0 %vm9619_vm0, %v11802_v1 }
  0xee   : > { %8203 = vmatmul.mubr.bf16.gmra.mrb[92].mxu1 %v9395_v10 }
  0xef   : > { %8206 = vmatprep.mubr.msk.bf16.mxu1 %vm9619_vm0, %v11802_v1 }
  0xf1   : > { %7963 = vmatmul.mubr.bf16.gmra.mrb[36].mxu0 %v9388_v2 }
  0xf2   : > { %7966 = vmatprep.mubr.msk.bf16.mxu0 %vm9619_vm0, %v11802_v1 }
  0xf6   : > { %8207 = vmatmul.mubr.bf16.gmra.mrb[96].mxu1 %v10264_v6 }
  0xf7   : > { %8210 = vmatprep.mubr.msk.bf16.mxu1 %vm9619_vm0, %v11802_v1 }
  0xf9   : > { %7967 = vmatmul.mubr.bf16.gmra.mrb[40].mxu0 %v10238_v63 }
  0xfa   : > { %7970 = vmatprep.mubr.msk.bf16.mxu0 %vm9619_vm0, %v11802_v1 }
  0xfe   : > { %8211 = vmatmul.mubr.bf16.gmra.mrb[100].mxu1 %v10272_v11 }
  0xff   : > { %8230 = vmatprep.mubr.msk.bf16.mxu1 %vm9619_vm0, %v11802_v1 }
 0x101   : > { %7971 = vmatmul.mubr.bf16.gmra.mrb[44].mxu0 %v10246_v3 }
 0x102   : > { %7974 = vmatprep.mubr.msk.bf16.mxu0 %vm9619_vm0, %v11802_v1 }
 0x106   : > { %8231 = vmatmul.mubr.bf16.vlgmr.msra.gmra.mrb[104].mxu1 %v9405_v35 }
 0x107   : > { %8234 = vmatprep.mubr.msk.bf16.mxu1 %vm9619_vm0, %v11802_v1 }
 0x109   : > { %7975 = vmatmul.mubr.bf16.gmra.mrb[48].mxu0 %v9395_v10  ;;  %v2349_v36 = vpop.f32.mrb[0].mxu1 }
 0x10a   : > { %7978 = vmatprep.mubr.msk.bf16.mxu0 %vm9619_vm0, %v11802_v1  ;;  %v8096_v37 = vpop.f32.mrb[1].mxu1 }
 0x10b   : > { %v10315_v38 = vpop.f32.mrb[2].mxu1 }
 0x10c   : > { %v8097_v40 = vpop.f32.mrb[3].mxu1 }
 0x10e   : > { %8235 = vmatmul.mubr.bf16.gmra.mrb[108].mxu1 %v10143_v41 }
 0x10f   : > { %8238 = vmatprep.mubr.msk.bf16.mxu1 %vm9619_vm0, %v11802_v1 }
 0x111   : > { %7979 = vmatmul.mubr.bf16.gmra.mrb[52].mxu0 %v10264_v6  ;;  %v10319_v42 = vpop.f32.mrb[4].mxu1 }
 0x112   : > { %7982 = vmatprep.mubr.msk.bf16.mxu0 %vm9619_vm0, %v11802_v1  ;;  %v8100_v45 = vpop.f32.mrb[5].mxu1 }
 0x113   : > { %v2360_v47 = vpop.f32.mrb[6].mxu1 }
 0x114   : > { %v8101_v50 = vpop.f32.mrb[7].mxu1 }
 0x115   : > { %v9414_v50 = vld [vmem:[#allocation2 + $0x60] sm:$0xff]  }
 0x116   : > { %8239 = vmatmul.mubr.bf16.gmra.mrb[112].mxu1 %v10167_v48 }
 0x117   : > { %8242 = vmatprep.mubr.msk.bf16.mxu1 %vm9619_vm0, %v11802_v1 }
 0x119   : > { %7983 = vmatmul.mubr.bf16.gmra.mrb[56].mxu0 %v10272_v11  ;;  %v10327_v51 = vpop.f32.mrb[8].mxu1 }
 0x11a   : > { %8002 = vmatprep.mubr.msk.bf16.mxu0 %vm9619_vm0, %v11802_v1  ;;  %v8104_v54 = vpop.f32.mrb[9].mxu1 }
 0x11b   : > { %v10335_v56 = vpop.f32.mrb[10].mxu1 }
 0x11c   : > { %v8105_v58 = vpop.f32.mrb[11].mxu1 }
 0x11e   : > { %8243 = vmatmul.mubr.bf16.gmra.mrb[116].mxu1 %v9408_v44 }
 0x11f   : > { %8246 = vmatprep.mubr.msk.bf16.mxu1 %vm9619_vm0, %v11802_v1 }
 0x121   : > { %8003 = vmatmul.mubr.bf16.vlgmr.msra.gmra.mrb[0].mxu0 %v9405_v35  ;;  %v2373_v59 = vpop.f32.mrb[12].mxu1 }
 0x122   : > { %8063 = vmatpush3.bf16.msra.mxu0 %v9554_v43  ;;  %8006 = vmatprep.mubr.msk.bf16.mxu0 %vm9619_vm0, %v11802_v1  ;;  %v8108_v2 = vpop.f32.mrb[13].mxu1 }
 0x123   : > { %8064 = vmatprep.subr.bf16.mxu0 %v11802_v1  ;;  %v10344_v10 = vpop.f32.mrb[14].mxu1 }
 0x124   : > { %v8109_v13 = vpop.f32.mrb[15].mxu1 }
 0x126   : > { %8065 = vmatpush3.bf16.msra.mxu0 %v9555_v52  ;;  %8247 = vmatmul.mubr.bf16.gmra.mrb[120].mxu1 %v10204_v57 }
 0x127   : > { %8066 = vmatprep.subr.bf16.mxu0 %v11802_v1  ;;  %8250 = vmatprep.mubr.msk.bf16.mxu1 %vm9619_vm0, %v11802_v1 }
 0x129   : > { %8007 = vmatmul.mubr.bf16.gmra.mrb[4].mxu0 %v10143_v41  ;;  %v10354_v9 = vpop.f32.mrb[16].mxu1 }
 0x12a   : > { %8010 = vmatprep.mubr.msk.bf16.mxu0 %vm9619_vm0, %v11802_v1  ;;  %8067 = vmatpush3.bf16.msra.mxu0 %v9556_v61  ;;  %v8112_v20 = vpop.f32.mrb[17].mxu1 }
 0x12b   : > { %8068 = vmatprep.subr.bf16.mxu0 %v11802_v1  ;;  %v2384_v18 = vpop.f32.mrb[18].mxu1 }
 0x12c   : > { %v8113_v14 = vpop.f32.mrb[19].mxu1 }
 0x12e   : > { %8069 = vmatpush3.bf16.msra.mxu0 %v9557_v15  ;;  %8251 = vmatmul.mubr.bf16.gmra.mrb[124].mxu1 %v10222_v62 }
 0x12f   : > { %8070 = vmatprep.subr.bf16.mxu0 %v11802_v1  ;;  %8254 = vmatprep.mubr.msk.bf16.mxu1 %vm9619_vm0, %v11802_v1 }
 0x131   : > { %8011 = vmatmul.mubr.bf16.gmra.mrb[8].mxu0 %v10167_v48  ;;  %v10369_v22 = vpop.f32.mrb[20].mxu1 }
 0x132   : > { %8014 = vmatprep.mubr.msk.bf16.mxu0 %vm9619_vm0, %v11802_v1  ;;  %8071 = vmatpush3.bf16.msra.mxu0 %v9558_v17  ;;  %v8116_v27 = vpop.f32.mrb[21].mxu1 }
 0x133   : > { %8072 = vmatprep.subr.bf16.mxu0 %v11802_v1  ;;  %v10377_v5 = vpop.f32.mrb[22].mxu1 }
 0x134   : > { %v8117_v31 = vpop.f32.mrb[23].mxu1 }
 0x136   : > { %8073 = vmatpush3.bf16.msra.mxu0 %v9559_v19  ;;  %8255 = vmatmul.mubr.bf16.gmra.mrb[128].mxu1 %v9411_v23  ;;  %v10429_v19 = vld [vmem:[#allocation2 + $0x78] sm:$0xff]  }
 0x137   : > { %8074 = vmatprep.subr.bf16.mxu0 %v11802_v1  ;;  %8258 = vmatprep.mubr.msk.bf16.mxu1 %vm9619_vm0, %v11802_v1  ;;  %11824 = vst [vmem:[#allocation7_spill] sm:$0xff] %v10429_v19 }
 0x139   : > { %8015 = vmatmul.mubr.bf16.gmra.mrb[12].mxu0 %v9408_v44  ;;  %v2397_v34 = vpop.f32.mrb[24].mxu1 }
 0x13a   : > { %8018 = vmatprep.mubr.msk.bf16.mxu0 %vm9619_vm0, %v11802_v1  ;;  %8075 = vmatpush3.bf16.msra.mxu0 %v9560_v24  ;;  %v8120_v35 = vpop.f32.mrb[25].mxu1 }
 0x13b   : > { %8076 = vmatprep.subr.bf16.mxu0 %v11802_v1  ;;  %v10388_v36 = vpop.f32.mrb[26].mxu1 }
 0x13c   : > { %v8121_v37 = vpop.f32.mrb[27].mxu1 }
 0x13e   : > { %8077 = vmatpush3.bf16.msra.mxu0 %v9561_v33  ;;  %8259 = vmatmul.mubr.bf16.gmra.mrb[132].mxu1 %v10240_v0  ;;  %v10439_v33 = vld [vmem:[#allocation2 + $0x80] sm:$0xff]  }
 0x13f   : > { %8290 = vmatprep.subr.bf16.mxu0 %v11802_v1  ;;  %8262 = vmatprep.mubr.msk.bf16.mxu1 %vm9619_vm0, %v11802_v1  ;;  %11825 = vst [vmem:[#allocation8_spill] sm:$0xff] %v10439_v33 }
 0x141   : > { %8019 = vmatmul.mubr.bf16.gmra.mrb[16].mxu0 %v10204_v57  ;;  %v10394_v40 = vpop.f32.mrb[28].mxu1 }
 0x142   : > { %8022 = vmatprep.mubr.msk.bf16.mxu0 %vm9619_vm0, %v11802_v1  ;;  %v8124_v43 = vpop.f32.mrb[29].mxu1 }
 0x143   : > { %v2408_v44 = vpop.f32.mrb[30].mxu1 }
 0x144   : > { %v8125_v45 = vpop.f32.mrb[31].mxu1  ;;  %v10451_v44 = vld [vmem:[#allocation2 + $0x88] sm:$0xff]  }
 0x145   : > { %11826 = vst [vmem:[#allocation9_spill] sm:$0xff] %v10451_v44 }
 0x146   : > { %8263 = vmatmul.mubr.bf16.gmra.mrb[136].mxu1 %v10250_v4 }
 0x147   : > { %8266 = vmatprep.mubr.msk.bf16.mxu1 %vm9619_vm0, %v11802_v1 }
 0x149   : > { %8023 = vmatmul.mubr.bf16.gmra.mrb[20].mxu0 %v10222_v62  ;;  %v10401_v47 = vpop.f32.mrb[32].mxu1 }
 0x14a   : > { %8026 = vmatprep.mubr.msk.bf16.mxu0 %vm9619_vm0, %v11802_v1  ;;  %v8128_v52 = vpop.f32.mrb[33].mxu1 }
 0x14b   : > { %v10405_v54 = vpop.f32.mrb[34].mxu1 }
 0x14c   : > { %v8129_v58 = vpop.f32.mrb[35].mxu1 }
 0x14e   : > { %8267 = vmatmul.mubr.bf16.gmra.mrb[140].mxu1 %v9414_v50 }
 0x14f   : > { %8270 = vmatprep.mubr.msk.bf16.mxu1 %vm9619_vm0, %v11802_v1 }
 0x151   : > { %8027 = vmatmul.mubr.bf16.gmra.mrb[24].mxu0 %v9411_v23  ;;  %v2421_v59 = vpop.f32.mrb[36].mxu1 }
 0x152   : > { %8030 = vmatprep.mubr.msk.bf16.mxu0 %vm9619_vm0, %v11802_v1  ;;  %v8132_v61 = vpop.f32.mrb[37].mxu1 }
 0x153   : > { %v10412_v2 = vpop.f32.mrb[38].mxu1 }
 0x154   : > { %v8133_v13 = vpop.f32.mrb[39].mxu1 }
 0x156   : > { %8271 = vmatmul.mubr.bf16.gmra.mrb[144].mxu1 %v10266_v7 }
 0x157   : > { %8274 = vmatprep.mubr.msk.bf16.mxu1 %vm9619_vm0, %v11802_v1 }
 0x159   : > { %8031 = vmatmul.mubr.bf16.gmra.mrb[28].mxu0 %v10240_v0  ;;  %v10418_v15 = vpop.f32.mrb[40].mxu1 }
 0x15a   : > { %8034 = vmatprep.mubr.msk.bf16.mxu0 %vm9619_vm0, %v11802_v1  ;;  %v8136_v17 = vpop.f32.mrb[41].mxu1 }
 0x15b   : > { %v2432_v20 = vpop.f32.mrb[42].mxu1 }
 0x15c   : > { %v8137_v18 = vpop.f32.mrb[43].mxu1 }
 0x15e   : > { %8275 = vmatmul.mubr.bf16.gmra.mrb[148].mxu1 %v10276_v12 }
 0x15f   : > { %8278 = vmatprep.mubr.msk.bf16.mxu1 %vm9619_vm0, %v11802_v1 }
 0x161   : > { %8035 = vmatmul.mubr.bf16.gmra.mrb[32].mxu0 %v10250_v4  ;;  %v10425_v14 = vpop.f32.mrb[44].mxu1 }
 0x162   : > { %8038 = vmatprep.mubr.msk.bf16.mxu0 %vm9619_vm0, %v11802_v1  ;;  %v8156_v23 = vpop.f32.mrb[45].mxu1 }
 0x163   : > { %v10431_v24 = vpop.f32.mrb[46].mxu1 }
 0x164   : > { %v8157_v27 = vpop.f32.mrb[47].mxu1 }
 0x166   : > { %8279 = vmatmul.mubr.bf16.gmra.mrb[152].mxu1 %v10429_v19 }
 0x167   : > { %8282 = vmatprep.mubr.msk.bf16.mxu1 %vm9619_vm0, %v11802_v1 }
 0x169   : > { %8039 = vmatmul.mubr.bf16.gmra.mrb[36].mxu0 %v9414_v50  ;;  %v2526_v31 = vpop.f32.mrb[48].mxu1 }
 0x16a   : > { %8042 = vmatprep.mubr.msk.bf16.mxu0 %vm9619_vm0, %v11802_v1  ;;  %v8160_v34 = vpop.f32.mrb[49].mxu1 }
 0x16b   : > { %v10441_v35 = vpop.f32.mrb[50].mxu1 }
 0x16c   : > { %v8161_v37 = vpop.f32.mrb[51].mxu1 }
 0x16e   : > { %8283 = vmatmul.mubr.bf16.gmra.mrb[156].mxu1 %v10439_v33 }
 0x16f   : > { %8286 = vmatprep.mubr.msk.bf16.mxu1 %vm9619_vm0, %v11802_v1 }
 0x171   : > { %8043 = vmatmul.mubr.bf16.gmra.mrb[40].mxu0 %v10266_v7  ;;  %v10447_v43 = vpop.f32.mrb[52].mxu1 }
 0x172   : > { %8046 = vmatprep.mubr.msk.bf16.mxu0 %vm9619_vm0, %v11802_v1  ;;  %v8164_v45 = vpop.f32.mrb[53].mxu1 }
 0x173   : > { %v2537_v50 = vpop.f32.mrb[54].mxu1 }
 0x174   : > { %v8165_v52 = vpop.f32.mrb[55].mxu1 }
 0x175   : > { %v9420_v52 = vld [vmem:[%s11788_s5 + $0x140] sm:$0xff]  }
 0x176   : > { %8287 = vmatmul.mubr.bf16.gmra.mrb[160].mxu1 %v10451_v44 }
 0x179   : > { %8047 = vmatmul.mubr.bf16.gmra.mrb[44].mxu0 %v10276_v12  ;;  %v10455_v58 = vpop.f32.mrb[56].mxu1 }
 0x17a   : > { %8050 = vmatprep.mubr.msk.bf16.mxu0 %vm9619_vm0, %v11802_v1  ;;  %v8168_v59 = vpop.f32.mrb[57].mxu1 }
 0x17b   : > { %v10459_v61 = vpop.f32.mrb[58].mxu1  ;;  %v9562_v59 = vld [vmem:[#allocation2 + $0xc] sm:$0xff]  }
 0x17c   : > { %v8169_v13 = vpop.f32.mrb[59].mxu1 }
 0x17d   : > { %v9421_v13 = vld [vmem:[%s11788_s5 + $0x148] sm:$0xff]  }
 0x181   : > { %8051 = vmatmul.mubr.bf16.gmra.mrb[48].mxu0 %v10429_v19  ;;  %v2550_v17 = vpop.f32.mrb[60].mxu1 }
 0x182   : > { %8054 = vmatprep.mubr.msk.bf16.mxu0 %vm9619_vm0, %v11802_v1  ;;  %v8172_v20 = vpop.f32.mrb[61].mxu1 }
 0x183   : > { %v2553_v18 = vpop.f32.mrb[62].mxu1 }
 0x184   : > { %v10465_v23 = vadd.f32 %v2553_v18, %v10315_v38  ;;  %v8173_v27 = vpop.f32.mrb[63].mxu1 }
 0x189   : > { %8055 = vmatmul.mubr.bf16.gmra.mrb[52].mxu0 %v10439_v33  ;;  %v2558_v31 = vpop.f32.mrb[64].mxu1 }
 0x18a   : > { %8058 = vmatprep.mubr.msk.bf16.mxu0 %vm9619_vm0, %v11802_v1  ;;  %v10471_v34 = vadd.f32 %v2558_v31, %v10319_v42  ;;  %v8176_v37 = vpop.f32.mrb[65].mxu1  ;;  %v9422_v31 = vld [vmem:[%s11788_s5 + $0x150] sm:$0xff]  }
 0x18b   : > { %v2561_v45 = vpop.f32.mrb[66].mxu1 }
 0x18c   : > { %v8177_v50 = vpop.f32.mrb[67].mxu1 }
 0x191   : > { %8059 = vmatmul.mubr.bf16.gmra.mrb[56].mxu0 %v10451_v44  ;;  %v2566_v38 = vpop.f32.mrb[68].mxu1 }
 0x192   : > { %8078 = vmatprep.mubr.msk.bf16.mxu0 %vm9619_vm0, %v11802_v1  ;;  %v10482_v42 = vadd.f32 %v2566_v38, %v10327_v51  ;;  %v8180_v17 = vpop.f32.mrb[69].mxu1  ;;  %v9423_v51 = vld [vmem:[%s11788_s5 + $0x158] sm:$0xff]   ;;  %v9424_v38 = vld [vmem:[%s11788_s5 + $0x160] sm:$0xff]  }
 0x193   : > { %v2569_v20 = vpop.f32.mrb[70].mxu1  ;;  %v9425_v17 = vld [vmem:[%s11788_s5 + $0x168] sm:$0xff]  }
 0x194   : > { %v10486_v18 = vadd.f32 %v2569_v20, %v10335_v56  ;;  %v8181_v27 = vpop.f32.mrb[71].mxu1 }
 0x199   : > { %8079 = vmatmul.mubr.bf16.vlgmr.msra.gmra.mrb[60].mxu0 %v9562_v59  ;;  %v2574_v37 = vpop.f32.mrb[72].mxu1 }
 0x19a   : > { %8291 = vmatpush3.bf16.msra.mxu0 %v9420_v52  ;;  %8082 = vmatprep.mubr.msk.bf16.mxu0 %vm9619_vm0, %v11802_v1  ;;  %v8184_v56 = vpop.f32.mrb[73].mxu1  ;;  %v9426_v37 = vld [vmem:[%s11788_s5 + $0x170] sm:$0xff]  }
 0x19b   : > { %8292 = vmatprep.subr.bf16.mxu0 %v11802_v1  ;;  %v2577_v45 = vpop.f32.mrb[74].mxu1 }
 0x19c   : > { %v10500_v50 = vadd.f32 %v2577_v45, %v10344_v10  ;;  %v8185_v52 = vpop.f32.mrb[75].mxu1 }
 0x19e   : > { %8293 = vmatpush3.bf16.msra.mxu0 %v9421_v13 }
 0x19f   : > { %8294 = vmatprep.subr.bf16.mxu0 %v11802_v1 }
 0x1a1   : > { %8083 = vmatmul.mubr.bf16.gmra.mrb[64].mxu0 %v9917_v53  ;;  %v2582_v13 = vpop.f32.mrb[76].mxu1 }
 0x1a2   : > { %8295 = vmatpush3.bf16.msra.mxu0 %v9422_v31  ;;  %8086 = vmatprep.mubr.msk.bf16.mxu0 %vm9619_vm0, %v11802_v1  ;;  %v10513_v10 = vadd.f32 %v2582_v13, %v10354_v9  ;;  %v8188_v20 = vpop.f32.mrb[77].mxu1  ;;  %v9427_v9 = vld [vmem:[%s11788_s5 + $0x178] sm:$0xff]  }
 0x1a3   : > { %8296 = vmatprep.subr.bf16.mxu0 %v11802_v1  ;;  %v2585_v27 = vpop.f32.mrb[78].mxu1  ;;  %v9428_v20 = vld [vmem:[%s11788_s5 + $0x80] sm:$0xff]  }
 0x1a4   : > { %v8189_v31 = vpop.f32.mrb[79].mxu1 }
 0x1a6   : > { %8297 = vmatpush3.bf16.msra.mxu0 %v9423_v51  ;;  %v9563_v51 = vld [vmem:[#allocation2 + $0x24] sm:$0xff]  }
 0x1a7   : > { %8298 = vmatprep.subr.bf16.mxu0 %v11802_v1 }
 0x1a9   : > { %8087 = vmatmul.mubr.bf16.gmra.mrb[68].mxu0 %v9964_v30  ;;  %v2590_v56 = vpop.f32.mrb[80].mxu1 }
 0x1aa   : > { %8299 = vmatpush3.bf16.msra.mxu0 %v9424_v38  ;;  %8090 = vmatprep.mubr.msk.bf16.mxu0 %vm9619_vm0, %v11802_v1  ;;  %v10526_v45 = vadd.f32 %v2590_v56, %v10369_v22  ;;  %v8192_v52 = vpop.f32.mrb[81].mxu1  ;;  %v9429_v22 = vld [vmem:[%s11788_s5 + $0x88] sm:$0xff]  }
 0x1ab   : > { %8300 = vmatprep.subr.bf16.mxu0 %v11802_v1  ;;  %v2593_v38 = vpop.f32.mrb[82].mxu1 }
 0x1ac   : > { %v10530_v13 = vadd.f32 %v2593_v38, %v10377_v5 }
 0x1ae   : > { %8301 = vmatpush3.bf16.msra.mxu0 %v9425_v17  ;;  %v8193_v17 = vpop.f32.mrb[83].mxu1 }
 0x1af   : > { %8302 = vmatprep.subr.bf16.mxu0 %v11802_v1 }
 0x1b1   : > { %8091 = vmatmul.mubr.bf16.gmra.mrb[72].mxu0 %v9563_v51  ;;  %v2598_v27 = vpop.f32.mrb[84].mxu1 }
 0x1b2   : > { %8303 = vmatpush3.bf16.msra.mxu0 %v9426_v37  ;;  %8306 = vmatprep.mubr.msk.bf16.mxu0 %vm9619_vm0, %v11802_v1  ;;  %v8196_v5 = vpop.f32.mrb[85].mxu1 }
 0x1b3   : > { %8304 = vmatprep.subr.bf16.mxu0 %v11802_v1  ;;  %v2601_v31 = vpop.f32.mrb[86].mxu1  ;;  %v9433_v5 = vld [vmem:[%s11788_s5 + $0xa8] sm:$0xff]  }
 0x1b4   : > { %v10543_v37 = vadd.f32 %v2601_v31, %v10388_v36  ;;  %v8197_v56 = vpop.f32.mrb[87].mxu1  ;;  %v9431_v36 = vld [vmem:[%s11788_s5 + $0x98] sm:$0xff]  }
 0x1b6   : > { %8305 = vmatpush3.bf16.msra.mxu0 %v9427_v9 }
 0x1b7   : > { %8366 = vmatprep.subr.bf16.mxu0 %v11802_v1 }
 0x1b9   : > { %8307 = vmatmul.mubr.bf16.vlgmr.msra.gmra.mrb[76].mxu0 %v9562_v59  ;;  %v9430_v59 = vld [vmem:[%s11788_s5 + $0x90] sm:$0xff]   ;;  %v2606_v9 = vpop.f32.mrb[88].mxu1 }
 0x1ba   : > { %8367 = vmatpush3.bf16.msra.mxu0 %v9428_v20  ;;  %8310 = vmatprep.mubr.msk.bf16.mxu0 %vm9619_vm0, %v11802_v1  ;;  %v10556_v52 = vadd.f32 %v2606_v9, %v10394_v40  ;;  %v8200_v38 = vpop.f32.mrb[89].mxu1 }
 0x1bb   : > { %8368 = vmatprep.subr.bf16.mxu0 %v11802_v1  ;;  %v2609_v17 = vpop.f32.mrb[90].mxu1 }
 0x1bc   : > { %v8201_v20 = vpop.f32.mrb[91].mxu1 }
 0x1be   : > { %8369 = vmatpush3.bf16.msra.mxu0 %v9429_v22 }
 0x1bf   : > { %8370 = vmatprep.subr.bf16.mxu0 %v11802_v1 }
 0x1c1   : > { %8311 = vmatmul.mubr.bf16.gmra.mrb[80].mxu0 %v9917_v53  ;;  %v9432_v53 = vld [vmem:[%s11788_s5 + $0xa0] sm:$0xff]   ;;  %v2614_v27 = vpop.f32.mrb[92].mxu1 }
 0x1c2   : > { %8314 = vmatprep.mubr.msk.bf16.mxu0 %vm9619_vm0, %v11802_v1  ;;  %8371 = vmatpush3.bf16.msra.mxu0 %v9430_v59  ;;  %v10567_v40 = vadd.f32 %v2614_v27, %v10401_v47  ;;  %v8204_v22 = vpop.f32.mrb[93].mxu1  ;;  %v9434_v59 = vld [vmem:[%s11788_s5 + $0xb0] sm:$0xff]  }
 0x1c3   : > { %8372 = vmatprep.subr.bf16.mxu0 %v11802_v1  ;;  %v2617_v31 = vpop.f32.mrb[94].mxu1 }
 0x1c4   : > { %v10574_v56 = vadd.f32 %v2617_v31, %v10405_v54  ;;  %v9435_v54 = vld [vmem:[%s11788_s5 + $0xb8] sm:$0xff]  }
 0x1c6   : > { %8373 = vmatpush3.bf16.msra.mxu0 %v9431_v36 }
 0x1c7   : > { %8374 = vmatprep.subr.bf16.mxu0 %v11802_v1 }
 0x1c9   : > { %8315 = vmatmul.mubr.bf16.gmra.mrb[84].mxu0 %v9964_v30  ;;  %v8205_v30 = vpop.f32.mrb[95].mxu1 }
 0x1ca   : > { %8318 = vmatprep.mubr.msk.bf16.mxu0 %vm9619_vm0, %v11802_v1  ;;  %8375 = vmatpush3.bf16.msra.mxu0 %v9432_v53  ;;  %v2622_v47 = vpop.f32.mrb[96].mxu1  ;;  %v9564_v30 = vld [vmem:[#allocation2 + $0x3c] sm:$0xff]  }
 0x1cb   : > { %8376 = vmatprep.subr.bf16.mxu0 %v11802_v1  ;;  %v8208_v9 = vpop.f32.mrb[97].mxu1 }
 0x1cc   : > { %v2625_v36 = vpop.f32.mrb[98].mxu1 }
 0x1cd   : > { %v10587_v38 = vadd.f32 %v2625_v36, %v10412_v2  ;;  %v8209_v17 = vpop.f32.mrb[99].mxu1 }
 0x1ce   : > { %8377 = vmatpush3.bf16.msra.mxu0 %v9433_v5 }
 0x1cf   : > { %8378 = vmatprep.subr.bf16.mxu0 %v11802_v1 }
 0x1d1   : > { %8319 = vmatmul.mubr.bf16.gmra.mrb[88].mxu0 %v9563_v51  ;;  %v2630_v51 = vpop.f32.mrb[100].mxu1 }
 0x1d2   : > { %8322 = vmatprep.mubr.msk.bf16.mxu0 %vm9619_vm0, %v11802_v1  ;;  %8379 = vmatpush3.bf16.msra.mxu0 %v9434_v59  ;;  %v10594_v20 = vadd.f32 %v2630_v51, %v10418_v15  ;;  %v8212_v53 = vpop.f32.mrb[101].mxu1 }
 0x1d3   : > { %8380 = vmatprep.subr.bf16.mxu0 %v11802_v1  ;;  %v2633_v27 = vpop.f32.mrb[102].mxu1 }
 0x1d4   : > { %v8213_v22 = vpop.f32.mrb[103].mxu1 }
 0x1d6   : > { %8381 = vmatpush3.bf16.msra.mxu0 %v9435_v54 }
 0x1d7   : > { %8442 = vmatprep.subr.bf16.mxu0 %v11802_v1 }
 0x1d9   : > { %8323 = vmatmul.mubr.bf16.gmra.mrb[92].mxu0 %v9960_v26  ;;  %v10597_v2 = vpop.f32.mrb[104].mxu1 }
 0x1da   : > { %8326 = vmatprep.mubr.msk.bf16.mxu0 %vm9619_vm0, %v11802_v1  ;;  %v8232_v5 = vpop.f32.mrb[105].mxu1 }
 0x1db   : > { %v10601_v31 = vpop.f32.mrb[106].mxu1 }
 0x1dc   : > { %v8233_v26 = vpop.f32.mrb[107].mxu1 }
 0x1e1   : > { %8327 = vmatmul.mubr.bf16.gmra.mrb[96].mxu0 %v9995_v49  ;;  %v2744_v59 = vpop.f32.mrb[108].mxu1  ;;  %v449_v49 = vlaneseq }
 0x1e2   : > { %8330 = vmatprep.mubr.msk.bf16.mxu0 %vm9619_vm0, %v11802_v1  ;;  %v8236_v15 = vpop.f32.mrb[109].mxu1 }
 0x1e3   : > { %v10605_v47 = vpop.f32.mrb[110].mxu1  ;;  %v10610_v36 = vshrl.u32 %v449_v49, 7 }
 0x1e4   : > { %v8237_v9 = vpop.f32.mrb[111].mxu1 }
 0x1e5   : > { %vm2140_vm7 = vcmp.lt.s32.totalorder %v10610_v36, 1 }
 0x1e9   : > { %8331 = vmatmul.mubr.bf16.gmra.mrb[100].mxu0 %v9564_v30  ;;  %v10608_v54 = vpop.f32.mrb[112].mxu1 }
 0x1ea   : > { %8334 = vmatprep.mubr.msk.bf16.mxu0 %vm9619_vm0, %v11802_v1  ;;  %v8240_v17 = vpop.f32.mrb[113].mxu1 }
 0x1eb   : > { %v2755_v51 = vpop.f32.mrb[114].mxu1 }
 0x1ec   : > { %v8241_v27 = vpop.f32.mrb[115].mxu1 }
 0x1f1   : > { %8335 = vmatmul.mubr.bf16.gmra.mrb[104].mxu0 %v10052_v21  ;;  %v10625_v15 = vpop.f32.mrb[116].mxu1 }
 0x1f2   : > { %8338 = vmatprep.mubr.msk.bf16.mxu0 %vm9619_vm0, %v11802_v1  ;;  %v8244_v9 = vpop.f32.mrb[117].mxu1 }
 0x1f3   : > { %v10629_v49 = vpop.f32.mrb[118].mxu1 }
 0x1f4   : > { %v10614_v53 = vpop.f32.mrb[0].mxu0  ;;  %v8245_v51 = vpop.f32.mrb[119].mxu1 }
 0x1f5   : > { %v8004_v22 = vpop.f32.mrb[1].mxu0  ;;  %v11795_v26 = vrot.slane %v10614_v53, 7 }
 0x1f6   : > { %v1964_v5 = vpop.f32.mrb[2].mxu0 }
 0x1f7   : > { %v2111_v30 = vrot.slane %v1964_v5, 7  ;;  %v8005_v21 = vpop.f32.mrb[3].mxu0 }
 0x1f9   : > { %v10622_v59 = vsel %vm2140_vm7, %v11795_v26, %v2111_v30  ;;  %8339 = vmatmul.mubr.bf16.gmra.mrb[108].mxu0 %v10068_v25  ;;  %v9565_v25 = vld [vmem:[#allocation2 + $0x54] sm:$0xff]   ;;  %v2768_v26 = vpop.f32.mrb[120].mxu1 }
 0x1fa   : > { %8342 = vmatprep.mubr.msk.bf16.mxu0 %vm9619_vm0, %v11802_v1  ;;  %v8248_v9 = vpop.f32.mrb[121].mxu1 }
 0x1fb   : > { %v2771_v33 = vpop.f32.mrb[122].mxu1 }
 0x1fc   : > { %v1969_v17 = vpop.f32.mrb[4].mxu0  ;;  %v2864_v51 = vadd.f32 %v2771_v33, %v10465_v23 }
 0x1fd   : > { %v8008_v27 = vpop.f32.mrb[5].mxu0  ;;  %v2112_v5 = vrot.slane %v1969_v17, 7 }
 0x1fe   : > { %v1972_v22 = vpop.f32.mrb[6].mxu0  ;;  %v8249_v27 = vpop.f32.mrb[123].mxu1 }
 0x1ff   : > { %v2113_v21 = vrot.slane %v1972_v22, 7  ;;  %v8009_v44 = vpop.f32.mrb[7].mxu0 }
 0x201   : > { %v10633_v30 = vsel %vm2140_vm7, %v2112_v5, %v2113_v21  ;;  %8343 = vmatmul.mubr.bf16.gmra.mrb[112].mxu0 %v9565_v25  ;;  %v2776_v26 = vpop.f32.mrb[124].mxu1 }
 0x202   : > { %8346 = vmatprep.mubr.msk.bf16.mxu0 %vm9619_vm0, %v11802_v1  ;;  %v2865_v25 = vadd.f32 %v2776_v26, %v10471_v34  ;;  %v8252_v9 = vpop.f32.mrb[125].mxu1 }
 0x203   : > { %v2779_v7 = vpop.f32.mrb[126].mxu1 }
 0x204   : > { %v1977_v19 = vpop.f32.mrb[8].mxu0  ;;  %v8253_v23 = vpop.f32.mrb[127].mxu1 }
 0x205   : > { %v2114_v12 = vrot.slane %v1977_v19, 7  ;;  %v8012_v17 = vpop.f32.mrb[9].mxu0 }
 0x206   : > { %v1980_v22 = vpop.f32.mrb[10].mxu0 }
 0x207   : > { %v10640_v44 = vsel %vm2140_vm7, %v2113_v21, %v2114_v12  ;;  %v8013_v5 = vpop.f32.mrb[11].mxu0  ;;  %v2115_v19 = vrot.slane %v1980_v22, 7 }
 0x209   : > { %8347 = vmatmul.mubr.bf16.gmra.mrb[116].mxu0 %v10081_v28  ;;  %v2784_v34 = vpop.f32.mrb[128].mxu1 }
 0x20a   : > { %8350 = vmatprep.mubr.msk.bf16.mxu0 %vm9619_vm0, %v11802_v1  ;;  %v2867_v7 = vadd.f32 %v2784_v34, %v10482_v42  ;;  %v8256_v22 = vpop.f32.mrb[129].mxu1  ;;  %v11828_v42 = vmov 0.0  }
 0x20b   : > { %v2787_v26 = vpop.f32.mrb[130].mxu1 }
 0x20c   : > { %v1985_v33 = vpop.f32.mrb[12].mxu0  ;;  %v8257_v23 = vpop.f32.mrb[131].mxu1 }
 0x20d   : > { %v2116_v27 = vrot.slane %v1985_v33, 7  ;;  %v8016_v17 = vpop.f32.mrb[13].mxu0  ;;  %v2868_v33 = vadd.f32 %v2787_v26, %v10486_v18 }
 0x20e   : > { %v1988_v4 = vpop.f32.mrb[14].mxu0 }
 0x20f   : > { %v10648_v12 = vsel %vm2140_vm7, %v2115_v19, %v2116_v27  ;;  %v2117_v21 = vrot.slane %v1988_v4, 7  ;;  %v8017_v28 = vpop.f32.mrb[15].mxu0 }
 0x211   : > { %v10652_v5 = vsel %vm2140_vm7, %v2116_v27, %v2117_v21  ;;  %8351 = vmatmul.mubr.bf16.gmra.mrb[120].mxu0 %v10089_v29  ;;  %v9566_v21 = vld [vmem:[#allocation2 + $0x6c] sm:$0xff]   ;;  %v2792_v0 = vpop.f32.mrb[132].mxu1 }
 0x212   : > { %8354 = vmatprep.mubr.msk.bf16.mxu0 %vm9619_vm0, %v11802_v1  ;;  %v8260_v34 = vpop.f32.mrb[133].mxu1 }
 0x213   : > { %v2795_v22 = vpop.f32.mrb[134].mxu1 }
 0x214   : > { %v1993_v9 = vpop.f32.mrb[16].mxu0  ;;  %v2870_v26 = vadd.f32 %v2795_v22, %v10500_v50  ;;  %v8261_v23 = vpop.f32.mrb[135].mxu1 }
 0x215   : > { %v8020_v4 = vpop.f32.mrb[17].mxu0  ;;  %v2118_v17 = vrot.slane %v1993_v9, 7 }
 0x216   : > { %v1996_v19 = vpop.f32.mrb[18].mxu0 }
 0x217   : > { %v2119_v28 = vrot.slane %v1996_v19, 7  ;;  %v8021_v27 = vpop.f32.mrb[19].mxu0 }
 0x219   : > { %v2161_v29 = vsel %vm2140_vm7, %v2118_v17, %v2119_v28  ;;  %8355 = vmatmul.mubr.bf16.gmra.mrb[124].mxu0 %v9566_v21  ;;  %v2800_v0 = vpop.f32.mrb[136].mxu1 }
 0x21a   : > { %v10661_v1 = vadd.f32 %v2864_v51, %v2161_v29  ;;  %8358 = vmatprep.mubr.msk.bf16.mxu0 %vm9619_vm0, %v11828_v42  ;;  %v2871_v51 = vadd.f32 %v2800_v0, %v10513_v10  ;;  %v8264_v29 = vpop.f32.mrb[137].mxu1 }
 0x21b   : > { %v2803_v50 = vpop.f32.mrb[138].mxu1 }
 0x21c   : > { %11827 = vst [vmem:[#allocation10_spill] sm:$0xff] %v10661_v1  ;;  %v2001_v18 = vpop.f32.mrb[20].mxu0  ;;  %v8265_v22 = vpop.f32.mrb[139].mxu1 }
 0x21d   : > { %v2120_v9 = vrot.slane %v2001_v18, 7  ;;  %v8024_v4 = vpop.f32.mrb[21].mxu0 }
 0x21e   : > { %v2004_v19 = vpop.f32.mrb[22].mxu0 }
 0x21f   : > { %v2160_v17 = vsel %vm2140_vm7, %v2119_v28, %v2120_v9  ;;  %v8025_v27 = vpop.f32.mrb[23].mxu0  ;;  %v2121_v18 = vrot.slane %v2004_v19, 7 }
 0x220   : > { %v10668_v21 = vadd.f32 %v2865_v25, %v2160_v17  ;;  %v9567_v27 = vld [vmem:[#allocation2 + $0x7c] sm:$0xff]  }
 0x221   : > { %8359 = vmatmul.mubr.bf16.gmra.mrb[128].mxu0 %v10101_v32  ;;  %v2808_v10 = vpop.f32.mrb[140].mxu1 }
 0x222   : > { %8362 = vmatprep.mubr.msk.bf16.mxu0 %vm9619_vm0, %v11828_v42  ;;  %v2873_v19 = vadd.f32 %v2808_v10, %v10526_v45  ;;  %v8268_v29 = vpop.f32.mrb[141].mxu1 }
 0x223   : > { %v2811_v50 = vpop.f32.mrb[142].mxu1 }
 0x224   : > { %v2009_v34 = vpop.f32.mrb[24].mxu0 }
 0x225   : > { %v2122_v23 = vrot.slane %v2009_v34, 7  ;;  %v8028_v4 = vpop.f32.mrb[25].mxu0 }
 0x226   : > { %v2012_v1 = vpop.f32.mrb[26].mxu0 }
 0x227   : > { %v2158_v25 = vsel %vm2140_vm7, %v2121_v18, %v2122_v23  ;;  %v2123_v28 = vrot.slane %v2012_v1, 7  ;;  %v8029_v9 = vpop.f32.mrb[27].mxu0  ;;  %v2874_v1 = vadd.f32 %v2811_v50, %v10530_v13  ;;  %v9437_v13 = vld [vmem:[%s11788_s5 + $0x208] sm:$0xff]  }
 0x228   : > { %v10676_v32 = vadd.f32 %v2867_v7, %v2158_v25  ;;  %v8269_v7 = vpop.f32.mrb[143].mxu1  ;;  %v9568_v9 = vld [vmem:[#allocation2] sm:$0xff]  }
 0x229   : > { %v2157_v17 = vsel %vm2140_vm7, %v2122_v23, %v2123_v28  ;;  %8363 = vmatmul.mubr.bf16.gmra.mrb[132].mxu0 %v9567_v27  ;;  %v9436_v23 = vld [vmem:[%s11788_s5 + $0x200] sm:$0xff]   ;;  %v2816_v45 = vpop.f32.mrb[144].mxu1 }
 0x22a   : > { %v10680_v0 = vadd.f32 %v2868_v33, %v2157_v17  ;;  %8382 = vmatprep.mubr.msk.bf16.mxu0 %vm9619_vm0, %v11828_v42  ;;  %v8272_v27 = vpop.f32.mrb[145].mxu1  ;;  %v9439_v45 = vld [vmem:[%s11788_s5 + $0x218] sm:$0xff]  }
 0x22b   : > { %v2819_v10 = vpop.f32.mrb[146].mxu1 }
 0x22c   : > { %v2017_v34 = vpop.f32.mrb[28].mxu0  ;;  %v2876_v50 = vadd.f32 %v2819_v10, %v10543_v37 }
 0x22d   : > { %v8032_v22 = vpop.f32.mrb[29].mxu0  ;;  %v2124_v4 = vrot.slane %v2017_v34, 7  ;;  %v8273_v34 = vpop.f32.mrb[147].mxu1 }
 0x22e   : > { %v2020_v18 = vpop.f32.mrb[30].mxu0 }
 0x22f   : > { %v2125_v33 = vrot.slane %v2020_v18, 7  ;;  %v8033_v25 = vpop.f32.mrb[31].mxu0  ;;  %v9438_v18 = vld [vmem:[%s11788_s5 + $0x210] sm:$0xff]  }
 0x231   : > { %v2155_v28 = vsel %vm2140_vm7, %v2124_v4, %v2125_v33  ;;  %8383 = vmatmul.mubr.bf16.vlgmr.msra.gmra.mrb[76].mxu0 %v9568_v9  ;;  %v2824_v37 = vpop.f32.mrb[148].mxu1 }
 0x232   : > { %v10691_v17 = vadd.f32 %v2870_v26, %v2155_v28  ;;  %8443 = vmatpush3.bf16.msra.mxu0 %v9436_v23  ;;  %8386 = vmatprep.mubr.msk.bf16.mxu0 %vm9619_vm0, %v11828_v42  ;;  %v2877_v28 = vadd.f32 %v2824_v37, %v10556_v52  ;;  %v8276_v9 = vpop.f32.mrb[149].mxu1  ;;  %v9440_v52 = vld [vmem:[%s11788_s5 + $0x220] sm:$0xff]  }
 0x233   : > { %8444 = vmatprep.subr.bf16.mxu0 %v11828_v42 }
 0x234   : > { %v2025_v29 = vpop.f32.mrb[32].mxu0 }
 0x235   : > { %v2126_v7 = vrot.slane %v2025_v29, 7  ;;  %v8036_v22 = vpop.f32.mrb[33].mxu0 }
 0x236   : > { %v2028_v26 = vpop.f32.mrb[34].mxu0  ;;  %8445 = vmatpush3.bf16.msra.mxu0 %v9437_v13 }
 0x237   : > { %v2154_v23 = vsel %vm2140_vm7, %v2125_v33, %v2126_v7  ;;  %v8037_v4 = vpop.f32.mrb[35].mxu0  ;;  %8446 = vmatprep.subr.bf16.mxu0 %v11828_v42  ;;  %v2827_v33 = vpop.f32.mrb[150].mxu1  ;;  %v2127_v27 = vrot.slane %v2028_v26, 7 }
 0x238   : > { %v10706_v25 = vadd.f32 %v2871_v51, %v2154_v23  ;;  %v8277_v51 = vpop.f32.mrb[151].mxu1 }
 0x239   : > { %8387 = vmatmul.mubr.bf16.gmra.mrb[80].mxu0 %v10023_v8  ;;  %v2832_v23 = vpop.f32.mrb[152].mxu1 }
 0x23a   : > { %8390 = vmatprep.mubr.msk.bf16.mxu0 %vm9619_vm0, %v11828_v42  ;;  %8447 = vmatpush3.bf16.msra.mxu0 %v9438_v18  ;;  %v2879_v37 = vadd.f32 %v2832_v23, %v10567_v40  ;;  %v8280_v9 = vpop.f32.mrb[153].mxu1  ;;  %v9442_v40 = vld [vmem:[%s11788_s5 + $0x230] sm:$0xff]  }
 0x23b   : > { %8448 = vmatprep.subr.bf16.mxu0 %v11828_v42 }
 0x23c   : > { %v2033_v13 = vpop.f32.mrb[36].mxu0 }
 0x23d   : > { %v2128_v10 = vrot.slane %v2033_v13, 7  ;;  %v8040_v8 = vpop.f32.mrb[37].mxu0 }
 0x23e   : > { %v2036_v29 = vpop.f32.mrb[38].mxu0  ;;  %8449 = vmatpush3.bf16.msra.mxu0 %v9439_v45  ;;  %v2835_v45 = vpop.f32.mrb[154].mxu1 }
 0x23f   : > { %v2152_v34 = vsel %vm2140_vm7, %v2127_v27, %v2128_v10  ;;  %v2129_v7 = vrot.slane %v2036_v29, 7  ;;  %v8041_v22 = vpop.f32.mrb[39].mxu0  ;;  %8450 = vmatprep.subr.bf16.mxu0 %v11828_v42  ;;  %v8281_v13 = vpop.f32.mrb[155].mxu1 }
 0x240   : > { %v10722_v18 = vadd.f32 %v2873_v19, %v2152_v34  ;;  %v9441_v19 = vld [vmem:[%s11788_s5 + $0x228] sm:$0xff]   ;;  %v9443_v22 = vld [vmem:[%s11788_s5 + $0x238] sm:$0xff]  }
 0x241   : > { %v2151_v26 = vsel %vm2140_vm7, %v2128_v10, %v2129_v7  ;;  %8391 = vmatmul.mubr.bf16.gmra.mrb[84].mxu0 %v10038_v16  ;;  %v2880_v16 = vadd.f32 %v2835_v45, %v10574_v56  ;;  %v2840_v34 = vpop.f32.mrb[156].mxu1 }
 0x242   : > { %v10727_v4 = vadd.f32 %v2874_v1, %v2151_v26  ;;  %8394 = vmatprep.mubr.msk.bf16.mxu0 %vm9619_vm0, %v11828_v42  ;;  %8451 = vmatpush3.bf16.msra.mxu0 %v9440_v52  ;;  %v9569_v52 = vld [vmem:[#allocation2 + $0x18] sm:$0xff]   ;;  %v8284_v7 = vpop.f32.mrb[157].mxu1 }
 0x243   : > { %8452 = vmatprep.subr.bf16.mxu0 %v11828_v42  ;;  %v2843_v26 = vpop.f32.mrb[158].mxu1 }
 0x244   : > { %v2041_v33 = vpop.f32.mrb[40].mxu0  ;;  %v2882_v9 = vadd.f32 %v2843_v26, %v10587_v38 }
 0x245   : > { %v8044_v1 = vpop.f32.mrb[41].mxu0  ;;  %v2130_v27 = vrot.slane %v2041_v33, 7 }
 0x246   : > { %v2044_v51 = vpop.f32.mrb[42].mxu0  ;;  %8453 = vmatpush3.bf16.msra.mxu0 %v9441_v19  ;;  %v8285_v19 = vpop.f32.mrb[159].mxu1 }
 0x247   : > { %v2131_v10 = vrot.slane %v2044_v51, 7  ;;  %v8045_v8 = vpop.f32.mrb[43].mxu0  ;;  %8454 = vmatprep.subr.bf16.mxu0 %v11828_v42 }
 0x249   : > { %v2149_v29 = vsel %vm2140_vm7, %v2130_v27, %v2131_v10  ;;  %8395 = vmatmul.mubr.bf16.gmra.mrb[88].mxu0 %v9569_v52 }
 0x24a   : > { %v10743_v56 = vadd.f32 %v2876_v50, %v2149_v29  ;;  %8398 = vmatprep.mubr.msk.bf16.mxu0 %vm9619_vm0, %v11828_v42  ;;  %8455 = vmatpush3.bf16.msra.mxu0 %v9442_v40  ;;  %v2848_v40 = vpop.f32.mrb[160].mxu1 }
 0x24b   : > { %8456 = vmatprep.subr.bf16.mxu0 %v11828_v42  ;;  %v2883_v27 = vadd.f32 %v2848_v40, %v10594_v20  ;;  %v8288_v38 = vpop.f32.mrb[161].mxu1 }
 0x24c   : > { %v2049_v23 = vpop.f32.mrb[44].mxu0  ;;  %v2851_v8 = vpop.f32.mrb[162].mxu1  ;;  %v9570_v38 = vld [vmem:[#allocation2 + $0x30] sm:$0xff]  }
 0x24d   : > { %v2132_v45 = vrot.slane %v2049_v23, 7  ;;  %v8048_v33 = vpop.f32.mrb[45].mxu0  ;;  %v8289_v52 = vpop.f32.mrb[163].mxu1 }
 0x24e   : > { %v2052_v50 = vpop.f32.mrb[46].mxu0  ;;  %8457 = vmatpush3.bf16.msra.mxu0 %v9443_v22 }
 0x24f   : > { %v2148_v13 = vsel %vm2140_vm7, %v2131_v10, %v2132_v45  ;;  %v8049_v1 = vpop.f32.mrb[47].mxu0  ;;  %v2133_v34 = vrot.slane %v2052_v50, 7 }
 0x250   : > { %v10754_v51 = vadd.f32 %v2877_v28, %v2148_v13 }
 0x251   : > { %8399 = vmatmul.mubr.bf16.gmra.mrb[92].mxu0 %v10135_v39 }
 0x252   : > { %8402 = vmatprep.mubr.msk.bf16.mxu0 %vm9619_vm0, %v11828_v42 }
 0x254   : > { %v2057_v29 = vpop.f32.mrb[48].mxu0 }
 0x255   : > { %v2134_v7 = vrot.slane %v2057_v29, 7  ;;  %v8052_v22 = vpop.f32.mrb[49].mxu0 }
 0x256   : > { %v2060_v26 = vpop.f32.mrb[50].mxu0 }
 0x257   : > { %v2146_v28 = vsel %vm2140_vm7, %v2133_v34, %v2134_v7  ;;  %v2135_v10 = vrot.slane %v2060_v26, 7  ;;  %v8053_v23 = vpop.f32.mrb[51].mxu0 }
 0x258   : > { %v10762_v39 = vadd.f32 %v2879_v37, %v2146_v28  ;;  %v11829_v28 = vrot.slane %v10614_v53, 7 }
 0x259   : > { %v2145_v19 = vsel %vm2140_vm7, %v2134_v7, %v2135_v10  ;;  %8403 = vmatmul.mubr.bf16.gmra.mrb[96].mxu0 %v10159_v46 }
 0x25a   : > { %v10767_v20 = vadd.f32 %v2880_v16, %v2145_v19  ;;  %8406 = vmatprep.mubr.msk.bf16.mxu0 %vm9619_vm0, %v11828_v42 }
 0x25c   : > { %v2065_v45 = vpop.f32.mrb[52].mxu0 }
 0x25d   : > { %v8056_v33 = vpop.f32.mrb[53].mxu0  ;;  %v2136_v13 = vrot.slane %v2065_v45, 7 }
 0x25e   : > { %v2068_v50 = vpop.f32.mrb[54].mxu0 }
 0x25f   : > { %v2137_v1 = vrot.slane %v2068_v50, 7  ;;  %v8057_v40 = vpop.f32.mrb[55].mxu0 }
 0x261   : > { %v2143_v37 = vsel %vm2140_vm7, %v2136_v13, %v2137_v1  ;;  %8407 = vmatmul.mubr.bf16.gmra.mrb[100].mxu0 %v9570_v38  ;;  %v9571_v38 = vld [vmem:[#allocation2 + $0x48] sm:$0xff]  }
 0x262   : > { %v10773_v8 = vadd.f32 %v2882_v9, %v2143_v37  ;;  %8410 = vmatprep.mubr.msk.bf16.mxu0 %vm9619_vm0, %v11828_v42 }
 0x264   : > { %v2073_v46 = vpop.f32.mrb[56].mxu0 }
 0x265   : > { %v2138_v16 = vrot.slane %v2073_v46, 7  ;;  %v8060_v29 = vpop.f32.mrb[57].mxu0 }
 0x266   : > { %v2076_v52 = vpop.f32.mrb[58].mxu0 }
 0x267   : > { %v2142_v34 = vsel %vm2140_vm7, %v2137_v1, %v2138_v16  ;;  %v2139_v7 = vrot.slane %v2076_v52, 7  ;;  %v8061_v22 = vpop.f32.mrb[59].mxu0 }
 0x268   : > { %v10779_v26 = vadd.f32 %v2883_v27, %v2142_v34 }
 0x269   : > { %v2170_v9 = vsel %vm2140_vm7, %v2139_v7, %v11829_v28  ;;  %8411 = vmatmul.mubr.bf16.gmra.mrb[104].mxu0 %v10199_v55 }
 0x26a   : > { %8414 = vmatprep.mubr.msk.bf16.mxu0 %vm9619_vm0, %v11828_v42 }
 0x26c   : > { %v2317_v10 = vpop.f32.mrb[60].mxu0 }
 0x26d   : > { %v2519_v23 = vadd.f32 %v10425_v14, %v2317_v10  ;;  %v8080_v19 = vpop.f32.mrb[61].mxu0  ;;  %v11836_v10 = vld [vmem:[#allocation9_spill] sm:$0xff] }
 0x26e   : > { %v2320_v45 = vpop.f32.mrb[62].mxu0  ;;  %v9448_v19 = vld [vmem:[%s11791_s8 + $0xe0] sm:$0xff]  }
 0x26f   : > { %v2855_v33 = vadd.f32 %v10597_v2, %v2519_v23  ;;  %v2522_v27 = vadd.f32 %v10431_v24, %v2320_v45  ;;  %v8081_v50 = vpop.f32.mrb[63].mxu0  ;;  %v9447_v23 = vld [vmem:[%s11791_s8 + $0xd8] sm:$0xff]   ;;  %v9451_v45 = vld [vmem:[%s11791_s8 + $0xf0] sm:$0xff]  }
 0x271   : > { %v10791_v13 = vadd.f32 %v2855_v33, %v2170_v9  ;;  %v2856_v53 = vadd.f32 %v10601_v31, %v2522_v27  ;;  %8415 = vmatmul.mubr.bf16.gmra.mrb[108].mxu0 %v10215_v60  ;;  %v11835_v9 = vld [vmem:[#allocation8_spill] sm:$0xff]  ;;  %v10902_v27 = vld [vmem:[%s11791_s8] sm:$0xff]  }
 0x272   : > { %8418 = vmatprep.mubr.msk.bf16.mxu0 %vm9619_vm0, %v11828_v42  ;;  %v9452_v33 = vld [vmem:[%s11791_s8 + $0xf8] sm:$0xff]  }
 0x273   : > { %v10798_v55 = vadd.f32 %v2856_v53, %v10622_v59 }
 0x274   : > { %v2325_v14 = vpop.f32.mrb[64].mxu0 }
 0x275   : > { %v8084_v1 = vpop.f32.mrb[65].mxu0  ;;  %v7385_v14 = vld [vmem:[%s10910_s13] sm:$0xff]  }
 0x276   : > { %v2328_v40 = vpop.f32.mrb[66].mxu0 }
 0x277   : > { %v2530_v2 = vadd.f32 %v10441_v35, %v2328_v40  ;;  %v8085_v37 = vpop.f32.mrb[67].mxu0 }
 0x279   : > { %v2858_v24 = vadd.f32 %v10605_v47, %v2530_v2  ;;  %8419 = vmatmul.mubr.bf16.gmra.mrb[112].mxu0 %v9571_v38 }
 0x27a   : > { %8422 = vmatprep.mubr.msk.bf16.mxu0 %vm9619_vm0, %v11828_v42 }
 0x27b   : > { %v10805_v60 = vadd.f32 %v2858_v24, %v10633_v30  ;;  %v7386_v24 = vunpack.c.l.bf16 %v7385_v14 }
 0x27c   : > { %v2333_v31 = vpop.f32.mrb[68].mxu0 }
 0x27d   : > { %v2535_v59 = vadd.f32 %v10447_v43, %v2333_v31  ;;  %v8088_v46 = vpop.f32.mrb[69].mxu0 }
 0x27e   : > { %v2336_v16 = vpop.f32.mrb[70].mxu0 }
 0x27f   : > { %v2859_v29 = vadd.f32 %v10608_v54, %v2535_v59  ;;  %v8089_v52 = vpop.f32.mrb[71].mxu0  ;;  %v10921_v59 = vld [vmem:[%s435_s30] ss:$0 sm:$0xff] }
 0x281   : > { %v10810_v35 = vadd.f32 %v2859_v29, %v10640_v44  ;;  %8423 = vmatmul.mubr.bf16.gmra.mrb[116].mxu0 %v10238_v63  ;;  %v10926_v29 = vld [vmem:[%s11789_s6] ss:$0 sm:$0xff] }
 0x282   : > { %8426 = vmatprep.mubr.msk.bf16.mxu0 %vm9619_vm0, %v11828_v42 }
 0x284   : > { %v2341_v47 = vpop.f32.mrb[72].mxu0 }
 0x285   : > { %v2543_v30 = vadd.f32 %v10455_v58, %v2341_v47  ;;  %v8092_v34 = vpop.f32.mrb[73].mxu0  ;;  %v9572_v58 = vld [vmem:[#allocation2 + $0x60] sm:$0xff]  }
 0x286   : > { %v2344_v7 = vpop.f32.mrb[74].mxu0  ;;  %v7387_v34 = vunpack.c.h.bf16 %v7385_v14 }
 0x287   : > { %v2861_v43 = vadd.f32 %v10625_v15, %v2543_v30  ;;  %v2546_v22 = vadd.f32 %v10459_v61, %v2344_v7  ;;  %v8093_v28 = vpop.f32.mrb[75].mxu0  ;;  %v9444_v61 = vld [vmem:[%s11791_s8 + $0xc0] sm:$0xff]   ;;  %v9574_v15 = vld [vmem:[#allocation2 + $0x30] sm:$0xff]  }
 0x288   : > { %8518 = vmatprep.subr.bf16.mxu1 %v9444_v61 }
 0x289   : > { %v10819_v54 = vadd.f32 %v2861_v43, %v10648_v12  ;;  %v2862_v44 = vadd.f32 %v10629_v49, %v2546_v22  ;;  %8427 = vmatmul.mubr.bf16.gmra.mrb[120].mxu0 %v10246_v3  ;;  %v9445_v3 = vld [vmem:[%s11791_s8 + $0xc8] sm:$0xff]   ;;  %8519 = vmatpush3.bf16.msra.mxu1 %v9444_v61  ;;  %v11834_v12 = vld [vmem:[#allocation7_spill] sm:$0xff]  ;;  %v10939_v61 = vstv %s7016_s11  ;;  %s9283_s11 = smul.u32 48, %s11851_s14 }
 0x28a   : > { %8430 = vmatprep.mubr.msk.bf16.mxu0 %vm9619_vm0, %v11828_v42  ;;  %8520 = vmatprep.subr.bf16.mxu1 %v9445_v3  ;;  %v11833_v49 = vld [vmem:[#allocation6_spill] sm:$0xff]  ;;  %vm3932_vm8 = vcmp.ge.s32.totalorder %v10939_v61, 0  ;;  %vm3942_vm9 = vcmp.lt.s32.totalorder %v10939_v61, 16 }
 0x28b   : > { %v10826_v63 = vadd.f32 %v2862_v44, %v10652_v5  ;;  %v9446_v5 = vld [vmem:[%s11791_s8 + $0xd0] sm:$0xff]   ;;  %v10937_v44 = vld [vmem:[%s11790_s7] ss:$0 sm:$0xff]  ;;  %vm3952_vm10 = vmand %vm3932_vm8, %vm3942_vm9  ;;  %s443_s20 = sadd.s32 %s9283_s11, %s9282_s12 }
 0x28c   : > { %s6727_s25 = sshll.u32 %s443_s20, 3 }
 0x28d   : > { %8521 = vmatpush3.bf16.msra.mxu1 %v9445_v3  ;;  %v3693_v3 = vld [vmem:[%s10910_s13 + $0xc] sm:$0xff]   ;;  %s11652_s23 = scalar_lea.vmem %s11793_s10, %s6727_s25 }
 0x28e   : > { %8522 = vmatprep.subr.bf16.mxu1 %v9446_v5 }
 0x291   : > { %8431 = vmatmul.mubr.bf16.gmra.mrb[124].mxu0 %v9572_v58  ;;  %8523 = vmatpush3.bf16.msra.mxu1 %v9446_v5 }
 0x292   : > { %8434 = vmatprep.mubr.msk.bf16.mxu0 %vm9619_vm0, %v11828_v42  ;;  %8524 = vmatprep.subr.bf16.mxu1 %v9447_v23 }
 0x295   : > { %8525 = vmatpush3.bf16.msra.mxu1 %v9447_v23 }
 0x296   : > { %8526 = vmatprep.subr.bf16.mxu1 %v9448_v19 }
 0x299   : > { %8435 = vmatmul.mubr.bf16.gmra.mrb[128].mxu0 %v10264_v6  ;;  %v9573_v6 = vld [vmem:[#allocation2 + $0x18] sm:$0xff]   ;;  %8527 = vmatpush3.bf16.msra.mxu1 %v9448_v19 }
 0x29a   : > { %8438 = vmatprep.mubr.msk.bf16.mxu0 %vm9619_vm0, %v11828_v42 }
 0x2a1   : > { %8439 = vmatmul.mubr.bf16.gmra.mrb[132].mxu0 %v10272_v11  ;;  %v11831_v11 = vld [vmem:[#allocation4_spill] sm:$0xff] }
 0x2a2   : > { %8458 = vmatprep.mubr.msk.bf16.mxu0 %vm9619_vm0, %v11828_v42 }
 0x2a9   : > { %8459 = vmatmul.mubr.bf16.vlgmr.msra.gmra.mrb[76].mxu0 %v9573_v6 }
 0x2aa   : > { %8462 = vmatprep.mubr.msk.bf16.mxu0 %vm9619_vm0, %v11828_v42 }
 0x2b1   : > { %8463 = vmatmul.mubr.bf16.gmra.mrb[80].mxu0 %v10143_v41  ;;  %v9575_v41 = vld [vmem:[#allocation2 + $0x48] sm:$0xff]  }
 0x2b2   : > { %8466 = vmatprep.mubr.msk.bf16.mxu0 %vm9619_vm0, %v11828_v42 }
 0x2b9   : > { %8467 = vmatmul.mubr.bf16.gmra.mrb[84].mxu0 %v10167_v48  ;;  %v11830_v48 = vld [vmem:[#allocation3_spill] sm:$0xff] }
 0x2ba   : > { %8470 = vmatprep.mubr.msk.bf16.mxu0 %vm9619_vm0, %v11828_v42 }
 0x2c1   : > { %8471 = vmatmul.mubr.bf16.gmra.mrb[88].mxu0 %v9574_v15 }
 0x2c2   : > { %8474 = vmatprep.mubr.msk.bf16.mxu0 %vm9619_vm0, %v11828_v42 }
 0x2c9   : > { %8475 = vmatmul.mubr.bf16.gmra.mrb[92].mxu0 %v10204_v57  ;;  %v9576_v57 = vld [vmem:[#allocation2 + $0x60] sm:$0xff]  }
 0x2ca   : > { %8478 = vmatprep.mubr.msk.bf16.mxu0 %vm9619_vm0, %v11828_v42 }
 0x2d1   : > { %8479 = vmatmul.mubr.bf16.gmra.mrb[96].mxu0 %v10222_v62  ;;  %v11832_v62 = vld [vmem:[#allocation5_spill] sm:$0xff] }
 0x2d2   : > { %8482 = vmatprep.mubr.msk.bf16.mxu0 %vm9619_vm0, %v11828_v42 }
 0x2d9   : > { %8483 = vmatmul.mubr.bf16.gmra.mrb[100].mxu0 %v9575_v41 }
 0x2da   : > { %8486 = vmatprep.mubr.msk.bf16.mxu0 %vm9619_vm0, %v11828_v42 }
 0x2e1   : > { %8487 = vmatmul.mubr.bf16.gmra.mrb[104].mxu0 %v11830_v48 }
 0x2e2   : > { %8490 = vmatprep.mubr.msk.bf16.mxu0 %vm9619_vm0, %v11828_v42 }
 0x2e9   : > { %8491 = vmatmul.mubr.bf16.gmra.mrb[108].mxu0 %v11831_v11 }
 0x2ea   : > { %8494 = vmatprep.mubr.msk.bf16.mxu0 %vm9619_vm0, %v11828_v42 }
 0x2f1   : > { %8495 = vmatmul.mubr.bf16.gmra.mrb[112].mxu0 %v9576_v57 }
 0x2f2   : > { %8498 = vmatprep.mubr.msk.bf16.mxu0 %vm9619_vm0, %v11828_v42 }
 0x2f9   : > { %8499 = vmatmul.mubr.bf16.gmra.mrb[116].mxu0 %v11832_v62  ;;  %v3723_v62 = vunpack.c.l.bf16 %v3693_v3 }
 0x2fa   : > { %8502 = vmatprep.mubr.msk.bf16.mxu0 %vm9619_vm0, %v11828_v42 }
 0x301   : > { %8503 = vmatmul.mubr.bf16.gmra.mrb[120].mxu0 %v11833_v49 }
 0x302   : > { %8506 = vmatprep.mubr.msk.bf16.mxu0 %vm9619_vm0, %v11828_v42 }
 0x309   : > { %8507 = vmatmul.mubr.bf16.gmra.mrb[124].mxu0 %v11834_v12 }
 0x30a   : > { %8510 = vmatprep.mubr.msk.bf16.mxu0 %vm9619_vm0, %v11828_v42 }
 0x311   : > { %8511 = vmatmul.mubr.bf16.gmra.mrb[128].mxu0 %v11835_v9 }
 0x312   : > { %8514 = vmatprep.mubr.msk.bf16.mxu0 %vm9619_vm0, %v11828_v42  ;;  %v9450_v42 = vld [vmem:[%s11791_s8 + $0xe8] sm:$0xff]   ;;  %vm3629_vm0 = vcmp.lt.s32.totalorder %v10610_v36, 7 }
 0x313   : > { %8528 = vmatprep.subr.bf16.mxu1 %v9450_v42 }
 0x314   : > { %8529 = vmatpush3.bf16.msra.mxu1 %v9450_v42  ;;  %v3724_v42 = vunpack.c.h.bf16 %v3693_v3 }
 0x315   : > { %8530 = vmatprep.subr.bf16.mxu1 %v9451_v45 }
 0x318   : > { %8531 = vmatpush3.bf16.msra.mxu1 %v9451_v45 }
 0x319   : > { %8515 = vmatmul.mubr.bf16.gmra.mrb[132].mxu0 %v11836_v10  ;;  %8532 = vmatprep.subr.bf16.mxu1 %v9452_v33 }
 0x31c   : > { %8533 = vmatpush3.bf16.msra.mxu1 %v9452_v33 }
 0x31d   : > { %8558 = vmatprep.subr.bf16.mxu1 %v10902_v27 }
 0x37c   : > { %v3450_v50 = vpop.f32.mrb[76].mxu0 }
 0x37d   : > { %v8460_v53 = vpop.f32.mrb[77].mxu0  ;;  %v3599_v40 = vrot.slane %v3450_v50, 1 }
 0x37e   : > { %v3453_v1 = vpop.f32.mrb[78].mxu0  ;;  %v3923_v53 = vadd.s32 1, %v10939_v61 }
 0x37f   : > { %v3600_v2 = vrot.slane %v3453_v1, 1  ;;  %v8461_v37 = vpop.f32.mrb[79].mxu0 }
 0x380   : > { %vm3933_vm11 = vcmp.ge.s32.totalorder %v3923_v53, 0  ;;  %vm3943_vm12 = vcmp.lt.s32.totalorder %v3923_v53, 16 }
 0x381   : > { %v3658_v38 = vsel %vm3629_vm0, %v3599_v40, %v3600_v2  ;;  %vm3953_vm13 = vmand %vm3933_vm11, %vm3943_vm12 }
 0x382   : > { %v3660_v31 = vadd.f32 %v3658_v38, %v10791_v13 }
 0x384   : > { %v3750_v46 = vadd.f32 %v7386_v24, %v3660_v31  ;;  %v3458_v16 = vpop.f32.mrb[80].mxu0 }
 0x385   : > { %v3601_v52 = vrot.slane %v3458_v16, 1  ;;  %v8464_v47 = vpop.f32.mrb[81].mxu0 }
 0x386   : > { %v3787_v30 = vadd.f32 %v10921_v59, %v3750_v46  ;;  %v3461_v7 = vpop.f32.mrb[82].mxu0 }
 0x387   : > { %v3657_v43 = vsel %vm3629_vm0, %v3600_v2, %v3601_v52  ;;  %v8465_v13 = vpop.f32.mrb[83].mxu0  ;;  %v3602_v48 = vrot.slane %v3461_v7, 1 }
 0x388   : > { %v3824_v22 = vmul.f32 %v10926_v29, %v3787_v30  ;;  %v3661_v28 = vadd.f32 %v3657_v43, %v10798_v55 }
 0x38a   : > { %v3751_v58 = vadd.f32 %v7387_v34, %v3661_v28  ;;  %v3861_v6 = vadd.f32 %v10937_v44, %v3824_v22 }
 0x38c   : > { %v3788_v15 = vadd.f32 %v10921_v59, %v3751_v58  ;;  %v3466_v41 = vpop.f32.mrb[84].mxu0  ;;  %v3891_v10 = vmax.f32 %v3861_v6, 0.0 }
 0x38d   : > { %v3603_v11 = vrot.slane %v3466_v41, 1  ;;  %v8468_v57 = vpop.f32.mrb[85].mxu0 }
 0x38e   : > { %v3825_v55 = vmul.f32 %v10926_v29, %v3788_v15  ;;  %v3469_v49 = vpop.f32.mrb[86].mxu0  ;;  %v4072_v1 = vsel %vm3952_vm10, %v3891_v10, 0.0 }
 0x38f   : > { %v3655_v12 = vsel %vm3629_vm0, %v3602_v48, %v3603_v11  ;;  %v3604_v5 = vrot.slane %v3469_v49, 1  ;;  %v8469_v9 = vpop.f32.mrb[87].mxu0 }
 0x390   : > { %v3862_v23 = vadd.f32 %v10937_v44, %v3825_v55  ;;  %v3663_v19 = vadd.f32 %v3655_v12, %v10805_v60  ;;  %v7439_v60 = vld [vmem:[%s10910_s13 + $0x18] sm:$0xff]  }
 0x391   : > { %v3654_v45 = vsel %vm3629_vm0, %v3603_v11, %v3604_v5  ;;  %v7390_v43 = vunpack.c.l.bf16 %v7439_v60  ;;  %v7391_v49 = vunpack.c.h.bf16 %v7439_v60 }
 0x392   : > { %v3892_v33 = vmax.f32 %v3862_v23, 0.0  ;;  %v3753_v50 = vadd.f32 %v3723_v62, %v3663_v19  ;;  %v3664_v14 = vadd.f32 %v3654_v45, %v10810_v35  ;;  %v3924_v19 = vadd.s32 2, %v10939_v61  ;;  %v3699_v45 = vld [vmem:[%s10910_s13 + $0x24] sm:$0xff]  }
 0x394   : > { %v4073_v40 = vsel %vm3952_vm10, %v3892_v33, 0.0  ;;  %v3790_v2 = vadd.f32 %v10921_v59, %v3753_v50  ;;  %v3754_v37 = vadd.f32 %v3724_v42, %v3664_v14  ;;  %v3474_v24 = vpop.f32.mrb[88].mxu0  ;;  %vm3934_vm14 = vcmp.ge.s32.totalorder %v3924_v19, 0 }
 0x395   : > { %v7407_v38 = vpack.c.bf16 %v4073_v40, %v4072_v1  ;;  %v8472_v31 = vpop.f32.mrb[89].mxu0  ;;  %v3605_v47 = vrot.slane %v3474_v24, 1  ;;  %vm3944_vm15 = vcmp.lt.s32.totalorder %v3924_v19, 16 }
 0x396   : > { %v3827_v46 = vmul.f32 %v10926_v29, %v3790_v2  ;;  %v3791_v16 = vadd.f32 %v10921_v59, %v3754_v37  ;;  %v3477_v52 = vpop.f32.mrb[90].mxu0  ;;  %v3729_v37 = vunpack.c.l.bf16 %v3699_v45  ;;  %vm3954_vm1 = vmand %vm3934_vm14, %vm3944_vm15 }
 0x397   : > { %7408 = vst [vmem:[#allocation2] sm:$0xff] %v7407_v38   ;;  %v3606_v30 = vrot.slane %v3477_v52, 1  ;;  %v8473_v35 = vpop.f32.mrb[91].mxu0 }
 0x398   : > { %v3864_v34 = vadd.f32 %v10937_v44, %v3827_v46  ;;  %v3828_v7 = vmul.f32 %v10926_v29, %v3791_v16  ;;  %v11837_v16 = vld [vmem:[#allocation10_spill] sm:$0xff] }
 0x399   : > { %v3652_v13 = vsel %vm3629_vm0, %v3605_v47, %v3606_v30  ;;  %v3730_v47 = vunpack.c.h.bf16 %v3699_v45 }
 0x39a   : > { %v3894_v22 = vmax.f32 %v3864_v34, 0.0  ;;  %v3865_v28 = vadd.f32 %v10937_v44, %v3828_v7  ;;  %v3666_v58 = vadd.f32 %v3652_v13, %v10819_v54 }
 0x39c   : > { %v4075_v3 = vsel %vm3953_vm13, %v3894_v22, 0.0  ;;  %v3895_v6 = vmax.f32 %v3865_v28, 0.0  ;;  %v3756_v15 = vadd.f32 %v7390_v43, %v3666_v58  ;;  %v3482_v41 = vpop.f32.mrb[92].mxu0  ;;  %v3925_v43 = vadd.s32 3, %v10939_v61 }
 0x39d   : > { %v7312_v48 = vpack.c.bf16 %v4075_v3, %v4075_v3  ;;  %v3607_v11 = vrot.slane %v3482_v41, 1  ;;  %v8476_v57 = vpop.f32.mrb[93].mxu0 }
 0x39e   : > { %v4076_v55 = vsel %vm3953_vm13, %v3895_v6, 0.0  ;;  %v3793_v62 = vadd.f32 %v10921_v59, %v3756_v15  ;;  %v3485_v12 = vpop.f32.mrb[94].mxu0  ;;  %vm3935_vm2 = vcmp.ge.s32.totalorder %v3925_v43, 0  ;;  %vm3945_vm3 = vcmp.lt.s32.totalorder %v3925_v43, 16 }
 0x39f   : > { %4235 = vst [vmem:[#allocation2 + $0xc] sm:$0xf] %v7312_v48  ;;  %v7313_v5 = vpack.c.bf16 %v4076_v55, %v4076_v55  ;;  %v3651_v9 = vsel %vm3629_vm0, %v3606_v30, %v3607_v11  ;;  %v8477_v10 = vpop.f32.mrb[95].mxu0  ;;  %v3608_v14 = vrot.slane %v3485_v12, 1  ;;  %v7440_v48 = vld [vmem:[%s10910_s13 + $0x30] sm:$0xff]   ;;  %vm3955_vm4 = vmand %vm3935_vm2, %vm3945_vm3 }
 0x3a0   : > { %v3830_v54 = vmul.f32 %v10926_v29, %v3793_v62  ;;  %v3667_v23 = vadd.f32 %v3651_v9, %v10826_v63  ;;  %v7394_v9 = vunpack.c.l.bf16 %v7440_v48 }
 0x3a1   : > { %4236 = vst [vmem:[#allocation2 + $0x10] sm:$0xf] %v7313_v5 }
 0x3a2   : > { %v3757_v42 = vadd.f32 %v7391_v49, %v3667_v23  ;;  %v3867_v33 = vadd.f32 %v10937_v44, %v3830_v54 }
 0x3a4   : > { %v3794_v50 = vadd.f32 %v10921_v59, %v3757_v42  ;;  %v3490_v53 = vpop.f32.mrb[96].mxu0  ;;  %v3897_v60 = vmax.f32 %v3867_v33, 0.0 }
 0x3a5   : > { %v3609_v1 = vrot.slane %v3490_v53, 1  ;;  %v8480_v40 = vpop.f32.mrb[97].mxu0 }
 0x3a6   : > { %v3831_v2 = vmul.f32 %v10926_v29, %v3794_v50  ;;  %v3493_v24 = vpop.f32.mrb[98].mxu0  ;;  %v4078_v22 = vsel %vm3954_vm1, %v3897_v60, 0.0  ;;  %v9460_v40 = vld [vmem:[%s11791_s8 + $0x8] sm:$0xff]  }
 0x3a7   : > { %v3649_v63 = vsel %vm3629_vm0, %v3608_v14, %v3609_v1  ;;  %v3610_v38 = vrot.slane %v3493_v24, 1  ;;  %v8481_v31 = vpop.f32.mrb[99].mxu0  ;;  %v7395_v24 = vunpack.c.h.bf16 %v7440_v48 }
 0x3a8   : > { %v3868_v46 = vadd.f32 %v10937_v44, %v3831_v2  ;;  %v3669_v52 = vadd.f32 %v3649_v63, %v11837_v16  ;;  %v10979_v30 = vld [vmem:[#allocation2 + $0xc] sm:$0xff]  }
 0x3a9   : > { %v3648_v35 = vsel %vm3629_vm0, %v3609_v1, %v3610_v38  ;;  %8534 = vmatprep.mubr.bf16.mxu1 %v10979_v30 }
 0x3aa   : > { %v3898_v34 = vmax.f32 %v3868_v46, 0.0  ;;  %v3759_v7 = vadd.f32 %v3729_v37, %v3669_v52  ;;  %v3670_v13 = vadd.f32 %v3648_v35, %v10668_v21 }
 0x3ac   : > { %v4079_v28 = vsel %vm3954_vm1, %v3898_v34, 0.0  ;;  %v3796_v58 = vadd.f32 %v10921_v59, %v3759_v7  ;;  %v3760_v3 = vadd.f32 %v3730_v47, %v3670_v13  ;;  %v3498_v6 = vpop.f32.mrb[100].mxu0  ;;  %v3926_v47 = vadd.s32 4, %v10939_v61  ;;  %v9461_v34 = vld [vmem:[%s11791_s8 + $0x10] sm:$0xff]   ;;  %v3705_v7 = vld [vmem:[%s10910_s13 + $0x3c] sm:$0xff]  }
 0x3ad   : > { %v7412_v15 = vpack.c.bf16 %v4079_v28, %v4078_v22  ;;  %v8484_v41 = vpop.f32.mrb[101].mxu0  ;;  %v3611_v21 = vrot.slane %v3498_v6, 1 }
 0x3ae   : > { %v3833_v11 = vmul.f32 %v10926_v29, %v3796_v58  ;;  %v3797_v57 = vadd.f32 %v10921_v59, %v3760_v3  ;;  %v3501_v55 = vpop.f32.mrb[102].mxu0  ;;  %vm3936_vm5 = vcmp.ge.s32.totalorder %v3926_v47, 0  ;;  %vm3946_vm6 = vcmp.lt.s32.totalorder %v3926_v47, 16 }
 0x3af   : > { %7443 = vst [vmem:[#allocation2 + $0x18] sm:$0xff] %v7412_v15   ;;  %v3612_v62 = vrot.slane %v3501_v55, 1  ;;  %v8485_v49 = vpop.f32.mrb[103].mxu0  ;;  %v3735_v3 = vunpack.c.l.bf16 %v3705_v7  ;;  %v9464_v15 = vld [vmem:[%s11791_s8 + $0x18] sm:$0xff]   ;;  %vm3956_vm8 = vmand %vm3936_vm5, %vm3946_vm6 }
 0x3b0   : > { %v3870_v12 = vadd.f32 %v10937_v44, %v3833_v11  ;;  %v3834_v5 = vmul.f32 %v10926_v29, %v3797_v57 }
 0x3b1   : > { %v3646_v10 = vsel %vm3629_vm0, %v3611_v21, %v3612_v62 }
 0x3b2   : > { %v3900_v54 = vmax.f32 %v3870_v12, 0.0  ;;  %v3871_v23 = vadd.f32 %v10937_v44, %v3834_v5  ;;  %v3672_v19 = vadd.f32 %v3646_v10, %v10676_v32  ;;  %v3927_v10 = vadd.s32 5, %v10939_v61 }
 0x3b4   : > { %v4081_v42 = vsel %vm3955_vm4, %v3900_v54, 0.0  ;;  %v3901_v45 = vmax.f32 %v3871_v23, 0.0  ;;  %v3762_v33 = vadd.f32 %v7394_v9, %v3672_v19  ;;  %v3506_v50 = vpop.f32.mrb[104].mxu0  ;;  %vm3937_vm9 = vcmp.ge.s32.totalorder %v3927_v10, 0 }
 0x3b5   : > { %v7316_v53 = vpack.c.bf16 %v4081_v42, %v4081_v42  ;;  %v3613_v14 = vrot.slane %v3506_v50, 1  ;;  %v8488_v1 = vpop.f32.mrb[105].mxu0  ;;  %vm3947_vm10 = vcmp.lt.s32.totalorder %v3927_v10, 16  ;;  %v3711_v10 = vld [vmem:[%s10910_s13 + $0x54] sm:$0xff]  }
 0x3b6   : > { %v4082_v2 = vsel %vm3955_vm4, %v3901_v45, 0.0  ;;  %v3799_v37 = vadd.f32 %v10921_v59, %v3762_v33  ;;  %v3509_v63 = vpop.f32.mrb[106].mxu0  ;;  %v11001_v38 = vld [vmem:[#allocation2 + $0x14] sm:$0xff]   ;;  %v11003_v32 = vld [vmem:[#allocation2 + $0x1c] sm:$0xff]   ;;  %vm11048_vm11 = vmand %vm3937_vm9, %vm3947_vm10 }
 0x3b7   : > { %4241 = vst [vmem:[#allocation2 + $0x24] sm:$0xf] %v7316_v53  ;;  %v7317_v31 = vpack.c.bf16 %v4082_v2, %v4082_v2  ;;  %v3645_v60 = vsel %vm3629_vm0, %v3612_v62, %v3613_v14  ;;  %v8489_v46 = vpop.f32.mrb[107].mxu0  ;;  %8535 = vmatmul.mubr.bf16.vlgmr.msra.gmra.mrb[164].mxu1 %v11001_v38  ;;  %v3614_v22 = vrot.slane %v3509_v63, 1  ;;  %v3736_v62 = vunpack.c.h.bf16 %v3705_v7  ;;  %v7441_v14 = vld [vmem:[%s10910_s13 + $0x48] sm:$0xff]   ;;  %v9468_v7 = vld [vmem:[%s11791_s8 + $0x30] sm:$0xff]  }
 0x3b8   : > { %v3836_v16 = vmul.f32 %v10926_v29, %v3799_v37  ;;  %v3673_v52 = vadd.f32 %v3645_v60, %v10680_v0  ;;  %8538 = vmatprep.mubr.bf16.mxu1 %v11003_v32  ;;  %8559 = vmatpush3.bf16.msra.mxu1 %v10902_v27  ;;  %v9467_v2 = vld [vmem:[%s11791_s8 + $0x28] sm:$0xff]   ;;  %v7398_v46 = vunpack.c.l.bf16 %v7441_v14 }
 0x3b9   : > { %4242 = vst [vmem:[#allocation2 + $0x28] sm:$0xf] %v7317_v31  ;;  %8560 = vmatprep.subr.bf16.mxu1 %v9460_v40 }
 0x3ba   : > { %v3763_v35 = vadd.f32 %v7395_v24, %v3673_v52  ;;  %v3873_v43 = vadd.f32 %v10937_v44, %v3836_v16  ;;  %v3929_v16 = vadd.s32 7, %v10939_v61 }
 0x3bc   : > { %v3800_v0 = vadd.f32 %v10921_v59, %v3763_v35  ;;  %v3514_v13 = vpop.f32.mrb[108].mxu0  ;;  %8561 = vmatpush3.bf16.msra.mxu1 %v9460_v40  ;;  %v3903_v57 = vmax.f32 %v3873_v43, 0.0  ;;  %vm3939_vm15 = vcmp.ge.s32.totalorder %v3929_v16, 0  ;;  %vm3949_vm1 = vcmp.lt.s32.totalorder %v3929_v16, 16 }
 0x3bd   : > { %v3615_v28 = vrot.slane %v3514_v13, 1  ;;  %v8492_v58 = vpop.f32.mrb[109].mxu0  ;;  %8562 = vmatprep.subr.bf16.mxu1 %v9461_v34  ;;  %vm3959_vm2 = vmand %vm3939_vm15, %vm3949_vm1 }
 0x3be   : > { %v3837_v27 = vmul.f32 %v10926_v29, %v3800_v0  ;;  %v3517_v6 = vpop.f32.mrb[110].mxu0  ;;  %v4084_v23 = vsel %vm3956_vm8, %v3903_v57, 0.0 }
 0x3bf   : > { %v3643_v41 = vsel %vm3629_vm0, %v3614_v22, %v3615_v28  ;;  %v3616_v48 = vrot.slane %v3517_v6, 1  ;;  %v8493_v11 = vpop.f32.mrb[111].mxu0  ;;  %v7399_v6 = vunpack.c.h.bf16 %v7441_v14 }
 0x3c0   : > { %v3874_v55 = vadd.f32 %v10937_v44, %v3837_v27  ;;  %v3675_v21 = vadd.f32 %v3643_v41, %v10691_v17  ;;  %v11027_v49 = vld [vmem:[#allocation2 + $0x24] sm:$0xff]   ;;  %8563 = vmatpush3.bf16.msra.mxu1 %v9461_v34 }
 0x3c1   : > { %v3642_v12 = vsel %vm3629_vm0, %v3615_v28, %v3616_v48  ;;  %8539 = vmatmul.mubr.bf16.gmra.mrb[168].mxu1 %v11027_v49  ;;  %8564 = vmatprep.subr.bf16.mxu1 %v9464_v15  ;;  %v9465_v17 = vld [vmem:[%s11791_s8 + $0x20] sm:$0xff]  }
 0x3c2   : > { %v3904_v5 = vmax.f32 %v3874_v55, 0.0  ;;  %v3765_v9 = vadd.f32 %v3735_v3, %v3675_v21  ;;  %v3676_v54 = vadd.f32 %v3642_v12, %v10706_v25  ;;  %v9472_v21 = vld [vmem:[%s11791_s8 + $0x38] sm:$0xff]  }
 0x3c4   : > { %v4085_v19 = vsel %vm3956_vm8, %v3904_v5, 0.0  ;;  %v3802_v42 = vadd.f32 %v10921_v59, %v3765_v9  ;;  %v3766_v45 = vadd.f32 %v3736_v62, %v3676_v54  ;;  %v3522_v33 = vpop.f32.mrb[112].mxu0  ;;  %8565 = vmatpush3.bf16.msra.mxu1 %v9464_v15  ;;  %v3928_v5 = vadd.s32 6, %v10939_v61  ;;  %v11082_v54 = vld [vmem:[%s11791_s8 + $0x180] sm:$0xff]  }
 0x3c5   : > { %v7417_v50 = vpack.c.bf16 %v4085_v19, %v4084_v23  ;;  %v8496_v53 = vpop.f32.mrb[113].mxu0  ;;  %8566 = vmatprep.subr.bf16.mxu1 %v9465_v17  ;;  %v3617_v37 = vrot.slane %v3522_v33, 1 }
 0x3c6   : > { %v3839_v1 = vmul.f32 %v10926_v29, %v3802_v42  ;;  %v3803_v25 = vadd.f32 %v10921_v59, %v3766_v45  ;;  %v3525_v40 = vpop.f32.mrb[114].mxu0  ;;  %vm3938_vm12 = vcmp.ge.s32.totalorder %v3928_v5, 0  ;;  %vm3948_vm13 = vcmp.lt.s32.totalorder %v3928_v5, 16 }
 0x3c7   : > { %7444 = vst [vmem:[#allocation2 + $0x30] sm:$0xff] %v7417_v50   ;;  %v3618_v24 = vrot.slane %v3525_v40, 1  ;;  %v8497_v63 = vpop.f32.mrb[115].mxu0  ;;  %v3741_v50 = vunpack.c.l.bf16 %v3711_v10  ;;  %vm3958_vm14 = vmand %vm3938_vm12, %vm3948_vm13 }
 0x3c8   : > { %v3876_v31 = vadd.f32 %v10937_v44, %v3839_v1  ;;  %v3840_v60 = vmul.f32 %v10926_v29, %v3803_v25  ;;  %8567 = vmatpush3.bf16.msra.mxu1 %v9465_v17 }
 0x3c9   : > { %v3640_v52 = vsel %vm3629_vm0, %v3617_v37, %v3618_v24  ;;  %8568 = vmatprep.subr.bf16.mxu1 %v9467_v2 }
 0x3ca   : > { %v3906_v47 = vmax.f32 %v3876_v31, 0.0  ;;  %v3877_v35 = vadd.f32 %v10937_v44, %v3840_v60  ;;  %v3678_v34 = vadd.f32 %v3640_v52, %v10722_v18 }
 0x3cc   : > { %v4087_v43 = vsel %vm11048_vm11, %v3906_v47, 0.0  ;;  %v3907_v0 = vmax.f32 %v3877_v35, 0.0  ;;  %v3768_v13 = vadd.f32 %v7398_v46, %v3678_v34  ;;  %v3530_v22 = vpop.f32.mrb[116].mxu0  ;;  %8569 = vmatpush3.bf16.msra.mxu1 %v9467_v2 }
 0x3cd   : > { %v7320_v28 = vpack.c.bf16 %v4087_v43, %v4087_v43  ;;  %v3619_v58 = vrot.slane %v3530_v22, 1  ;;  %v8500_v27 = vpop.f32.mrb[117].mxu0  ;;  %8570 = vmatprep.subr.bf16.mxu1 %v9468_v7 }
 0x3ce   : > { %v4088_v3 = vsel %vm11048_vm11, %v3907_v0, 0.0  ;;  %v3805_v18 = vadd.f32 %v10921_v59, %v3768_v13  ;;  %v3533_v15 = vpop.f32.mrb[118].mxu0  ;;  %v11064_v41 = vld [vmem:[#allocation2 + $0x2c] sm:$0xff]   ;;  %v11066_v48 = vld [vmem:[#allocation2 + $0x34] sm:$0xff]   ;;  %v7442_v13 = vld [vmem:[%s10910_s13 + $0x60] sm:$0xff]  }
 0x3cf   : > { %4247 = vst [vmem:[#allocation2 + $0x3c] sm:$0xf] %v7320_v28  ;;  %v7321_v11 = vpack.c.bf16 %v4088_v3, %v4088_v3  ;;  %v3639_v57 = vsel %vm3629_vm0, %v3618_v24, %v3619_v58  ;;  %v8501_v55 = vpop.f32.mrb[119].mxu0  ;;  %8542 = vmatprep.mubr.bf16.mxu1 %v11064_v41  ;;  %v3620_v19 = vrot.slane %v3533_v15, 1  ;;  %v3742_v24 = vunpack.c.h.bf16 %v3711_v10 }
 0x3d0   : > { %v3842_v62 = vmul.f32 %v10926_v29, %v3805_v18  ;;  %v3679_v12 = vadd.f32 %v3639_v57, %v10727_v4  ;;  %8543 = vmatmul.mubr.bf16.gmra.mrb[172].mxu1 %v11066_v48  ;;  %v7402_v15 = vunpack.c.l.bf16 %v7442_v13 }
 0x3d1   : > { %4248 = vst [vmem:[#allocation2 + $0x40] sm:$0xf] %v7321_v11  ;;  %8571 = vmatpush3.bf16.msra.mxu1 %v9468_v7 }
 0x3d2   : > { %v3769_v9 = vadd.f32 %v7399_v6, %v3679_v12  ;;  %8572 = vmatprep.subr.bf16.mxu1 %v9472_v21  ;;  %v3879_v17 = vadd.f32 %v10937_v44, %v3842_v62 }
 0x3d4   : > { %v3806_v4 = vadd.f32 %v10921_v59, %v3769_v9  ;;  %v3538_v23 = vpop.f32.mrb[120].mxu0  ;;  %v3909_v40 = vmax.f32 %v3879_v17, 0.0 }
 0x3d5   : > { %v3621_v42 = vrot.slane %v3538_v23, 1  ;;  %v8504_v45 = vpop.f32.mrb[121].mxu0  ;;  %8573 = vmatpush3.bf16.msra.mxu1 %v9472_v21 }
 0x3d6   : > { %v3843_v33 = vmul.f32 %v10926_v29, %v3806_v4  ;;  %v3541_v53 = vpop.f32.mrb[122].mxu0  ;;  %8598 = vmatprep.subr.bf16.mxu1 %v11082_v54  ;;  %v4090_v47 = vsel %vm3958_vm14, %v3909_v40, 0.0  ;;  %v3930_v40 = vadd.s32 8, %v10939_v61 }
 0x3d7   : > { %v3637_v14 = vsel %vm3629_vm0, %v3620_v19, %v3621_v42  ;;  %v3622_v1 = vrot.slane %v3541_v53, 1  ;;  %v8505_v25 = vpop.f32.mrb[123].mxu0 }
 0x3d8   : > { %v3880_v2 = vadd.f32 %v10937_v44, %v3843_v33  ;;  %v3681_v37 = vadd.f32 %v3637_v14, %v10743_v56  ;;  %v11092_v63 = vld [vmem:[#allocation2 + $0x3c] sm:$0xff]   ;;  %vm3940_vm3 = vcmp.ge.s32.totalorder %v3930_v40, 0  ;;  %vm3950_vm4 = vcmp.lt.s32.totalorder %v3930_v40, 16  ;;  %v11183_v40 = vld [vmem:[#allocation2 + $0x30] sm:$0xff]  }
 0x3d9   : > { %v3636_v31 = vsel %vm3629_vm0, %v3621_v42, %v3622_v1  ;;  %8546 = vmatprep.mubr.bf16.mxu1 %v11092_v63  ;;  %v7403_v42 = vunpack.c.h.bf16 %v7442_v13  ;;  %vm3960_vm5 = vmand %vm3940_vm3, %vm3950_vm4 }
 0x3da   : > { %v3910_v60 = vmax.f32 %v3880_v2, 0.0  ;;  %v3771_v46 = vadd.f32 %v3741_v50, %v3681_v37  ;;  %v3682_v52 = vadd.f32 %v3636_v31, %v10754_v51  ;;  %v3717_v37 = vld [vmem:[%s10910_s13 + $0x6c] sm:$0xff]  }
 0x3dc   : > { %v4091_v35 = vsel %vm3958_vm14, %v3910_v60, 0.0  ;;  %v3808_v56 = vadd.f32 %v10921_v59, %v3771_v46  ;;  %v3772_v34 = vadd.f32 %v3742_v24, %v3682_v52  ;;  %v3546_v7 = vpop.f32.mrb[124].mxu0 }
 0x3dd   : > { %v7422_v43 = vpack.c.bf16 %v4091_v35, %v4090_v47  ;;  %v8508_v0 = vpop.f32.mrb[125].mxu0  ;;  %v3623_v51 = vrot.slane %v3546_v7, 1  ;;  %v3747_v47 = vunpack.c.l.bf16 %v3717_v37 }
 0x3de   : > { %v3845_v22 = vmul.f32 %v10926_v29, %v3808_v56  ;;  %v3809_v28 = vadd.f32 %v10921_v59, %v3772_v34  ;;  %v3549_v58 = vpop.f32.mrb[126].mxu0 }
 0x3df   : > { %7445 = vst [vmem:[#allocation2 + $0x48] sm:$0xff] %v7422_v43   ;;  %v3624_v27 = vrot.slane %v3549_v58, 1  ;;  %v8509_v3 = vpop.f32.mrb[127].mxu0 }
 0x3e0   : > { %v3882_v18 = vadd.f32 %v10937_v44, %v3845_v22  ;;  %v3846_v6 = vmul.f32 %v10926_v29, %v3809_v28  ;;  %v3748_v22 = vunpack.c.h.bf16 %v3717_v37  ;;  %v3931_v3 = vadd.s32 9, %v10939_v61  ;;  %v11190_v37 = vld [vmem:[#allocation2 + $0x38] sm:$0xff]  }
 0x3e1   : > { %v3634_v11 = vsel %vm3629_vm0, %v3623_v51, %v3624_v27 }
 0x3e2   : > { %v3912_v57 = vmax.f32 %v3882_v18, 0.0  ;;  %v3883_v55 = vadd.f32 %v10937_v44, %v3846_v6  ;;  %v3684_v21 = vadd.f32 %v3634_v11, %v10762_v39  ;;  %vm3941_vm6 = vcmp.ge.s32.totalorder %v3931_v3, 0 }
 0x3e3   : > { %vm3951_vm8 = vcmp.lt.s32.totalorder %v3931_v3, 16 }
 0x3e4   : > { %v4093_v62 = vsel %vm3959_vm2, %v3912_v57, 0.0  ;;  %v3913_v12 = vmax.f32 %v3883_v55, 0.0  ;;  %v3774_v5 = vadd.f32 %v7402_v15, %v3684_v21  ;;  %v3554_v9 = vpop.f32.mrb[128].mxu0  ;;  %vm3961_vm9 = vmand %vm3941_vm6, %vm3951_vm8 }
 0x3e5   : > { %v7324_v10 = vpack.c.bf16 %v4093_v62, %v4093_v62  ;;  %v3625_v17 = vrot.slane %v3554_v9, 1  ;;  %v8512_v4 = vpop.f32.mrb[129].mxu0 }
 0x3e6   : > { %v4094_v23 = vsel %vm3959_vm2, %v3913_v12, 0.0  ;;  %v3811_v19 = vadd.f32 %v10921_v59, %v3774_v5  ;;  %v3557_v45 = vpop.f32.mrb[130].mxu0  ;;  %v11111_v33 = vld [vmem:[#allocation2 + $0x44] sm:$0xff]   ;;  %v11113_v50 = vld [vmem:[#allocation2 + $0x4c] sm:$0xff]  }
 0x3e7   : > { %4253 = vst [vmem:[#allocation2 + $0x54] sm:$0xf] %v7324_v10  ;;  %v7325_v53 = vpack.c.bf16 %v4094_v23, %v4094_v23  ;;  %v3633_v39 = vsel %vm3629_vm0, %v3624_v27, %v3625_v17  ;;  %v8513_v14 = vpop.f32.mrb[131].mxu0  ;;  %8547 = vmatmul.mubr.bf16.gmra.mrb[176].mxu1 %v11111_v33  ;;  %v3626_v46 = vrot.slane %v3557_v45, 1  ;;  %v9479_v45 = vld [vmem:[%s11791_s8 + $0x190] sm:$0xff]  }
 0x3e8   : > { %v3848_v1 = vmul.f32 %v10926_v29, %v3811_v19  ;;  %v3685_v25 = vadd.f32 %v3633_v39, %v10767_v20  ;;  %8550 = vmatprep.mubr.bf16.mxu1 %v11113_v50  ;;  %v9482_v39 = vld [vmem:[%s11791_s8 + $0x198] sm:$0xff]   ;;  %v11171_v14 = vld [vmem:[#allocation2 + $0x20] sm:$0xff]  }
 0x3e9   : > { %4254 = vst [vmem:[#allocation2 + $0x58] sm:$0xf] %v7325_v53  ;;  %v11166_v53 = vld [vmem:[#allocation2 + $0x18] sm:$0xff]  }
 0x3ea   : > { %v3775_v2 = vadd.f32 %v7403_v42, %v3685_v25  ;;  %v3885_v24 = vadd.f32 %v10937_v44, %v3848_v1  ;;  %v11158_v42 = vld [vmem:[#allocation2 + $0x10] sm:$0xff]   ;;  %v11178_v1 = vld [vmem:[#allocation2 + $0x28] sm:$0xff]  }
 0x3eb   : > { %v9486_v25 = vld [vmem:[%s11791_s8 + $0x1a8] sm:$0xff]  }
 0x3ec   : > { %v3812_v31 = vadd.f32 %v10921_v59, %v3775_v2  ;;  %v3562_v60 = vpop.f32.mrb[132].mxu0  ;;  %v3915_v43 = vmax.f32 %v3885_v24, 0.0  ;;  %v9489_v2 = vld [vmem:[%s11791_s8 + $0x1b0] sm:$0xff]   ;;  %v9492_v24 = vld [vmem:[%s11791_s8 + $0x1b8] sm:$0xff]  }
 0x3ed   : > { %v3627_v16 = vrot.slane %v3562_v60, 1  ;;  %v8516_v52 = vpop.f32.mrb[133].mxu0  ;;  %v9494_v60 = vld [vmem:[%s11791_s8 + $0x100] sm:$0xff]  }
 0x3ee   : > { %v3849_v20 = vmul.f32 %v10926_v29, %v3812_v31  ;;  %v3565_v35 = vpop.f32.mrb[134].mxu0  ;;  %v4096_v6 = vsel %vm3960_vm5, %v3915_v43, 0.0  ;;  %v11195_v31 = vld [vmem:[#allocation2 + $0x40] sm:$0xff]   ;;  %v9502_v43 = vld [vmem:[%s11791_s8 + $0x118] sm:$0xff]   ;;  %v11250_v3 = vld [vmem:[#allocation2 + $0x50] sm:$0xff]  }
 0x3ef   : > { %v3631_v56 = vsel %vm3629_vm0, %v3626_v46, %v3627_v16  ;;  %v3628_v34 = vrot.slane %v3565_v35, 1  ;;  %v8517_v7 = vpop.f32.mrb[135].mxu0  ;;  %v11202_v46 = vld [vmem:[#allocation2 + $0x48] sm:$0xff]  }
 0x3f0   : > { %v3886_v0 = vadd.f32 %v10937_v44, %v3849_v20  ;;  %v3687_v13 = vadd.f32 %v3631_v56, %v10773_v8  ;;  %v11130_v28 = vld [vmem:[#allocation2 + $0x54] sm:$0xff]   ;;  %v9496_v35 = vld [vmem:[%s11791_s8 + $0x108] sm:$0xff]  }
 0x3f1   : > { %v3630_v58 = vsel %vm3629_vm0, %v3627_v16, %v3628_v34  ;;  %8551 = vmatmul.mubr.bf16.gmra.mrb[180].mxu1 %v11130_v28  ;;  %v11204_v16 = vld [vmem:[#allocation2 + $0x50] sm:$0xff]   ;;  %v11208_v52 = vld [vmem:[#allocation2 + $0x58] sm:$0xff]   ;;  %v11219_v56 = vld [vmem:[#allocation2 + $0x28] sm:$0xff]  }
 0x3f2   : > { %v3916_v51 = vmax.f32 %v3886_v0, 0.0  ;;  %v3777_v27 = vadd.f32 %v3747_v47, %v3687_v13  ;;  %v3688_v18 = vadd.f32 %v3630_v58, %v10779_v26  ;;  %v11210_v20 = vld [vmem:[#allocation2 + $0x18] sm:$0xff]   ;;  %v11214_v47 = vld [vmem:[#allocation2 + $0x20] sm:$0xff]   ;;  %v9499_v34 = vld [vmem:[%s11791_s8 + $0x110] sm:$0xff]  }
 0x3f3   : > { %v11226_v7 = vld [vmem:[#allocation2 + $0x30] sm:$0xff]   ;;  %v11231_v0 = vld [vmem:[#allocation2 + $0x38] sm:$0xff]   ;;  %v9504_v13 = vld [vmem:[%s11791_s8 + $0x120] sm:$0xff]  }
 0x3f4   : > { %v4097_v15 = vsel %vm3960_vm5, %v3916_v51, 0.0  ;;  %v3814_v8 = vadd.f32 %v10921_v59, %v3777_v27  ;;  %v3778_v11 = vadd.f32 %v3748_v22, %v3688_v18  ;;  %v11238_v22 = vld [vmem:[#allocation2 + $0x40] sm:$0xff]   ;;  %v9506_v58 = vld [vmem:[%s11791_s8 + $0x128] sm:$0xff]   ;;  %v9509_v27 = vld [vmem:[%s11791_s8 + $0x130] sm:$0xff]  }
 0x3f5   : > { %v7427_v57 = vpack.c.bf16 %v4097_v15, %v4096_v6  ;;  %v11243_v51 = vld [vmem:[#allocation2 + $0x48] sm:$0xff]   ;;  %v9511_v18 = vld [vmem:[%s11791_s8 + $0x138] sm:$0xff]   ;;  %v9512_v15 = vld [vmem:[%s11791_s8 + $0x40] sm:$0xff]  }
 0x3f6   : > { %v3851_v55 = vmul.f32 %v10926_v29, %v3814_v8  ;;  %v3815_v21 = vadd.f32 %v10921_v59, %v3778_v11  ;;  %v11149_v59 = vld [vmem:[#allocation2] sm:$0xff]   ;;  %v11255_v6 = vld [vmem:[#allocation2 + $0x58] sm:$0xff]  }
 0x3f7   : > { %7446 = vst [vmem:[#allocation2 + $0x60] sm:$0xff] %v7427_v57  }
 0x3f8   : > { %v3888_v62 = vadd.f32 %v10937_v44, %v3851_v55  ;;  %v3852_v61 = vmul.f32 %v10926_v29, %v3815_v21  ;;  %v11153_v29 = vld [vmem:[#allocation2 + $0x8] sm:$0xff]   ;;  %v9514_v21 = vld [vmem:[%s11791_s8 + $0x50] sm:$0xff]  }
 0x3f9   : > { %v9513_v55 = vld [vmem:[%s11791_s8 + $0x48] sm:$0xff]  }
 0x3fa   : > { %v3918_v26 = vmax.f32 %v3888_v62, 0.0  ;;  %v3889_v12 = vadd.f32 %v10937_v44, %v3852_v61  ;;  %v9476_v44 = vld [vmem:[%s11791_s8 + $0x188] sm:$0xff]   ;;  %v9516_v62 = vld [vmem:[%s11791_s8 + $0x60] sm:$0xff]  }
 0x3fb   : > { %v9517_v61 = vld [vmem:[%s11791_s8 + $0x68] sm:$0xff]  }
 0x3fc   : > { %v4099_v5 = vsel %vm3961_vm9, %v3918_v26, 0.0  ;;  %v3919_v9 = vmax.f32 %v3889_v12, 0.0  ;;  %v9518_v26 = vld [vmem:[%s11791_s8 + $0x70] sm:$0xff]   ;;  %v9519_v12 = vld [vmem:[%s11791_s8 + $0x78] sm:$0xff]  }
 0x3fd   : > { %v7328_v10 = vpack.c.bf16 %v4099_v5, %v4099_v5  ;;  %v9520_v5 = vld [vmem:[%s11791_s8 + $0x1c0] sm:$0xff]  }
 0x3fe   : > { %v4100_v17 = vsel %vm3961_vm9, %v3919_v9, 0.0  ;;  %v11144_v4 = vld [vmem:[#allocation2 + $0x5c] sm:$0xff]   ;;  %v11146_v19 = vld [vmem:[#allocation2 + $0x64] sm:$0xff]  }
 0x3ff   : > { %4259 = vst [vmem:[#allocation2 + $0x6c] sm:$0xf] %v7328_v10  ;;  %v7329_v23 = vpack.c.bf16 %v4100_v17, %v4100_v17  ;;  %8554 = vmatprep.mubr.bf16.mxu1 %v11144_v4  ;;  %v11262_v8 = vld [vmem:[#allocation2 + $0x60] sm:$0xff]   ;;  %v9521_v9 = vld [vmem:[%s11791_s8 + $0x1c8] sm:$0xff]   ;;  %v9522_v10 = vld [vmem:[%s11791_s8 + $0x1d0] sm:$0xff]  }
 0x400   : > { %8555 = vmatmul.mubr.bf16.gmra.mrb[184].mxu1 %v11146_v19  ;;  %v9523_v17 = vld [vmem:[%s11791_s8 + $0x1d8] sm:$0xff]  }
 0x401   : > { %4260 = vst [vmem:[#allocation2 + $0x70] sm:$0xf] %v7329_v23  ;;  %8574 = vmatprep.mubr.bf16.mxu1 %v11149_v59  ;;  %v9524_v23 = vld [vmem:[%s11791_s8 + $0x1e0] sm:$0xff]  }
 0x406   : > { %v11264_v11 = vld [vmem:[#allocation2 + $0x68] sm:$0xff]  }
 0x408   : > { %8575 = vmatmul.mubr.bf16.vlgmr.msra.gmra.mrb[164].mxu1 %v11153_v29  ;;  %v11268_v57 = vld [vmem:[#allocation2 + $0x70] sm:$0xff]  }
 0x409   : > { %8578 = vmatprep.mubr.bf16.mxu1 %v11158_v42  ;;  %8599 = vmatpush3.bf16.msra.mxu1 %v11082_v54  ;;  %v9484_v54 = vld [vmem:[%s11791_s8 + $0x1a0] sm:$0xff]  }
 0x40a   : > { %8600 = vmatprep.subr.bf16.mxu1 %v9476_v44 }
 0x40d   : > { %8601 = vmatpush3.bf16.msra.mxu1 %v9476_v44  ;;  %v9525_v44 = vld [vmem:[%s11791_s8 + $0x1e8] sm:$0xff]  }
 0x40e   : > { %8602 = vmatprep.subr.bf16.mxu1 %v9479_v45 }
 0x410   : > { %8579 = vmatmul.mubr.bf16.gmra.mrb[168].mxu1 %v11166_v53 }
 0x411   : > { %8582 = vmatprep.mubr.bf16.mxu1 %v11171_v14  ;;  %8603 = vmatpush3.bf16.msra.mxu1 %v9479_v45  ;;  %v9526_v45 = vld [vmem:[%s11791_s8 + $0x1f0] sm:$0xff]  }
 0x412   : > { %8604 = vmatprep.subr.bf16.mxu1 %v9482_v39 }
 0x415   : > { %8605 = vmatpush3.bf16.msra.mxu1 %v9482_v39  ;;  %v9527_v39 = vld [vmem:[%s11791_s8 + $0x1f8] sm:$0xff]  }
 0x416   : > { %8606 = vmatprep.subr.bf16.mxu1 %v9484_v54 }
 0x418   : > { %8583 = vmatmul.mubr.bf16.gmra.mrb[172].mxu1 %v11178_v1 }
 0x419   : > { %8586 = vmatprep.mubr.bf16.mxu1 %v11183_v40  ;;  %8607 = vmatpush3.bf16.msra.mxu1 %v9484_v54  ;;  %v9528_v54 = vld [vmem:[%s11791_s8 + $0x140] sm:$0xff]  }
 0x41a   : > { %8608 = vmatprep.subr.bf16.mxu1 %v9486_v25 }
 0x41d   : > { %8609 = vmatpush3.bf16.msra.mxu1 %v9486_v25  ;;  %v9529_v25 = vld [vmem:[%s11791_s8 + $0x148] sm:$0xff]  }
 0x41e   : > { %8610 = vmatprep.subr.bf16.mxu1 %v9489_v2 }
 0x420   : > { %8587 = vmatmul.mubr.bf16.gmra.mrb[176].mxu1 %v11190_v37 }
 0x421   : > { %8590 = vmatprep.mubr.bf16.mxu1 %v11195_v31  ;;  %8611 = vmatpush3.bf16.msra.mxu1 %v9489_v2  ;;  %v9530_v2 = vld [vmem:[%s11791_s8 + $0x150] sm:$0xff]  }
 0x422   : > { %8612 = vmatprep.subr.bf16.mxu1 %v9492_v24 }
 0x425   : > { %8613 = vmatpush3.bf16.msra.mxu1 %v9492_v24  ;;  %v9531_v24 = vld [vmem:[%s11791_s8 + $0x158] sm:$0xff]  }
 0x426   : > { %8638 = vmatprep.subr.bf16.mxu1 %v9494_v60 }
 0x428   : > { %8591 = vmatmul.mubr.bf16.gmra.mrb[180].mxu1 %v11202_v46 }
 0x429   : > { %8594 = vmatprep.mubr.bf16.mxu1 %v11204_v16 }
 0x430   : > { %8595 = vmatmul.mubr.bf16.gmra.mrb[184].mxu1 %v11208_v52 }
 0x431   : > { %8614 = vmatprep.mubr.bf16.mxu1 %v11210_v20 }
 0x438   : > { %8615 = vmatmul.mubr.bf16.vlgmr.msra.gmra.mrb[164].mxu1 %v11214_v47 }
 0x439   : > { %8618 = vmatprep.mubr.bf16.mxu1 %v11219_v56  ;;  %8639 = vmatpush3.bf16.msra.mxu1 %v9494_v60  ;;  %v9532_v60 = vld [vmem:[%s11791_s8 + $0x160] sm:$0xff]  }
 0x43a   : > { %8640 = vmatprep.subr.bf16.mxu1 %v9496_v35 }
 0x43d   : > { %8641 = vmatpush3.bf16.msra.mxu1 %v9496_v35  ;;  %v9533_v35 = vld [vmem:[%s11791_s8 + $0x168] sm:$0xff]  }
 0x43e   : > { %8642 = vmatprep.subr.bf16.mxu1 %v9499_v34 }
 0x440   : > { %8619 = vmatmul.mubr.bf16.gmra.mrb[168].mxu1 %v11226_v7 }
 0x441   : > { %8622 = vmatprep.mubr.bf16.mxu1 %v11231_v0  ;;  %8643 = vmatpush3.bf16.msra.mxu1 %v9499_v34  ;;  %v9534_v34 = vld [vmem:[%s11791_s8 + $0x170] sm:$0xff]  }
 0x442   : > { %8644 = vmatprep.subr.bf16.mxu1 %v9502_v43 }
 0x445   : > { %8645 = vmatpush3.bf16.msra.mxu1 %v9502_v43  ;;  %v9535_v43 = vld [vmem:[%s11791_s8 + $0x178] sm:$0xff]  }
 0x446   : > { %8646 = vmatprep.subr.bf16.mxu1 %v9504_v13 }
 0x448   : > { %8623 = vmatmul.mubr.bf16.gmra.mrb[172].mxu1 %v11238_v22 }
 0x449   : > { %8626 = vmatprep.mubr.bf16.mxu1 %v11243_v51  ;;  %8647 = vmatpush3.bf16.msra.mxu1 %v9504_v13  ;;  %v9536_v13 = vld [vmem:[%s11791_s8 + $0x80] sm:$0xff]  }
 0x44a   : > { %8648 = vmatprep.subr.bf16.mxu1 %v9506_v58 }
 0x44d   : > { %8649 = vmatpush3.bf16.msra.mxu1 %v9506_v58  ;;  %v9577_v58 = vld [vmem:[#allocation2 + $0xc] sm:$0xff]  }
 0x44e   : > { %8650 = vmatprep.subr.bf16.mxu1 %v9509_v27 }
 0x450   : > { %8627 = vmatmul.mubr.bf16.gmra.mrb[176].mxu1 %v11250_v3 }
 0x451   : > { %8630 = vmatprep.mubr.bf16.mxu1 %v11255_v6  ;;  %8651 = vmatpush3.bf16.msra.mxu1 %v9509_v27  ;;  %v9537_v27 = vld [vmem:[%s11791_s8 + $0x88] sm:$0xff]  }
 0x452   : > { %8652 = vmatprep.subr.bf16.mxu1 %v9511_v18 }
 0x455   : > { %8653 = vmatpush3.bf16.msra.mxu1 %v9511_v18  ;;  %v9538_v18 = vld [vmem:[%s11791_s8 + $0x90] sm:$0xff]  }
 0x456   : > { %8678 = vmatprep.subr.bf16.mxu1 %v9512_v15 }
 0x458   : > { %8631 = vmatmul.mubr.bf16.gmra.mrb[180].mxu1 %v11262_v8 }
 0x459   : > { %8634 = vmatprep.mubr.bf16.mxu1 %v11264_v11 }
 0x460   : > { %8635 = vmatmul.mubr.bf16.gmra.mrb[184].mxu1 %v11268_v57 }
 0x461   : > { %8654 = vmatprep.mubr.bf16.mxu1 %v10979_v30  ;;  %v9515_v30 = vld [vmem:[%s11791_s8 + $0x58] sm:$0xff]  }
 0x468   : > { %8655 = vmatmul.mubr.bf16.vlgmr.msra.gmra.mrb[188].mxu1 %v11001_v38 }
 0x469   : > { %8658 = vmatprep.mubr.bf16.mxu1 %v11003_v32  ;;  %8679 = vmatpush3.bf16.msra.mxu1 %v9512_v15  ;;  %v9539_v15 = vld [vmem:[%s11791_s8 + $0x98] sm:$0xff]  }
 0x46a   : > { %8680 = vmatprep.subr.bf16.mxu1 %v9513_v55 }
 0x46d   : > { %8681 = vmatpush3.bf16.msra.mxu1 %v9513_v55 }
 0x46e   : > { %8682 = vmatprep.subr.bf16.mxu1 %v9514_v21 }
 0x470   : > { %8659 = vmatmul.mubr.bf16.gmra.mrb[192].mxu1 %v11027_v49 }
 0x471   : > { %8662 = vmatprep.mubr.bf16.mxu1 %v11064_v41  ;;  %8683 = vmatpush3.bf16.msra.mxu1 %v9514_v21 }
 0x472   : > { %8684 = vmatprep.subr.bf16.mxu1 %v9515_v30 }
 0x475   : > { %8685 = vmatpush3.bf16.msra.mxu1 %v9515_v30 }
 0x476   : > { %8686 = vmatprep.subr.bf16.mxu1 %v9516_v62 }
 0x478   : > { %8663 = vmatmul.mubr.bf16.gmra.mrb[196].mxu1 %v11066_v48 }
 0x479   : > { %8666 = vmatprep.mubr.bf16.mxu1 %v11092_v63  ;;  %8687 = vmatpush3.bf16.msra.mxu1 %v9516_v62 }
 0x47a   : > { %8688 = vmatprep.subr.bf16.mxu1 %v9517_v61 }
 0x47d   : > { %8689 = vmatpush3.bf16.msra.mxu1 %v9517_v61 }
 0x47e   : > { %8690 = vmatprep.subr.bf16.mxu1 %v9518_v26 }
 0x480   : > { %8667 = vmatmul.mubr.bf16.gmra.mrb[200].mxu1 %v11111_v33 }
 0x481   : > { %8670 = vmatprep.mubr.bf16.mxu1 %v11113_v50  ;;  %8691 = vmatpush3.bf16.msra.mxu1 %v9518_v26 }
 0x482   : > { %8692 = vmatprep.subr.bf16.mxu1 %v9519_v12 }
 0x485   : > { %8693 = vmatpush3.bf16.msra.mxu1 %v9519_v12 }
 0x486   : > { %8718 = vmatprep.subr.bf16.mxu1 %v9520_v5 }
 0x488   : > { %8671 = vmatmul.mubr.bf16.gmra.mrb[204].mxu1 %v11130_v28 }
 0x489   : > { %8674 = vmatprep.mubr.bf16.mxu1 %v11144_v4 }
 0x490   : > { %8675 = vmatmul.mubr.bf16.gmra.mrb[208].mxu1 %v11146_v19 }
 0x491   : > { %8694 = vmatprep.mubr.bf16.mxu1 %v11149_v59 }
 0x498   : > { %8695 = vmatmul.mubr.bf16.vlgmr.msra.gmra.mrb[188].mxu1 %v11153_v29 }
 0x499   : > { %8698 = vmatprep.mubr.bf16.mxu1 %v11158_v42  ;;  %8719 = vmatpush3.bf16.msra.mxu1 %v9520_v5 }
 0x49a   : > { %8720 = vmatprep.subr.bf16.mxu1 %v9521_v9 }
 0x49d   : > { %8721 = vmatpush3.bf16.msra.mxu1 %v9521_v9 }
 0x49e   : > { %8722 = vmatprep.subr.bf16.mxu1 %v9522_v10 }
 0x4a0   : > { %8699 = vmatmul.mubr.bf16.gmra.mrb[192].mxu1 %v11166_v53 }
 0x4a1   : > { %8702 = vmatprep.mubr.bf16.mxu1 %v11171_v14  ;;  %8723 = vmatpush3.bf16.msra.mxu1 %v9522_v10 }
 0x4a2   : > { %8724 = vmatprep.subr.bf16.mxu1 %v9523_v17 }
 0x4a5   : > { %8725 = vmatpush3.bf16.msra.mxu1 %v9523_v17 }
 0x4a6   : > { %8726 = vmatprep.subr.bf16.mxu1 %v9524_v23 }
 0x4a8   : > { %8703 = vmatmul.mubr.bf16.gmra.mrb[196].mxu1 %v11178_v1 }
 0x4a9   : > { %8706 = vmatprep.mubr.bf16.mxu1 %v11183_v40  ;;  %8727 = vmatpush3.bf16.msra.mxu1 %v9524_v23 }
 0x4aa   : > { %8728 = vmatprep.subr.bf16.mxu1 %v9525_v44 }
 0x4ad   : > { %8729 = vmatpush3.bf16.msra.mxu1 %v9525_v44 }
 0x4ae   : > { %8730 = vmatprep.subr.bf16.mxu1 %v9526_v45 }
 0x4b0   : > { %8707 = vmatmul.mubr.bf16.gmra.mrb[200].mxu1 %v11190_v37 }
 0x4b1   : > { %8710 = vmatprep.mubr.bf16.mxu1 %v11195_v31  ;;  %8731 = vmatpush3.bf16.msra.mxu1 %v9526_v45 }
 0x4b2   : > { %8732 = vmatprep.subr.bf16.mxu1 %v9527_v39 }
 0x4b5   : > { %8733 = vmatpush3.bf16.msra.mxu1 %v9527_v39 }
 0x4b6   : > { %8758 = vmatprep.subr.bf16.mxu1 %v9528_v54 }
 0x4b8   : > { %8711 = vmatmul.mubr.bf16.gmra.mrb[204].mxu1 %v11202_v46 }
 0x4b9   : > { %8714 = vmatprep.mubr.bf16.mxu1 %v11204_v16 }
 0x4c0   : > { %8715 = vmatmul.mubr.bf16.gmra.mrb[208].mxu1 %v11208_v52 }
 0x4c1   : > { %8734 = vmatprep.mubr.bf16.mxu1 %v11210_v20 }
 0x4c8   : > { %8735 = vmatmul.mubr.bf16.vlgmr.msra.gmra.mrb[188].mxu1 %v11214_v47 }
 0x4c9   : > { %8738 = vmatprep.mubr.bf16.mxu1 %v11219_v56  ;;  %8759 = vmatpush3.bf16.msra.mxu1 %v9528_v54 }
 0x4ca   : > { %8760 = vmatprep.subr.bf16.mxu1 %v9529_v25 }
 0x4cd   : > { %8761 = vmatpush3.bf16.msra.mxu1 %v9529_v25 }
 0x4ce   : > { %8762 = vmatprep.subr.bf16.mxu1 %v9530_v2 }
 0x4d0   : > { %8739 = vmatmul.mubr.bf16.gmra.mrb[192].mxu1 %v11226_v7 }
 0x4d1   : > { %8742 = vmatprep.mubr.bf16.mxu1 %v11231_v0  ;;  %8763 = vmatpush3.bf16.msra.mxu1 %v9530_v2 }
 0x4d2   : > { %8764 = vmatprep.subr.bf16.mxu1 %v9531_v24 }
 0x4d5   : > { %8765 = vmatpush3.bf16.msra.mxu1 %v9531_v24 }
 0x4d6   : > { %8766 = vmatprep.subr.bf16.mxu1 %v9532_v60 }
 0x4d8   : > { %8743 = vmatmul.mubr.bf16.gmra.mrb[196].mxu1 %v11238_v22 }
 0x4d9   : > { %8746 = vmatprep.mubr.bf16.mxu1 %v11243_v51  ;;  %8767 = vmatpush3.bf16.msra.mxu1 %v9532_v60 }
 0x4da   : > { %8768 = vmatprep.subr.bf16.mxu1 %v9533_v35 }
 0x4dd   : > { %8769 = vmatpush3.bf16.msra.mxu1 %v9533_v35 }
 0x4de   : > { %8770 = vmatprep.subr.bf16.mxu1 %v9534_v34 }
 0x4e0   : > { %8747 = vmatmul.mubr.bf16.gmra.mrb[200].mxu1 %v11250_v3 }
 0x4e1   : > { %8750 = vmatprep.mubr.bf16.mxu1 %v11255_v6  ;;  %8771 = vmatpush3.bf16.msra.mxu1 %v9534_v34 }
 0x4e2   : > { %8772 = vmatprep.subr.bf16.mxu1 %v9535_v43 }
 0x4e5   : > { %8773 = vmatpush3.bf16.msra.mxu1 %v9535_v43 }
 0x4e6   : > { %8798 = vmatprep.subr.bf16.mxu1 %v9536_v13 }
 0x4e8   : > { %8751 = vmatmul.mubr.bf16.gmra.mrb[204].mxu1 %v11262_v8 }
 0x4e9   : > { %8754 = vmatprep.mubr.bf16.mxu1 %v11264_v11 }
 0x4f0   : > { %8755 = vmatmul.mubr.bf16.gmra.mrb[208].mxu1 %v11268_v57 }
 0x4f1   : > { %8774 = vmatprep.mubr.bf16.mxu1 %v9577_v58 }
 0x4f8   : > { %8775 = vmatmul.mubr.bf16.vlgmr.msra.gmra.mrb[212].mxu1 %v11001_v38  ;;  %v9540_v38 = vld [vmem:[%s11791_s8 + $0xa0] sm:$0xff]  }
 0x4f9   : > { %8778 = vmatprep.mubr.bf16.mxu1 %v11003_v32  ;;  %8799 = vmatpush3.bf16.msra.mxu1 %v9536_v13  ;;  %v9541_v32 = vld [vmem:[%s11791_s8 + $0xa8] sm:$0xff]  }
 0x4fa   : > { %8800 = vmatprep.subr.bf16.mxu1 %v9537_v27 }
 0x4fd   : > { %8801 = vmatpush3.bf16.msra.mxu1 %v9537_v27 }
 0x4fe   : > { %8802 = vmatprep.subr.bf16.mxu1 %v9538_v18 }
 0x500   : > { %8779 = vmatmul.mubr.bf16.gmra.mrb[216].mxu1 %v11027_v49  ;;  %v9542_v49 = vld [vmem:[%s11791_s8 + $0xb0] sm:$0xff]  }
 0x501   : > { %8782 = vmatprep.mubr.bf16.mxu1 %v11064_v41  ;;  %8803 = vmatpush3.bf16.msra.mxu1 %v9538_v18 }
 0x502   : > { %8804 = vmatprep.subr.bf16.mxu1 %v9539_v15 }
 0x505   : > { %8805 = vmatpush3.bf16.msra.mxu1 %v9539_v15 }
 0x506   : > { %8806 = vmatprep.subr.bf16.mxu1 %v9540_v38 }
 0x508   : > { %8783 = vmatmul.mubr.bf16.gmra.mrb[220].mxu1 %v11066_v48  ;;  %v9543_v48 = vld [vmem:[%s11791_s8 + $0xb8] sm:$0xff]  }
 0x509   : > { %8786 = vmatprep.mubr.bf16.mxu1 %v11092_v63  ;;  %8807 = vmatpush3.bf16.msra.mxu1 %v9540_v38 }
 0x50a   : > { %8808 = vmatprep.subr.bf16.mxu1 %v9541_v32 }
 0x50b   : > { %v8616_v41 = vpop.f32.mrb[164].mxu1 }
 0x50c   : > { %v11403_v55 = vpop.f32.mrb[165].mxu1  ;;  %v5157_v30 = vrot.slane %v8616_v41, 7 }
 0x50d   : > { %v8617_v21 = vpop.f32.mrb[166].mxu1  ;;  %8809 = vmatpush3.bf16.msra.mxu1 %v9541_v32  ;;  %v5155_v63 = vrot.slane %v11403_v55, 7 }
 0x50e   : > { %v5158_v62 = vrot.slane %v8617_v21, 7  ;;  %v5039_v61 = vpop.f32.mrb[167].mxu1  ;;  %8810 = vmatprep.subr.bf16.mxu1 %v9542_v49 }
 0x50f   : > { %v5156_v26 = vrot.slane %v5039_v61, 7 }
 0x510   : > { %8787 = vmatmul.mubr.bf16.gmra.mrb[224].mxu1 %v11111_v33  ;;  %v11412_v12 = vsel %vm2140_vm7, %v5157_v30, %v5158_v62  ;;  %v9544_v33 = vld [vmem:[%s11791_s8 + $0x200] sm:$0xff]  }
 0x511   : > { %8790 = vmatprep.mubr.bf16.mxu1 %v11113_v50  ;;  %8811 = vmatpush3.bf16.msra.mxu1 %v9542_v49  ;;  %v11417_v5 = vsel %vm2140_vm7, %v5156_v26, %v5157_v30  ;;  %v11423_v9 = vsel %vm2140_vm7, %v5155_v63, %v5156_v26 }
 0x512   : > { %8812 = vmatprep.subr.bf16.mxu1 %v9543_v48 }
 0x513   : > { %v8620_v10 = vpop.f32.mrb[168].mxu1 }
 0x514   : > { %v5052_v17 = vpop.f32.mrb[169].mxu1  ;;  %v5161_v44 = vrot.slane %v8620_v10, 7 }
 0x515   : > { %v5159_v23 = vrot.slane %v5052_v17, 7  ;;  %v8621_v50 = vpop.f32.mrb[170].mxu1  ;;  %8813 = vmatpush3.bf16.msra.mxu1 %v9543_v48  ;;  %v9545_v48 = vld [vmem:[%s11791_s8 + $0x208] sm:$0xff]  }
 0x516   : > { %v5162_v45 = vrot.slane %v8621_v50, 7  ;;  %v5055_v39 = vpop.f32.mrb[171].mxu1  ;;  %8838 = vmatprep.subr.bf16.mxu1 %v9544_v33 }
 0x517   : > { %v5160_v54 = vrot.slane %v5055_v39, 7  ;;  %v11430_v25 = vsel %vm2140_vm7, %v5158_v62, %v5159_v23 }
 0x518   : > { %8791 = vmatmul.mubr.bf16.gmra.mrb[228].mxu1 %v11130_v28  ;;  %v11435_v2 = vsel %vm2140_vm7, %v5161_v44, %v5162_v45 }
 0x519   : > { %8794 = vmatprep.mubr.bf16.mxu1 %v11144_v4  ;;  %v11440_v24 = vsel %vm2140_vm7, %v5160_v54, %v5161_v44  ;;  %v11444_v60 = vsel %vm2140_vm7, %v5159_v23, %v5160_v54 }
 0x51b   : > { %v8624_v35 = vpop.f32.mrb[172].mxu1 }
 0x51c   : > { %v5068_v34 = vpop.f32.mrb[173].mxu1  ;;  %v5165_v58 = vrot.slane %v8624_v35, 7  ;;  %v9547_v35 = vld [vmem:[%s11791_s8 + $0x218] sm:$0xff]  }
 0x51d   : > { %v5163_v43 = vrot.slane %v5068_v34, 7  ;;  %v8625_v13 = vpop.f32.mrb[174].mxu1 }
 0x51e   : > { %v5166_v28 = vrot.slane %v8625_v13, 7  ;;  %v5071_v27 = vpop.f32.mrb[175].mxu1 }
 0x51f   : > { %v5164_v18 = vrot.slane %v5071_v27, 7  ;;  %v11448_v15 = vsel %vm2140_vm7, %v5162_v45, %v5163_v43 }
 0x520   : > { %8795 = vmatmul.mubr.bf16.gmra.mrb[232].mxu1 %v11146_v19  ;;  %v11453_v4 = vsel %vm2140_vm7, %v5165_v58, %v5166_v28 }
 0x521   : > { %8814 = vmatprep.mubr.bf16.mxu1 %v11149_v59  ;;  %v11458_v38 = vsel %vm2140_vm7, %v5164_v18, %v5165_v58  ;;  %v11462_v32 = vsel %vm2140_vm7, %v5163_v43, %v5164_v18 }
 0x523   : > { %v8628_v49 = vpop.f32.mrb[176].mxu1 }
 0x524   : > { %v5084_v41 = vpop.f32.mrb[177].mxu1  ;;  %v5169_v62 = vrot.slane %v8628_v49, 7 }
 0x525   : > { %v5167_v21 = vrot.slane %v5084_v41, 7  ;;  %v8629_v30 = vpop.f32.mrb[178].mxu1 }
 0x526   : > { %v5170_v19 = vrot.slane %v8629_v30, 7  ;;  %v5087_v61 = vpop.f32.mrb[179].mxu1 }
 0x527   : > { %v5168_v59 = vrot.slane %v5087_v61, 7  ;;  %v11469_v26 = vsel %vm2140_vm7, %v5166_v28, %v5167_v21 }
 0x528   : > { %8815 = vmatmul.mubr.bf16.vlgmr.msra.gmra.mrb[212].mxu1 %v11153_v29  ;;  %v11474_v10 = vsel %vm2140_vm7, %v5169_v62, %v5170_v19  ;;  %v9546_v29 = vld [vmem:[%s11791_s8 + $0x210] sm:$0xff]  }
 0x529   : > { %8818 = vmatprep.mubr.bf16.mxu1 %v11158_v42  ;;  %8839 = vmatpush3.bf16.msra.mxu1 %v9544_v33  ;;  %v11479_v17 = vsel %vm2140_vm7, %v5168_v59, %v5169_v62  ;;  %v11483_v23 = vsel %vm2140_vm7, %v5167_v21, %v5168_v59  ;;  %v9549_v62 = vld [vmem:[%s11791_s8 + $0x228] sm:$0xff]  }
 0x52a   : > { %8840 = vmatprep.subr.bf16.mxu1 %v9545_v48 }
 0x52b   : > { %v8632_v50 = vpop.f32.mrb[180].mxu1 }
 0x52c   : > { %v5100_v44 = vpop.f32.mrb[181].mxu1  ;;  %v5173_v42 = vrot.slane %v8632_v50, 7 }
 0x52d   : > { %v5171_v45 = vrot.slane %v5100_v44, 7  ;;  %v8633_v39 = vpop.f32.mrb[182].mxu1  ;;  %8841 = vmatpush3.bf16.msra.mxu1 %v9545_v48 }
 0x52e   : > { %v5174_v33 = vrot.slane %v8633_v39, 7  ;;  %v5103_v54 = vpop.f32.mrb[183].mxu1  ;;  %8842 = vmatprep.subr.bf16.mxu1 %v9546_v29 }
 0x52f   : > { %v5172_v34 = vrot.slane %v5103_v54, 7  ;;  %v11493_v43 = vsel %vm2140_vm7, %v5170_v19, %v5171_v45 }
 0x530   : > { %8819 = vmatmul.mubr.bf16.gmra.mrb[216].mxu1 %v11166_v53  ;;  %v11498_v13 = vsel %vm2140_vm7, %v5173_v42, %v5174_v33  ;;  %v9548_v53 = vld [vmem:[%s11791_s8 + $0x220] sm:$0xff]  }
 0x531   : > { %8822 = vmatprep.mubr.bf16.mxu1 %v11171_v14  ;;  %8843 = vmatpush3.bf16.msra.mxu1 %v9546_v29  ;;  %v11503_v58 = vsel %vm2140_vm7, %v5172_v34, %v5173_v42  ;;  %v11507_v28 = vsel %vm2140_vm7, %v5171_v45, %v5172_v34 }
 0x532   : > { %8844 = vmatprep.subr.bf16.mxu1 %v9547_v35 }
 0x533   : > { %v8636_v27 = vpop.f32.mrb[184].mxu1 }
 0x534   : > { %v5116_v18 = vpop.f32.mrb[185].mxu1  ;;  %v5177_v14 = vrot.slane %v8636_v27, 7 }
 0x535   : > { %v5175_v49 = vrot.slane %v5116_v18, 7  ;;  %v8637_v41 = vpop.f32.mrb[186].mxu1  ;;  %8845 = vmatpush3.bf16.msra.mxu1 %v9547_v35 }
 0x536   : > { %v5178_v21 = vrot.slane %v8637_v41, 7  ;;  %v5119_v30 = vpop.f32.mrb[187].mxu1  ;;  %8846 = vmatprep.subr.bf16.mxu1 %v9548_v53 }
 0x537   : > { %v5176_v19 = vrot.slane %v5119_v30, 7  ;;  %v11517_v61 = vsel %vm2140_vm7, %v5174_v33, %v5175_v49 }
 0x538   : > { %8823 = vmatmul.mubr.bf16.gmra.mrb[220].mxu1 %v11178_v1  ;;  %v5202_v48 = vsel %vm2140_vm7, %v5178_v21, %v5155_v63  ;;  %v11526_v59 = vsel %vm2140_vm7, %v5177_v14, %v5178_v21  ;;  %v9550_v1 = vld [vmem:[%s11791_s8 + $0x230] sm:$0xff]  }
 0x539   : > { %8826 = vmatprep.mubr.bf16.mxu1 %v11183_v40  ;;  %8847 = vmatpush3.bf16.msra.mxu1 %v9548_v53  ;;  %v11531_v29 = vsel %vm2140_vm7, %v5176_v19, %v5177_v14  ;;  %v11535_v50 = vsel %vm2140_vm7, %v5175_v49, %v5176_v19  ;;  %v9551_v40 = vld [vmem:[%s11791_s8 + $0x238] sm:$0xff]  }
 0x53a   : > { %8848 = vmatprep.subr.bf16.mxu1 %v9549_v62 }
 0x53d   : > { %8849 = vmatpush3.bf16.msra.mxu1 %v9549_v62 }
 0x53e   : > { %8850 = vmatprep.subr.bf16.mxu1 %v9550_v1 }
 0x540   : > { %8827 = vmatmul.mubr.bf16.gmra.mrb[224].mxu1 %v11190_v37 }
 0x541   : > { %8830 = vmatprep.mubr.bf16.mxu1 %v11195_v31  ;;  %8851 = vmatpush3.bf16.msra.mxu1 %v9550_v1 }
 0x542   : > { %8852 = vmatprep.subr.bf16.mxu1 %v9551_v40 }
 0x545   : > { %8853 = vmatpush3.bf16.msra.mxu1 %v9551_v40 }
 0x548   : > { %8831 = vmatmul.mubr.bf16.gmra.mrb[228].mxu1 %v11202_v46 }
 0x549   : > { %8834 = vmatprep.mubr.bf16.mxu1 %v11204_v16 }
 0x550   : > { %8835 = vmatmul.mubr.bf16.gmra.mrb[232].mxu1 %v11208_v52 }
 0x551   : > { %8854 = vmatprep.mubr.bf16.mxu1 %v11210_v20 }
 0x558   : > { %8855 = vmatmul.mubr.bf16.vlgmr.msra.gmra.mrb[212].mxu1 %v11214_v47 }
 0x559   : > { %8858 = vmatprep.mubr.bf16.mxu1 %v11219_v56 }
 0x560   : > { %8859 = vmatmul.mubr.bf16.gmra.mrb[216].mxu1 %v11226_v7 }
 0x561   : > { %8862 = vmatprep.mubr.bf16.mxu1 %v11231_v0 }
 0x568   : > { %8863 = vmatmul.mubr.bf16.gmra.mrb[220].mxu1 %v11238_v22 }
 0x569   : > { %8866 = vmatprep.mubr.bf16.mxu1 %v11243_v51 }
 0x570   : > { %8867 = vmatmul.mubr.bf16.gmra.mrb[224].mxu1 %v11250_v3 }
 0x571   : > { %8870 = vmatprep.mubr.bf16.mxu1 %v11255_v6 }
 0x578   : > { %8871 = vmatmul.mubr.bf16.gmra.mrb[228].mxu1 %v11262_v8 }
 0x579   : > { %8874 = vmatprep.mubr.bf16.mxu1 %v11264_v11 }
 0x580   : > { %8875 = vmatmul.mubr.bf16.gmra.mrb[232].mxu1 %v11268_v57 }
 0x59b   : > { %v8736_v37 = vpop.f32.mrb[188].mxu1 }
 0x59c   : > { %v11561_v31 = vadd.f32 %v8736_v37, %v11417_v5  ;;  %v5714_v46 = vpop.f32.mrb[189].mxu1 }
 0x59d   : > { %v11563_v16 = vadd.f32 %v5714_v46, %v5202_v48  ;;  %v8737_v52 = vpop.f32.mrb[190].mxu1  ;;  %v11640_v48 = vld [vmem:[%s11792_s9] ss:$0 sm:$0xff] }
 0x59e   : > { %v11566_v20 = vadd.f32 %v8737_v52, %v11412_v12  ;;  %v5717_v47 = vpop.f32.mrb[191].mxu1 }
 0x59f   : > { %v5834_v56 = vadd.f32 %v5717_v47, %v11423_v9 }
 0x5a3   : > { %v8740_v7 = vpop.f32.mrb[192].mxu1 }
 0x5a4   : > { %v11570_v0 = vadd.f32 %v8740_v7, %v11440_v24  ;;  %v5730_v22 = vpop.f32.mrb[193].mxu1 }
 0x5a5   : > { %v11573_v51 = vadd.f32 %v5730_v22, %v11430_v25  ;;  %v8741_v3 = vpop.f32.mrb[194].mxu1 }
 0x5a6   : > { %v11576_v6 = vadd.f32 %v8741_v3, %v11435_v2  ;;  %v5733_v8 = vpop.f32.mrb[195].mxu1 }
 0x5a7   : > { %v11579_v11 = vadd.f32 %v5733_v8, %v11444_v60 }
 0x5ab   : > { %v8744_v57 = vpop.f32.mrb[196].mxu1 }
 0x5ac   : > { %v11582_v55 = vadd.f32 %v8744_v57, %v11458_v38  ;;  %v5746_v63 = vpop.f32.mrb[197].mxu1 }
 0x5ad   : > { %v11585_v12 = vadd.f32 %v5746_v63, %v11448_v15  ;;  %v8745_v5 = vpop.f32.mrb[198].mxu1 }
 0x5ae   : > { %v11588_v9 = vadd.f32 %v8745_v5, %v11453_v4  ;;  %v5749_v25 = vpop.f32.mrb[199].mxu1 }
 0x5af   : > { %v11591_v2 = vadd.f32 %v5749_v25, %v11462_v32 }
 0x5b3   : > { %v8748_v24 = vpop.f32.mrb[200].mxu1 }
 0x5b4   : > { %v11594_v60 = vadd.f32 %v8748_v24, %v11479_v17  ;;  %v5762_v44 = vpop.f32.mrb[201].mxu1 }
 0x5b5   : > { %v11597_v38 = vadd.f32 %v5762_v44, %v11469_v26  ;;  %v8749_v45 = vpop.f32.mrb[202].mxu1 }
 0x5b6   : > { %v11600_v15 = vadd.f32 %v8749_v45, %v11474_v10  ;;  %v5765_v39 = vpop.f32.mrb[203].mxu1 }
 0x5b7   : > { %v11603_v4 = vadd.f32 %v5765_v39, %v11483_v23 }
 0x5bb   : > { %v8752_v42 = vpop.f32.mrb[204].mxu1 }
 0x5bc   : > { %v11606_v32 = vadd.f32 %v8752_v42, %v11503_v58  ;;  %v5778_v17 = vpop.f32.mrb[205].mxu1 }
 0x5bd   : > { %v11609_v33 = vadd.f32 %v5778_v17, %v11493_v43  ;;  %v8753_v26 = vpop.f32.mrb[206].mxu1 }
 0x5be   : > { %v11612_v54 = vadd.f32 %v8753_v26, %v11498_v13  ;;  %v5781_v10 = vpop.f32.mrb[207].mxu1 }
 0x5bf   : > { %v11615_v35 = vadd.f32 %v5781_v10, %v11507_v28 }
 0x5c3   : > { %v8756_v23 = vpop.f32.mrb[208].mxu1 }
 0x5c4   : > { %v11618_v34 = vadd.f32 %v8756_v23, %v11531_v29  ;;  %v5794_v58 = vpop.f32.mrb[209].mxu1 }
 0x5c5   : > { %v11621_v53 = vadd.f32 %v5794_v58, %v11517_v61  ;;  %v8757_v27 = vpop.f32.mrb[210].mxu1 }
 0x5c6   : > { %v11624_v43 = vadd.f32 %v8757_v27, %v11526_v59  ;;  %v5797_v18 = vpop.f32.mrb[211].mxu1 }
 0x5c7   : > { %v11627_v13 = vadd.f32 %v5797_v18, %v11535_v50 }
 0x62b   : > { %v8856_v28 = vpop.f32.mrb[212].mxu1 }
 0x62c   : > { %v11632_v49 = vpop.f32.mrb[213].mxu1  ;;  %v6465_v14 = vrot.slane %v8856_v28, 1 }
 0x62d   : > { %v8857_v41 = vpop.f32.mrb[214].mxu1  ;;  %v6463_v62 = vrot.slane %v11632_v49, 1 }
 0x62e   : > { %v6466_v21 = vrot.slane %v8857_v41, 1  ;;  %v6347_v30 = vpop.f32.mrb[215].mxu1 }
 0x62f   : > { %v6464_v19 = vrot.slane %v6347_v30, 1 }
 0x630   : > { %v6507_v61 = vsel %vm3629_vm0, %v6465_v14, %v6466_v21 }
 0x631   : > { %v6513_v59 = vadd.f32 %v6507_v61, %v11561_v31  ;;  %v6508_v29 = vsel %vm3629_vm0, %v6464_v19, %v6465_v14  ;;  %v6509_v50 = vsel %vm3629_vm0, %v6463_v62, %v6464_v19 }
 0x632   : > { %v6511_v1 = vadd.f32 %v6509_v50, %v11563_v16  ;;  %v6512_v40 = vadd.f32 %v6508_v29, %v5834_v56 }
 0x633   : > { %v6544_v37 = vadd.f32 %v11640_v48, %v6513_v59  ;;  %v8860_v31 = vpop.f32.mrb[216].mxu1 }
 0x634   : > { %v6542_v46 = vadd.f32 %v11640_v48, %v6511_v1  ;;  %v6543_v52 = vadd.f32 %v11640_v48, %v6512_v40  ;;  %v6360_v47 = vpop.f32.mrb[217].mxu1  ;;  %v6469_v3 = vrot.slane %v8860_v31, 1 }
 0x635   : > { %6568 = vst [vmem:[%s11652_s23 + $0x10] sm:$0xff] %v6544_v37  ;;  %v6467_v7 = vrot.slane %v6360_v47, 1  ;;  %v8861_v22 = vpop.f32.mrb[218].mxu1 }
 0x636   : > { %6566 = vst [vmem:[%s11652_s23] sm:$0xff] %v6542_v46  ;;  %6567 = vst [vmem:[%s11652_s23 + $0x8] sm:$0xff] %v6543_v52  ;;  %v6470_v8 = vrot.slane %v8861_v22, 1  ;;  %v6363_v57 = vpop.f32.mrb[219].mxu1 }
 0x637   : > { %v6506_v16 = vsel %vm3629_vm0, %v6466_v21, %v6467_v7  ;;  %v6468_v56 = vrot.slane %v6363_v57, 1 }
 0x638   : > { %v6514_v63 = vadd.f32 %v6506_v16, %v11566_v20  ;;  %v6503_v5 = vsel %vm3629_vm0, %v6469_v3, %v6470_v8 }
 0x639   : > { %v6517_v25 = vadd.f32 %v6503_v5, %v11570_v0  ;;  %v6504_v24 = vsel %vm3629_vm0, %v6468_v56, %v6469_v3  ;;  %v6505_v44 = vsel %vm3629_vm0, %v6467_v7, %v6468_v56 }
 0x63a   : > { %v6545_v45 = vadd.f32 %v11640_v48, %v6514_v63  ;;  %v6515_v39 = vadd.f32 %v6505_v44, %v11573_v51  ;;  %v6516_v42 = vadd.f32 %v6504_v24, %v11579_v11 }
 0x63b   : > { %v6548_v20 = vadd.f32 %v11640_v48, %v6517_v25  ;;  %v8864_v17 = vpop.f32.mrb[220].mxu1 }
 0x63c   : > { %6569 = vst [vmem:[%s11652_s23 + $0x18] sm:$0xff] %v6545_v45  ;;  %v6546_v26 = vadd.f32 %v11640_v48, %v6515_v39  ;;  %v6547_v0 = vadd.f32 %v11640_v48, %v6516_v42  ;;  %v6376_v10 = vpop.f32.mrb[221].mxu1  ;;  %v6473_v27 = vrot.slane %v8864_v17, 1 }
 0x63d   : > { %6572 = vst [vmem:[%s11652_s23 + $0x30] sm:$0xff] %v6548_v20  ;;  %v6471_v23 = vrot.slane %v6376_v10, 1  ;;  %v8865_v58 = vpop.f32.mrb[222].mxu1 }
 0x63e   : > { %6570 = vst [vmem:[%s11652_s23 + $0x20] sm:$0xff] %v6546_v26  ;;  %6571 = vst [vmem:[%s11652_s23 + $0x28] sm:$0xff] %v6547_v0  ;;  %v6474_v18 = vrot.slane %v8865_v58, 1  ;;  %v6379_v51 = vpop.f32.mrb[223].mxu1 }
 0x63f   : > { %v6502_v11 = vsel %vm3629_vm0, %v6470_v8, %v6471_v23  ;;  %v6472_v28 = vrot.slane %v6379_v51, 1 }
 0x640   : > { %v6518_v41 = vadd.f32 %v6502_v11, %v11576_v6  ;;  %v6499_v14 = vsel %vm3629_vm0, %v6473_v27, %v6474_v18 }
 0x641   : > { %v6521_v21 = vadd.f32 %v6499_v14, %v11582_v55  ;;  %v6500_v30 = vsel %vm3629_vm0, %v6472_v28, %v6473_v27  ;;  %v6501_v19 = vsel %vm3629_vm0, %v6471_v23, %v6472_v28 }
 0x642   : > { %v6549_v61 = vadd.f32 %v11640_v48, %v6518_v41  ;;  %v6519_v59 = vadd.f32 %v6501_v19, %v11585_v12  ;;  %v6520_v29 = vadd.f32 %v6500_v30, %v11591_v2 }
 0x643   : > { %v6552_v6 = vadd.f32 %v11640_v48, %v6521_v21  ;;  %v8868_v50 = vpop.f32.mrb[224].mxu1 }
 0x644   : > { %6573 = vst [vmem:[%s11652_s23 + $0x38] sm:$0xff] %v6549_v61  ;;  %v6550_v1 = vadd.f32 %v11640_v48, %v6519_v59  ;;  %v6551_v55 = vadd.f32 %v11640_v48, %v6520_v29  ;;  %v6392_v40 = vpop.f32.mrb[225].mxu1  ;;  %v6477_v46 = vrot.slane %v8868_v50, 1 }
 0x645   : > { %6576 = vst [vmem:[%s11652_s23 + $0x50] sm:$0xff] %v6552_v6  ;;  %v6475_v37 = vrot.slane %v6392_v40, 1  ;;  %v8869_v31 = vpop.f32.mrb[226].mxu1 }
 0x646   : > { %6574 = vst [vmem:[%s11652_s23 + $0x40] sm:$0xff] %v6550_v1  ;;  %6575 = vst [vmem:[%s11652_s23 + $0x48] sm:$0xff] %v6551_v55  ;;  %v6478_v52 = vrot.slane %v8869_v31, 1  ;;  %v6395_v12 = vpop.f32.mrb[227].mxu1 }
 0x647   : > { %v6498_v2 = vsel %vm3629_vm0, %v6474_v18, %v6475_v37  ;;  %v6476_v47 = vrot.slane %v6395_v12, 1 }
 0x648   : > { %v6522_v7 = vadd.f32 %v6498_v2, %v11588_v9  ;;  %v6495_v22 = vsel %vm3629_vm0, %v6477_v46, %v6478_v52 }
 0x649   : > { %v6525_v3 = vadd.f32 %v6495_v22, %v11594_v60  ;;  %v6496_v8 = vsel %vm3629_vm0, %v6476_v47, %v6477_v46  ;;  %v6497_v57 = vsel %vm3629_vm0, %v6475_v37, %v6476_v47 }
 0x64a   : > { %v6553_v16 = vadd.f32 %v11640_v48, %v6522_v7  ;;  %v6523_v56 = vadd.f32 %v6497_v57, %v11597_v38  ;;  %v6524_v63 = vadd.f32 %v6496_v8, %v11603_v4 }
 0x64b   : > { %v6556_v9 = vadd.f32 %v11640_v48, %v6525_v3  ;;  %v8872_v5 = vpop.f32.mrb[228].mxu1 }
 0x64c   : > { %6577 = vst [vmem:[%s11652_s23 + $0x58] sm:$0xff] %v6553_v16  ;;  %v6554_v25 = vadd.f32 %v11640_v48, %v6523_v56  ;;  %v6555_v60 = vadd.f32 %v11640_v48, %v6524_v63  ;;  %v6408_v24 = vpop.f32.mrb[229].mxu1  ;;  %v6481_v39 = vrot.slane %v8872_v5, 1 }
 0x64d   : > { %6580 = vst [vmem:[%s11652_s23 + $0x70] sm:$0xff] %v6556_v9  ;;  %v6479_v44 = vrot.slane %v6408_v24, 1  ;;  %v8873_v45 = vpop.f32.mrb[230].mxu1 }
 0x64e   : > { %6578 = vst [vmem:[%s11652_s23 + $0x60] sm:$0xff] %v6554_v25  ;;  %6579 = vst [vmem:[%s11652_s23 + $0x68] sm:$0xff] %v6555_v60  ;;  %v6482_v42 = vrot.slane %v8873_v45, 1  ;;  %v6411_v38 = vpop.f32.mrb[231].mxu1 }
 0x64f   : > { %v6494_v4 = vsel %vm3629_vm0, %v6478_v52, %v6479_v44  ;;  %v6480_v20 = vrot.slane %v6411_v38, 1 }
 0x650   : > { %v6526_v17 = vadd.f32 %v6494_v4, %v11600_v15  ;;  %v6491_v26 = vsel %vm3629_vm0, %v6481_v39, %v6482_v42 }
 0x651   : > { %v6529_v0 = vadd.f32 %v6491_v26, %v11606_v32  ;;  %v6492_v10 = vsel %vm3629_vm0, %v6480_v20, %v6481_v39  ;;  %v6493_v23 = vsel %vm3629_vm0, %v6479_v44, %v6480_v20 }
 0x652   : > { %v6557_v58 = vadd.f32 %v11640_v48, %v6526_v17  ;;  %v6527_v27 = vadd.f32 %v6493_v23, %v11609_v33  ;;  %v6528_v18 = vadd.f32 %v6492_v10, %v11615_v35 }
 0x653   : > { %v6560_v15 = vadd.f32 %v11640_v48, %v6529_v0  ;;  %v8876_v51 = vpop.f32.mrb[232].mxu1 }
 0x654   : > { %6581 = vst [vmem:[%s11652_s23 + $0x78] sm:$0xff] %v6557_v58  ;;  %v6558_v11 = vadd.f32 %v11640_v48, %v6527_v27  ;;  %v6559_v32 = vadd.f32 %v11640_v48, %v6528_v18  ;;  %v6424_v28 = vpop.f32.mrb[233].mxu1  ;;  %v6485_v21 = vrot.slane %v8876_v51, 1 }
 0x655   : > { %6584 = vst [vmem:[%s11652_s23 + $0x90] sm:$0xff] %v6560_v15  ;;  %v6483_v41 = vrot.slane %v6424_v28, 1  ;;  %v8877_v14 = vpop.f32.mrb[234].mxu1 }
 0x656   : > { %6582 = vst [vmem:[%s11652_s23 + $0x80] sm:$0xff] %v6558_v11  ;;  %6583 = vst [vmem:[%s11652_s23 + $0x88] sm:$0xff] %v6559_v32  ;;  %v6486_v30 = vrot.slane %v8877_v14, 1  ;;  %v6427_v33 = vpop.f32.mrb[235].mxu1 }
 0x657   : > { %v6490_v35 = vsel %vm3629_vm0, %v6482_v42, %v6483_v41  ;;  %v6484_v19 = vrot.slane %v6427_v33, 1 }
 0x658   : > { %v6530_v61 = vadd.f32 %v6490_v35, %v11612_v54  ;;  %v6487_v59 = vsel %vm3629_vm0, %v6485_v21, %v6486_v30  ;;  %v6510_v29 = vsel %vm3629_vm0, %v6486_v30, %v6463_v62 }
 0x659   : > { %v6533_v6 = vadd.f32 %v6487_v59, %v11618_v34  ;;  %v6534_v50 = vadd.f32 %v6510_v29, %v11624_v43  ;;  %v6488_v1 = vsel %vm3629_vm0, %v6484_v19, %v6485_v21  ;;  %v6489_v54 = vsel %vm3629_vm0, %v6483_v41, %v6484_v19 }
 0x65a   : > { %v6561_v55 = vadd.f32 %v11640_v48, %v6530_v61  ;;  %v6531_v40 = vadd.f32 %v6489_v54, %v11621_v53  ;;  %v6532_v49 = vadd.f32 %v6488_v1, %v11627_v13 }
 0x65b   : > { %v6564_v37 = vadd.f32 %v11640_v48, %v6533_v6  ;;  %v6565_v62 = vadd.f32 %v11640_v48, %v6534_v50 }
 0x65c   : > { %6585 = vst [vmem:[%s11652_s23 + $0x98] sm:$0xff] %v6561_v55  ;;  %v6562_v34 = vadd.f32 %v11640_v48, %v6531_v40  ;;  %v6563_v43 = vadd.f32 %v11640_v48, %v6532_v49 }
 0x65d   : > { %6588 = vst [vmem:[%s11652_s23 + $0xb0] sm:$0xff] %v6564_v37  ;;  %6589 = vst [vmem:[%s11652_s23 + $0xb8] sm:$0xff] %v6565_v62 }
 0x65e   : > { %6586 = vst [vmem:[%s11652_s23 + $0xa0] sm:$0xff] %v6562_v34  ;;  %6587 = vst [vmem:[%s11652_s23 + $0xa8] sm:$0xff] %v6563_v43 }
 0x65f PF: > { %s20_s17 = sadd.s32 1, %s9616_s17   ;;  %s11840_s13 = smov %s9608_s15 }
 0x660   : > { %p17_p8 = scmp.ge.s32.totalorder %s20_s17, 6   ;;  %s11841_s14 = smov %s9612_s16 }
 0x661   : > { %s11842_s15 = smov %s11845_s18  ;;  %s11843_s16 = smov %s11849_s19 }
 0x662   :  { %19 = sbr.rel (!%p17_p8) target bundleno = 3 (0x3), region = 114 }

</bundles_post_ra>
